<compile_context>
chip_gen: v7x
topology: tpu7x:2x2x1
jax: 0.10.0
libtpu: 0.0.40
codegen_flags: <defaults>
</compile_context>

<pallas_src>
import math
import functools

import jax
import jax.numpy as jnp
from jax.experimental import pallas as pl
from jax.experimental.pallas import tpu as pltpu

GN_GROUPS = 32          # nn.GroupNorm(32, out_channels)
GN_EPS = 1e-5


def _dynamic_bottleneck_kernel(H, W, Cin, Cout, G,
                               mask_ref, x_ref, w1_ref, g1g_ref, g1b_ref,
                               w2_ref, g2g_ref, g2b_ref, gw_ref, gb_ref,
                               out_ref):
    """One grid step == one batch element. Activations are (C, H*W): channels on
    sublanes, spatial positions on lanes."""
    HW = H * W
    f32 = jnp.float32

    mask = mask_ref[...]               # (9, HW) per-tap validity masks (0/1)
    x2 = x_ref[0]                      # (Cin, HW)

    def im2col(t, C):
        """(C, HW) -> (9*C, HW): the 3x3 taps stacked along the contraction axis.

        Shift along the flattened-HW lane axis via a wrap-around slice of the
        doubled array [t, t] (aligned lane concat), then zero the positions
        whose tap falls outside the image (padding=1 borders)."""
        tt = jnp.concatenate([t, t], axis=1)            # (C, 2*HW)
        views = []
        for k in range(9):
            oy, ox = k // 3 - 1, k % 3 - 1
            off = oy * W + ox
            if off == 0:
                views.append(t)                         # center tap, always valid
            else:
                s = off % HW
                v = tt[:, s:s + HW]                     # v[:, i] = t[:, (i+off) % HW]
                views.append(v * mask[k:k + 1, :])      # mask out-of-image taps
        return jnp.concatenate(views, axis=0)           # (9*C, HW)

    def group_norm(h, gamma, beta):
        """Per-sample GroupNorm(GN_GROUPS, Cout). h: (Cout, HW); gamma/beta: (Cout, 1)."""
        gs = Cout // GN_GROUPS
        s1 = jnp.sum(h, axis=1, keepdims=True)          # (Cout, 1)
        s2 = jnp.sum(h * h, axis=1, keepdims=True)      # (Cout, 1)
        if gs > 1:                                      # fold channels of a group
            s1g = jnp.sum(s1.reshape(GN_GROUPS, gs), axis=1, keepdims=True)
            s2g = jnp.sum(s2.reshape(GN_GROUPS, gs), axis=1, keepdims=True)
            s1 = jnp.broadcast_to(s1g, (GN_GROUPS, gs)).reshape(Cout, 1)
            s2 = jnp.broadcast_to(s2g, (GN_GROUPS, gs)).reshape(Cout, 1)
        inv_cnt = 1.0 / float(gs * HW)
        mean = s1 * inv_cnt
        var = s2 * inv_cnt - mean * mean
        rstd = jax.lax.rsqrt(var + GN_EPS)
        scale = rstd * gamma                            # fold into one affine pass
        shift = beta - mean * scale
        return h * scale + shift

    # conv1 (single im2col matmul, K = 9*Cin) -> GN -> ReLU
    h = jnp.dot(w1_ref[...], im2col(x2, Cin), preferred_element_type=f32)   # (Cout, HW)
    h = jnp.maximum(group_norm(h, g1g_ref[...], g1b_ref[...]), 0.0)

    # conv2 -> GN
    h2 = jnp.dot(w2_ref[...], im2col(h, Cout), preferred_element_type=f32)  # (Cout, HW)
    h2 = group_norm(h2, g2g_ref[...], g2b_ref[...])

    # SpatialGate: 1x1 conv on x, ReTanH, broadcast gate over its channel group
    logits = jnp.dot(gw_ref[...], x2, preferred_element_type=f32) + gb_ref[...]  # (G, HW)
    gate = jnp.maximum(jnp.tanh(logits), 0.0)
    if G == 1:
        gate_c = gate                                   # (1, HW) broadcast over channels
    else:
        cg = Cout // G
        gate_c = jnp.broadcast_to(gate[:, None, :], (G, cg, HW)).reshape(Cout, HW)

    # residual (identity shortcut since Cin == Cout) + final ReLU
    out_ref[0] = jnp.maximum(h2 * gate_c + x2, 0.0)


def dynamic_bottleneck(x_nchw, params, *, num_groups=1):
    """Pallas implementation. x_nchw: (B, Cin, H, W) float32 (NCHW like PyTorch)."""
    B, Cin, H, W = x_nchw.shape
    w1 = params["w1"]
    Cout = w1.shape[0]
    G = num_groups
    HW = H * W
    assert Cin == Cout, "identity-shortcut config only (in_channels == out_channels)"
    assert Cout % GN_GROUPS == 0 and Cout % G == 0

    # NCHW -> (B, C, H*W): pure reshape, no transpose (channels land on sublanes,
    # the flattened spatial axis lands on lanes inside the kernel).
    x = x_nchw.reshape(B, Cin, HW).astype(jnp.float32)

    # conv weights (Cout, Cin, 3, 3) -> (Cout, 9*Cin), tap-major / channel-minor
    # to match the im2col row order (tap k = ky*3 + kx).
    w1k = jnp.transpose(params["w1"], (0, 2, 3, 1)).reshape(Cout, 9 * Cin).astype(jnp.float32)
    w2k = jnp.transpose(params["w2"], (0, 2, 3, 1)).reshape(Cout, 9 * Cout).astype(jnp.float32)
    gwk = params["gate_w"][:, :, 0, 0].astype(jnp.float32)                 # (G, Cin)
    gbk = params["gate_b"].reshape(G, 1).astype(jnp.float32)
    g1g = params["gn1_gamma"].reshape(Cout, 1).astype(jnp.float32)
    g1b = params["gn1_beta"].reshape(Cout, 1).astype(jnp.float32)
    g2g = params["gn2_gamma"].reshape(Cout, 1).astype(jnp.float32)
    g2b = params["gn2_beta"].reshape(Cout, 1).astype(jnp.float32)

    # 3x3 tap validity masks over the flattened H*W axis (implements padding=1).
    ys = jnp.arange(H)[:, None]
    xs = jnp.arange(W)[None, :]
    masks = []
    for dy in range(3):
        for dx in range(3):
            oy, ox = dy - 1, dx - 1
            valid = (ys + oy >= 0) & (ys + oy < H) & (xs + ox >= 0) & (xs + ox < W)
            masks.append(valid.reshape(HW))
    mask = jnp.stack(masks, axis=0).astype(jnp.float32)                    # (9, HW)

    def full(shape):
        n = len(shape)
        return pl.BlockSpec(shape, lambda b, n=n: (0,) * n)

    flops = 2 * B * HW * (9 * Cin * Cout + 9 * Cout * Cout + Cin * G) + 12 * B * HW * Cout
    transcendentals = B * HW * G + 4 * B * GN_GROUPS
    bytes_accessed = 4 * (2 * B * Cin * HW + 9 * Cin * Cout + 9 * Cout * Cout
                          + Cin * G + G + 4 * Cout + 9 * HW)

    out = pl.pallas_call(
        functools.partial(_dynamic_bottleneck_kernel, H, W, Cin, Cout, G),
        out_shape=jax.ShapeDtypeStruct((B, Cout, HW), jnp.float32),
        grid=(B,),
        in_specs=[
            full((9, HW)),                                       # tap masks
            pl.BlockSpec((1, Cin, HW), lambda b: (b, 0, 0)),     # x
            full((Cout, 9 * Cin)),                               # w1 (im2col layout)
            full((Cout, 1)), full((Cout, 1)),                    # gn1 gamma/beta
            full((Cout, 9 * Cout)),                              # w2 (im2col layout)
            full((Cout, 1)), full((Cout, 1)),                    # gn2 gamma/beta
            full((G, Cin)), full((G, 1)),                        # gate conv w/b
        ],
        out_specs=pl.BlockSpec((1, Cout, HW), lambda b: (b, 0, 0)),
        compiler_params=pltpu.CompilerParams(
            dimension_semantics=("parallel",)),                  # 2-TC split on v7x
        cost_estimate=pl.CostEstimate(flops=flops,
                                      transcendentals=transcendentals,
                                      bytes_accessed=bytes_accessed),
    )(mask, x, w1k, g1g, g1b, w2k, g2g, g2b, gwk, gbk)

    return out.reshape(B, Cout, H, W)                            # back to NCHW (free)


def dynamic_bottleneck_ref(x, p, num_groups=1):
    """Pure-JAX reference (mirrors the PyTorch forward) for validation."""
    def conv(x, w, padding):
        return jax.lax.conv_general_dilated(
            x, w, window_strides=(1, 1), padding=padding,
            dimension_numbers=("NCHW", "OIHW", "NCHW"))

    def gn(x, gamma, beta):
        B, C, H, W = x.shape
        xg = x.reshape(B, GN_GROUPS, C // GN_GROUPS, H, W)
        mean = xg.mean(axis=(2, 3, 4), keepdims=True)
        var = xg.var(axis=(2, 3, 4), keepdims=True)
        xn = ((xg - mean) / jnp.sqrt(var + GN_EPS)).reshape(B, C, H, W)
        return xn * gamma[None, :, None, None] + beta[None, :, None, None]

    h = jax.nn.relu(gn(conv(x, p["w1"], ((1, 1), (1, 1))), p["gn1_gamma"], p["gn1_beta"]))
    h2 = gn(conv(h, p["w2"], ((1, 1), (1, 1))), p["gn2_gamma"], p["gn2_beta"])
    logits = conv(x, p["gate_w"], ((0, 0), (0, 0))) + p["gate_b"][None, :, None, None]
    gate = jnp.maximum(jnp.tanh(logits), 0.0)                 # ReTanH
    C = h2.shape[1]
    gate_full = jnp.repeat(gate, C // num_groups, axis=1)     # SpatialGate encode/decode
    return jax.nn.relu(h2 * gate_full + x)                    # identity shortcut


if __name__ == "__main__":
    # in_channels == out_channels == 32 so that GroupNorm(32, C) is valid and the
    # BasicBlock shortcut is the identity (exactly the PyTorch behaviour).
    B, C, H, W = 2, 32, 16, 16
    G = 1                                                     # SpatialGate num_groups (default)

    key = jax.random.PRNGKey(0)
    k1, k2, k3, kx = jax.random.split(key, 4)

    init_gate = 0.99
    gate_bias = 0.5 * math.log((1 + init_gate) / (1 - init_gate))   # ReTanH bias init

    params = {
        "w1": 0.01 * jax.random.normal(k1, (C, C, 3, 3), jnp.float32),
        "gn1_gamma": jnp.ones((C,), jnp.float32),
        "gn1_beta": jnp.zeros((C,), jnp.float32),
        "w2": 0.01 * jax.random.normal(k2, (C, C, 3, 3), jnp.float32),
        "gn2_gamma": jnp.ones((C,), jnp.float32),
        "gn2_beta": jnp.zeros((C,), jnp.float32),
        "gate_w": 0.01 * jax.random.normal(k3, (G, C, 1, 1), jnp.float32),
        "gate_b": jnp.full((G,), gate_bias, jnp.float32),
    }

    x = jax.random.normal(kx, (B, C, H, W), jnp.float32)

    out = jax.block_until_ready(dynamic_bottleneck(x, params, num_groups=G))
    ref = jax.block_until_ready(dynamic_bottleneck_ref(x, params, num_groups=G))

    assert out.shape == (B, C, H, W)
    assert bool(jnp.all(jnp.isfinite(out)))
    max_err = float(jnp.max(jnp.abs(out - ref)))
    assert bool(jnp.allclose(out, ref, atol=1e-4, rtol=1e-4)), f"max abs err {max_err}"

    print("KERNEL_OK")
</pallas_src>

<mosaic_0001>
module attributes {stable_mosaic.version = 11 : i64} {
  func.func @_dynamic_bottleneck_kernel(%arg0: i32, %arg1: memref<9x256xf32, #tpu.memory_space<vmem>>, %arg2: memref<1x32x256xf32, #tpu.memory_space<vmem>>, %arg3: memref<32x288xf32, #tpu.memory_space<vmem>>, %arg4: memref<32x1xf32, #tpu.memory_space<vmem>>, %arg5: memref<32x1xf32, #tpu.memory_space<vmem>>, %arg6: memref<32x288xf32, #tpu.memory_space<vmem>>, %arg7: memref<32x1xf32, #tpu.memory_space<vmem>>, %arg8: memref<32x1xf32, #tpu.memory_space<vmem>>, %arg9: memref<1x32xf32, #tpu.memory_space<vmem>>, %arg10: memref<1x1xf32, #tpu.memory_space<vmem>>, %arg11: memref<1x32x256xf32, #tpu.memory_space<vmem>>) attributes {dimension_semantics = [#tpu.dimension_semantics<parallel>], iteration_bounds = array<i64: 2>, scalar_prefetch = 0 : i64, scratch_operands = 0 : i64, tpu.core_type = #tpu.core_type<tc>, window_params = [{pipeline_mode = #tpu.pipeline_mode<synchronous>, transform_indices = @transform_0, window_bounds = array<i64: 9, 256>}, {transform_indices = @transform_1, window_bounds = array<i64: 1, 32, 256>}, {pipeline_mode = #tpu.pipeline_mode<synchronous>, transform_indices = @transform_2, window_bounds = array<i64: 32, 288>}, {pipeline_mode = #tpu.pipeline_mode<synchronous>, transform_indices = @transform_3, window_bounds = array<i64: 32, 1>}, {pipeline_mode = #tpu.pipeline_mode<synchronous>, transform_indices = @transform_4, window_bounds = array<i64: 32, 1>}, {pipeline_mode = #tpu.pipeline_mode<synchronous>, transform_indices = @transform_5, window_bounds = array<i64: 32, 288>}, {pipeline_mode = #tpu.pipeline_mode<synchronous>, transform_indices = @transform_6, window_bounds = array<i64: 32, 1>}, {pipeline_mode = #tpu.pipeline_mode<synchronous>, transform_indices = @transform_7, window_bounds = array<i64: 32, 1>}, {pipeline_mode = #tpu.pipeline_mode<synchronous>, transform_indices = @transform_8, window_bounds = array<i64: 1, 32>}, {pipeline_mode = #tpu.pipeline_mode<synchronous>, transform_indices = @transform_9, window_bounds = array<i64: 1, 1>}, {transform_indices = @transform_10, window_bounds = array<i64: 1, 32, 256>}]} {
    %c0 = arith.constant 0 : index
    %c0_0 = arith.constant 0 : index
    %0 = vector.load %arg1[%c0, %c0_0] : memref<9x256xf32, #tpu.memory_space<vmem>>, vector<9x256xf32>
    %c0_1 = arith.constant 0 : index
    %c0_2 = arith.constant 0 : index
    %c0_3 = arith.constant 0 : index
    %1 = vector.load %arg2[%c0_1, %c0_2, %c0_3] : memref<1x32x256xf32, #tpu.memory_space<vmem>>, vector<1x32x256xf32>
    %2 = vector.shape_cast %1 : vector<1x32x256xf32> to vector<32x256xf32>
    %c0_4 = arith.constant 0 : index
    %c0_5 = arith.constant 0 : index
    %3 = vector.load %arg3[%c0_4, %c0_5] : memref<32x288xf32, #tpu.memory_space<vmem>>, vector<32x288xf32>
    %4 = tpu.concatenate %2, %2 in 1 : vector<32x256xf32>, vector<32x256xf32> -> vector<32x512xf32>
    %5 = vector.extract_strided_slice %4 {offsets = [0, 239], sizes = [32, 256], strides = [1, 1]} : vector<32x512xf32> to vector<32x256xf32>
    %6 = vector.extract_strided_slice %0 {offsets = [0, 0], sizes = [1, 256], strides = [1, 1]} : vector<9x256xf32> to vector<1x256xf32>
    %7 = vector.broadcast %6 : vector<1x256xf32> to vector<32x256xf32>
    %8 = arith.mulf %5, %7 : vector<32x256xf32>
    %9 = vector.extract_strided_slice %4 {offsets = [0, 240], sizes = [32, 256], strides = [1, 1]} : vector<32x512xf32> to vector<32x256xf32>
    %10 = vector.extract_strided_slice %0 {offsets = [1, 0], sizes = [1, 256], strides = [1, 1]} : vector<9x256xf32> to vector<1x256xf32>
    %11 = vector.broadcast %10 : vector<1x256xf32> to vector<32x256xf32>
    %12 = arith.mulf %9, %11 : vector<32x256xf32>
    %13 = vector.extract_strided_slice %4 {offsets = [0, 241], sizes = [32, 256], strides = [1, 1]} : vector<32x512xf32> to vector<32x256xf32>
    %14 = vector.extract_strided_slice %0 {offsets = [2, 0], sizes = [1, 256], strides = [1, 1]} : vector<9x256xf32> to vector<1x256xf32>
    %15 = vector.broadcast %14 : vector<1x256xf32> to vector<32x256xf32>
    %16 = arith.mulf %13, %15 : vector<32x256xf32>
    %17 = vector.extract_strided_slice %4 {offsets = [0, 255], sizes = [32, 256], strides = [1, 1]} : vector<32x512xf32> to vector<32x256xf32>
    %18 = vector.extract_strided_slice %0 {offsets = [3, 0], sizes = [1, 256], strides = [1, 1]} : vector<9x256xf32> to vector<1x256xf32>
    %19 = vector.broadcast %18 : vector<1x256xf32> to vector<32x256xf32>
    %20 = arith.mulf %17, %19 : vector<32x256xf32>
    %21 = vector.extract_strided_slice %4 {offsets = [0, 1], sizes = [32, 256], strides = [1, 1]} : vector<32x512xf32> to vector<32x256xf32>
    %22 = vector.extract_strided_slice %0 {offsets = [5, 0], sizes = [1, 256], strides = [1, 1]} : vector<9x256xf32> to vector<1x256xf32>
    %23 = vector.broadcast %22 : vector<1x256xf32> to vector<32x256xf32>
    %24 = arith.mulf %21, %23 : vector<32x256xf32>
    %25 = vector.extract_strided_slice %4 {offsets = [0, 15], sizes = [32, 256], strides = [1, 1]} : vector<32x512xf32> to vector<32x256xf32>
    %26 = vector.extract_strided_slice %0 {offsets = [6, 0], sizes = [1, 256], strides = [1, 1]} : vector<9x256xf32> to vector<1x256xf32>
    %27 = vector.broadcast %26 : vector<1x256xf32> to vector<32x256xf32>
    %28 = arith.mulf %25, %27 : vector<32x256xf32>
    %29 = vector.extract_strided_slice %4 {offsets = [0, 16], sizes = [32, 256], strides = [1, 1]} : vector<32x512xf32> to vector<32x256xf32>
    %30 = vector.extract_strided_slice %0 {offsets = [7, 0], sizes = [1, 256], strides = [1, 1]} : vector<9x256xf32> to vector<1x256xf32>
    %31 = vector.broadcast %30 : vector<1x256xf32> to vector<32x256xf32>
    %32 = arith.mulf %29, %31 : vector<32x256xf32>
    %33 = vector.extract_strided_slice %4 {offsets = [0, 17], sizes = [32, 256], strides = [1, 1]} : vector<32x512xf32> to vector<32x256xf32>
    %34 = vector.extract_strided_slice %0 {offsets = [8, 0], sizes = [1, 256], strides = [1, 1]} : vector<9x256xf32> to vector<1x256xf32>
    %35 = vector.broadcast %34 : vector<1x256xf32> to vector<32x256xf32>
    %36 = arith.mulf %33, %35 : vector<32x256xf32>
    %37 = tpu.concatenate %8, %12, %16, %20, %2, %24, %28, %32, %36 in 0 : vector<32x256xf32>, vector<32x256xf32>, vector<32x256xf32>, vector<32x256xf32>, vector<32x256xf32>, vector<32x256xf32>, vector<32x256xf32>, vector<32x256xf32>, vector<32x256xf32> -> vector<288x256xf32>
    %cst = arith.constant dense<0.000000e+00> : vector<32x256xf32>
    %38 = tpu.matmul %3, %37, %cst {dimension_numbers = #tpu.dot_dimension_numbers<[1], [0], [0], [1], [0, 0, 1, 1], [], []>} : vector<32x288xf32>, vector<288x256xf32>, vector<32x256xf32> -> vector<32x256xf32>
    %c0_6 = arith.constant 0 : index
    %c0_7 = arith.constant 0 : index
    %39 = vector.load %arg4[%c0_6, %c0_7] : memref<32x1xf32, #tpu.memory_space<vmem>>, vector<32x1xf32>
    %c0_8 = arith.constant 0 : index
    %c0_9 = arith.constant 0 : index
    %40 = vector.load %arg5[%c0_8, %c0_9] : memref<32x1xf32, #tpu.memory_space<vmem>>, vector<32x1xf32>
    %cst_10 = arith.constant dense<0.000000e+00> : vector<32xf32>
    %41 = vector.multi_reduction <add>, %38, %cst_10 [1] : vector<32x256xf32> to vector<32xf32>
    %42 = vector.shape_cast %41 : vector<32xf32> to vector<32x1xf32>
    %43 = arith.mulf %38, %38 : vector<32x256xf32>
    %cst_11 = arith.constant dense<0.000000e+00> : vector<32xf32>
    %44 = vector.multi_reduction <add>, %43, %cst_11 [1] : vector<32x256xf32> to vector<32xf32>
    %45 = vector.shape_cast %44 : vector<32xf32> to vector<32x1xf32>
    %cst_12 = arith.constant 3.906250e-03 : f32
    %46 = vector.broadcast %cst_12 : f32 to vector<32x1xf32>
    %47 = arith.mulf %42, %46 : vector<32x1xf32>
    %cst_13 = arith.constant 3.906250e-03 : f32
    %48 = vector.broadcast %cst_13 : f32 to vector<32x1xf32>
    %49 = arith.mulf %45, %48 : vector<32x1xf32>
    %50 = arith.mulf %47, %47 : vector<32x1xf32>
    %51 = arith.subf %49, %50 : vector<32x1xf32>
    %cst_14 = arith.constant 9.99999974E-6 : f32
    %52 = vector.broadcast %cst_14 : f32 to vector<32x1xf32>
    %53 = arith.addf %51, %52 : vector<32x1xf32>
    %54 = math.rsqrt %53 : vector<32x1xf32>
    %55 = arith.mulf %54, %39 : vector<32x1xf32>
    %56 = arith.mulf %47, %55 : vector<32x1xf32>
    %57 = arith.subf %40, %56 : vector<32x1xf32>
    %58 = vector.broadcast %55 : vector<32x1xf32> to vector<32x256xf32>
    %59 = arith.mulf %38, %58 : vector<32x256xf32>
    %60 = vector.broadcast %57 : vector<32x1xf32> to vector<32x256xf32>
    %61 = arith.addf %59, %60 : vector<32x256xf32>
    %cst_15 = arith.constant 0.000000e+00 : f32
    %62 = vector.broadcast %cst_15 : f32 to vector<32x256xf32>
    %63 = arith.maximumf %61, %62 : vector<32x256xf32>
    %c0_16 = arith.constant 0 : index
    %c0_17 = arith.constant 0 : index
    %64 = vector.load %arg6[%c0_16, %c0_17] : memref<32x288xf32, #tpu.memory_space<vmem>>, vector<32x288xf32>
    %65 = tpu.concatenate %63, %63 in 1 : vector<32x256xf32>, vector<32x256xf32> -> vector<32x512xf32>
    %66 = vector.extract_strided_slice %65 {offsets = [0, 239], sizes = [32, 256], strides = [1, 1]} : vector<32x512xf32> to vector<32x256xf32>
    %67 = vector.extract_strided_slice %0 {offsets = [0, 0], sizes = [1, 256], strides = [1, 1]} : vector<9x256xf32> to vector<1x256xf32>
    %68 = vector.broadcast %67 : vector<1x256xf32> to vector<32x256xf32>
    %69 = arith.mulf %66, %68 : vector<32x256xf32>
    %70 = vector.extract_strided_slice %65 {offsets = [0, 240], sizes = [32, 256], strides = [1, 1]} : vector<32x512xf32> to vector<32x256xf32>
    %71 = vector.extract_strided_slice %0 {offsets = [1, 0], sizes = [1, 256], strides = [1, 1]} : vector<9x256xf32> to vector<1x256xf32>
    %72 = vector.broadcast %71 : vector<1x256xf32> to vector<32x256xf32>
    %73 = arith.mulf %70, %72 : vector<32x256xf32>
    %74 = vector.extract_strided_slice %65 {offsets = [0, 241], sizes = [32, 256], strides = [1, 1]} : vector<32x512xf32> to vector<32x256xf32>
    %75 = vector.extract_strided_slice %0 {offsets = [2, 0], sizes = [1, 256], strides = [1, 1]} : vector<9x256xf32> to vector<1x256xf32>
    %76 = vector.broadcast %75 : vector<1x256xf32> to vector<32x256xf32>
    %77 = arith.mulf %74, %76 : vector<32x256xf32>
    %78 = vector.extract_strided_slice %65 {offsets = [0, 255], sizes = [32, 256], strides = [1, 1]} : vector<32x512xf32> to vector<32x256xf32>
    %79 = vector.extract_strided_slice %0 {offsets = [3, 0], sizes = [1, 256], strides = [1, 1]} : vector<9x256xf32> to vector<1x256xf32>
    %80 = vector.broadcast %79 : vector<1x256xf32> to vector<32x256xf32>
    %81 = arith.mulf %78, %80 : vector<32x256xf32>
    %82 = vector.extract_strided_slice %65 {offsets = [0, 1], sizes = [32, 256], strides = [1, 1]} : vector<32x512xf32> to vector<32x256xf32>
    %83 = vector.extract_strided_slice %0 {offsets = [5, 0], sizes = [1, 256], strides = [1, 1]} : vector<9x256xf32> to vector<1x256xf32>
    %84 = vector.broadcast %83 : vector<1x256xf32> to vector<32x256xf32>
    %85 = arith.mulf %82, %84 : vector<32x256xf32>
    %86 = vector.extract_strided_slice %65 {offsets = [0, 15], sizes = [32, 256], strides = [1, 1]} : vector<32x512xf32> to vector<32x256xf32>
    %87 = vector.extract_strided_slice %0 {offsets = [6, 0], sizes = [1, 256], strides = [1, 1]} : vector<9x256xf32> to vector<1x256xf32>
    %88 = vector.broadcast %87 : vector<1x256xf32> to vector<32x256xf32>
    %89 = arith.mulf %86, %88 : vector<32x256xf32>
    %90 = vector.extract_strided_slice %65 {offsets = [0, 16], sizes = [32, 256], strides = [1, 1]} : vector<32x512xf32> to vector<32x256xf32>
    %91 = vector.extract_strided_slice %0 {offsets = [7, 0], sizes = [1, 256], strides = [1, 1]} : vector<9x256xf32> to vector<1x256xf32>
    %92 = vector.broadcast %91 : vector<1x256xf32> to vector<32x256xf32>
    %93 = arith.mulf %90, %92 : vector<32x256xf32>
    %94 = vector.extract_strided_slice %65 {offsets = [0, 17], sizes = [32, 256], strides = [1, 1]} : vector<32x512xf32> to vector<32x256xf32>
    %95 = vector.extract_strided_slice %0 {offsets = [8, 0], sizes = [1, 256], strides = [1, 1]} : vector<9x256xf32> to vector<1x256xf32>
    %96 = vector.broadcast %95 : vector<1x256xf32> to vector<32x256xf32>
    %97 = arith.mulf %94, %96 : vector<32x256xf32>
    %98 = tpu.concatenate %69, %73, %77, %81, %63, %85, %89, %93, %97 in 0 : vector<32x256xf32>, vector<32x256xf32>, vector<32x256xf32>, vector<32x256xf32>, vector<32x256xf32>, vector<32x256xf32>, vector<32x256xf32>, vector<32x256xf32>, vector<32x256xf32> -> vector<288x256xf32>
    %cst_18 = arith.constant dense<0.000000e+00> : vector<32x256xf32>
    %99 = tpu.matmul %64, %98, %cst_18 {dimension_numbers = #tpu.dot_dimension_numbers<[1], [0], [0], [1], [0, 0, 1, 1], [], []>} : vector<32x288xf32>, vector<288x256xf32>, vector<32x256xf32> -> vector<32x256xf32>
    %c0_19 = arith.constant 0 : index
    %c0_20 = arith.constant 0 : index
    %100 = vector.load %arg7[%c0_19, %c0_20] : memref<32x1xf32, #tpu.memory_space<vmem>>, vector<32x1xf32>
    %c0_21 = arith.constant 0 : index
    %c0_22 = arith.constant 0 : index
    %101 = vector.load %arg8[%c0_21, %c0_22] : memref<32x1xf32, #tpu.memory_space<vmem>>, vector<32x1xf32>
    %cst_23 = arith.constant dense<0.000000e+00> : vector<32xf32>
    %102 = vector.multi_reduction <add>, %99, %cst_23 [1] : vector<32x256xf32> to vector<32xf32>
    %103 = vector.shape_cast %102 : vector<32xf32> to vector<32x1xf32>
    %104 = arith.mulf %99, %99 : vector<32x256xf32>
    %cst_24 = arith.constant dense<0.000000e+00> : vector<32xf32>
    %105 = vector.multi_reduction <add>, %104, %cst_24 [1] : vector<32x256xf32> to vector<32xf32>
    %106 = vector.shape_cast %105 : vector<32xf32> to vector<32x1xf32>
    %cst_25 = arith.constant 3.906250e-03 : f32
    %107 = vector.broadcast %cst_25 : f32 to vector<32x1xf32>
    %108 = arith.mulf %103, %107 : vector<32x1xf32>
    %cst_26 = arith.constant 3.906250e-03 : f32
    %109 = vector.broadcast %cst_26 : f32 to vector<32x1xf32>
    %110 = arith.mulf %106, %109 : vector<32x1xf32>
    %111 = arith.mulf %108, %108 : vector<32x1xf32>
    %112 = arith.subf %110, %111 : vector<32x1xf32>
    %cst_27 = arith.constant 9.99999974E-6 : f32
    %113 = vector.broadcast %cst_27 : f32 to vector<32x1xf32>
    %114 = arith.addf %112, %113 : vector<32x1xf32>
    %115 = math.rsqrt %114 : vector<32x1xf32>
    %116 = arith.mulf %115, %100 : vector<32x1xf32>
    %117 = arith.mulf %108, %116 : vector<32x1xf32>
    %118 = arith.subf %101, %117 : vector<32x1xf32>
    %119 = vector.broadcast %116 : vector<32x1xf32> to vector<32x256xf32>
    %120 = arith.mulf %99, %119 : vector<32x256xf32>
    %121 = vector.broadcast %118 : vector<32x1xf32> to vector<32x256xf32>
    %122 = arith.addf %120, %121 : vector<32x256xf32>
    %c0_28 = arith.constant 0 : index
    %c0_29 = arith.constant 0 : index
    %123 = vector.load %arg9[%c0_28, %c0_29] : memref<1x32xf32, #tpu.memory_space<vmem>>, vector<1x32xf32>
    %cst_30 = arith.constant dense<0.000000e+00> : vector<1x256xf32>
    %124 = tpu.matmul %123, %2, %cst_30 {dimension_numbers = #tpu.dot_dimension_numbers<[1], [0], [0], [1], [0, 0, 1, 1], [], []>} : vector<1x32xf32>, vector<32x256xf32>, vector<1x256xf32> -> vector<1x256xf32>
    %c0_31 = arith.constant 0 : index
    %c0_32 = arith.constant 0 : index
    %125 = vector.load %arg10[%c0_31, %c0_32] : memref<1x1xf32, #tpu.memory_space<vmem>>, vector<1x1xf32>
    %126 = vector.broadcast %125 : vector<1x1xf32> to vector<1x256xf32>
    %127 = arith.addf %124, %126 : vector<1x256xf32>
    %128 = math.tanh %127 : vector<1x256xf32>
    %cst_33 = arith.constant 0.000000e+00 : f32
    %129 = vector.broadcast %cst_33 : f32 to vector<1x256xf32>
    %130 = arith.maximumf %128, %129 : vector<1x256xf32>
    %131 = vector.broadcast %130 : vector<1x256xf32> to vector<32x256xf32>
    %132 = arith.mulf %122, %131 : vector<32x256xf32>
    %133 = arith.addf %132, %2 : vector<32x256xf32>
    %cst_34 = arith.constant 0.000000e+00 : f32
    %134 = vector.broadcast %cst_34 : f32 to vector<32x256xf32>
    %135 = arith.maximumf %133, %134 : vector<32x256xf32>
    %c0_35 = arith.constant 0 : index
    %c0_36 = arith.constant 0 : index
    %c0_37 = arith.constant 0 : index
    %136 = vector.load %arg11[%c0_35, %c0_36, %c0_37] : memref<1x32x256xf32, #tpu.memory_space<vmem>>, vector<1x32x256xf32>
    %137 = vector.shape_cast %136 : vector<1x32x256xf32> to vector<32x256xf32>
    %138 = vector.shape_cast %135 : vector<32x256xf32> to vector<1x32x256xf32>
    tpu.vector_store %arg11[%c0_35, %c0_36, %c0_37], %138 {strides = array<i32>} : memref<1x32x256xf32, #tpu.memory_space<vmem>>, vector<1x32x256xf32>,
    return
  }
  func.func @transform_0(%arg0: i32) -> (i32, i32) {
    %c0_i32 = arith.constant 0 : i32
    %c0_i32_0 = arith.constant 0 : i32
    %c0_i32_1 = arith.constant 0 : i32
    return %c0_i32, %c0_i32_0 : i32, i32
  }
  func.func @transform_1(%arg0: i32) -> (i32, i32, i32) {
    %c0_i32 = arith.constant 0 : i32
    %c0_i32_0 = arith.constant 0 : i32
    %c0_i32_1 = arith.constant 0 : i32
    return %arg0, %c0_i32, %c0_i32_0 : i32, i32, i32
  }
  func.func @transform_2(%arg0: i32) -> (i32, i32) {
    %c0_i32 = arith.constant 0 : i32
    %c0_i32_0 = arith.constant 0 : i32
    %c0_i32_1 = arith.constant 0 : i32
    return %c0_i32, %c0_i32_0 : i32, i32
  }
  func.func @transform_3(%arg0: i32) -> (i32, i32) {
    %c0_i32 = arith.constant 0 : i32
    %c0_i32_0 = arith.constant 0 : i32
    %c0_i32_1 = arith.constant 0 : i32
    return %c0_i32, %c0_i32_0 : i32, i32
  }
  func.func @transform_4(%arg0: i32) -> (i32, i32) {
    %c0_i32 = arith.constant 0 : i32
    %c0_i32_0 = arith.constant 0 : i32
    %c0_i32_1 = arith.constant 0 : i32
    return %c0_i32, %c0_i32_0 : i32, i32
  }
  func.func @transform_5(%arg0: i32) -> (i32, i32) {
    %c0_i32 = arith.constant 0 : i32
    %c0_i32_0 = arith.constant 0 : i32
    %c0_i32_1 = arith.constant 0 : i32
    return %c0_i32, %c0_i32_0 : i32, i32
  }
  func.func @transform_6(%arg0: i32) -> (i32, i32) {
    %c0_i32 = arith.constant 0 : i32
    %c0_i32_0 = arith.constant 0 : i32
    %c0_i32_1 = arith.constant 0 : i32
    return %c0_i32, %c0_i32_0 : i32, i32
  }
  func.func @transform_7(%arg0: i32) -> (i32, i32) {
    %c0_i32 = arith.constant 0 : i32
    %c0_i32_0 = arith.constant 0 : i32
    %c0_i32_1 = arith.constant 0 : i32
    return %c0_i32, %c0_i32_0 : i32, i32
  }
  func.func @transform_8(%arg0: i32) -> (i32, i32) {
    %c0_i32 = arith.constant 0 : i32
    %c0_i32_0 = arith.constant 0 : i32
    %c0_i32_1 = arith.constant 0 : i32
    return %c0_i32, %c0_i32_0 : i32, i32
  }
  func.func @transform_9(%arg0: i32) -> (i32, i32) {
    %c0_i32 = arith.constant 0 : i32
    %c0_i32_0 = arith.constant 0 : i32
    %c0_i32_1 = arith.constant 0 : i32
    return %c0_i32, %c0_i32_0 : i32, i32
  }
  func.func @transform_10(%arg0: i32) -> (i32, i32, i32) {
    %c0_i32 = arith.constant 0 : i32
    %c0_i32_0 = arith.constant 0 : i32
    %c0_i32_1 = arith.constant 0 : i32
    return %arg0, %c0_i32, %c0_i32_0 : i32, i32, i32
  }
}

</mosaic_0001>

<bundles_post_ra>
// kernel: tpu_custom_call.1
= control target key start
LH: loop header
LB: loop body
LE: loop exit
PB: predicated region body
PF: predicated region fallthrough
CT: control target
= control target key end

     0   :  { %s6752_s0 = inlined_call_operand.hbm [shape: f32[9,256], index: 0, kind: input, shape index: {}]   ;;  %s6753_s1 = inlined_call_operand.vmem [shape: f32[2,32,256], index: 1, kind: input, shape index: {}]   ;;  %s6754_s2 = inlined_call_operand.hbm [shape: f32[32,288], index: 2, kind: input, shape index: {}]   ;;  %s6755_s3 = inlined_call_operand.vmem [shape: f32[32,1], index: 3, kind: input, shape index: {}]   ;;  %s6756_s4 = inlined_call_operand.vmem [shape: f32[32,1], index: 4, kind: input, shape index: {}]   ;;  %s6757_s5 = inlined_call_operand.hbm [shape: f32[32,288], index: 5, kind: input, shape index: {}]   ;;  %s6758_s6 = inlined_call_operand.vmem [shape: f32[32,1], index: 6, kind: input, shape index: {}]   ;;  %s6759_s7 = inlined_call_operand.vmem [shape: f32[32,1], index: 7, kind: input, shape index: {}]   ;;  %s6760_s8 = inlined_call_operand.vmem [shape: f32[1,32], index: 8, kind: input, shape index: {}]   ;;  %s6761_s9 = inlined_call_operand.<no memory space> [shape: f32[1,1], index: 9, kind: input, shape index: {}]   ;;  %s6762_s10 = inlined_call_operand.hbm [shape: f32[2,32,256], index: 10, kind: output, shape index: {}]  }
   0x1   :  { %6824 = sst [smem:[#allocation34_spill]] %s6754_s2  ;;  %v15_v0 = vstv %s6761_s9 }
   0x2   :  { %16 = vst [vmem:[#allocation2] sm:$0x1] %v15_v0 }
   0x3   :  { %17 = vsyncpa [#allocation4], 0 }
   0x4   :  { %18 = vsyncpa [#allocation7], 0 }
   0x5   :  { %19 = vsyncpa [#allocation5], 0 }
   0x6   :  { %21 = vsyncpa [#allocation5 + $0x1], 0  ;;  %s4651_s15 = smov 0   ;;  %s4653_s16 = smov 0  }
   0x7   :  { %s4655_s17 = smov 0   ;;  %s4657_s18 = smov 0  }
   0x8 LB: > { %6825 = sst [smem:[#allocation13_spill]] %s4563_s17  ;;  %s4672_s9 = sadd.s32 4294967295, %s4567_s18   ;;  %s4567_s18 = sphi %s4657_s18, %s6931_s18   ;;  %s4563_s17 = sphi %s4655_s17, %s6933_s17   ;;  %s4559_s16 = sphi %s4653_s16, %s6935_s16   ;;  %s4555_s15 = sphi %s4651_s15, %s6934_s15  }
   0x9   : > { %s3094_s19 = sadd.s32 4294967294, %s4567_s18   ;;  %s4676_s20 = sadd.s32 1, %s4567_s18  }
   0xa   : > { %6826 = sst [smem:[#allocation14_spill]] %s4676_s20  ;;  %s249_s21 = sadd.s32 1, %s4563_s17 }
   0xb   : > { %s246_s22 = ssub.s32 %s4567_s18, %s4676_s20  ;;  %p259_p0 = scmp.ne.s32.totalorder %s4563_s17, %s4559_s16 }
   0xc   : > { %p247_p1 = scmp.eq.s32.totalorder %s246_s22, 0  ;;  %p260_p2 = scmp.eq.s32.totalorder %s4672_s9, 1 }
   0xd   : > { %p265_p3 = scmp.ne.s32.totalorder %s4559_s16, %s4555_s15  ;;  %p266_p4 = scmp.eq.s32.totalorder %s3094_s19, 1 }
   0xe   : > { %s4687_s23 = scalar_select %p247_p1, %s4563_s17, %s249_s21  }
   0xf   : > { %p4689_p5 = por %p260_p2, %p259_p0  ;;  %p4693_p6 = por %p266_p4, %p265_p3 }
  0x10   : > { %6827 = sst [smem:[#allocation15_spill]] %s4687_s23  ;;  %p3095_p7 = scmp.ge.s32.totalorder %s4567_s18, 1 }
  0x11   : > { %s6828_s24 = scalar_select %p4689_p5, 1, 0 }
  0x12   : > { %s6829_s25 = scalar_select %p4693_p6, 1, 0 }
  0x13   : > { %p273_p8 = scmp.lt.s32.totalorder %s4567_s18, 3  ;;  %p6763_p9 = scmp.eq.s32.totalorder %s4672_s9, 0 }
  0x14   : > { %6830 = sst [smem:[#allocation16_spill]] %s6829_s25  ;;  %s4569_s27 = smov [#allocation6]  }
  0x15   : > { %p4700_p10 = pnand %p3095_p7, %p273_p8  ;;  %s298_s28 = sshll.u32 %s4569_s27, 4  ;;  %s299_s28 = int_to_ptr.vmem [resolvable:$true] %s298_s28 }
  0x16   : > { %s4570_s30 = smov [#allocation3]   ;;  %s6833_s2 = sld [smem:[#allocation34_spill]] }
  0x17   : > { %s6831_s26 = scalar_select %p4700_p10, 1, 0 }
  0x18   : > { %p3307_p11 = pneg %p4700_p10  ;;  %s285_s11 = sshll.u32 %s4570_s30, 4  ;;  %s4712_s11 = int_to_ptr.vmem [resolvable:$true] %s285_s11 }
  0x1a   : > { %p4708_p12 = pnand %p6763_p9, %p3307_p11 }
  0x1c   : > { %s4413_s14 = scalar_lea.hbm %s6833_s2, 1536  ;;  %p4722_p0 = pneg %p4708_p12 }
  0x1d   : > { %p4414_p13 = scmp.ne.s32.totalorder %s6833_s2, %s4413_s14  ;;  %p4420_p3 = scmp.lt.u32.totalorder %s4413_s14, %s6833_s2 }
  0x1f   : > { %p4416_p1 = pnand %p4722_p0, %p4414_p13 }
  0x21   : > { %p4417_p2 = pneg %p4416_p1 }
  0x23   : > { %p4422_p4 = pnand %p4420_p3, %p4417_p2 }
  0x25   : > { %4425 = shalt.err (!%p4422_p4)
}
  0x26   : > { %s4426_s12 = scalar_lea.vmem %s299_s28, 1536  ;;  %p4434_p9 = scmp.lt.s32.totalorder %s299_s28, %s299_s28 }
  0x27   : > { %p4427_p7 = scmp.ne.s32.totalorder %s299_s28, %s4426_s12  ;;  %p4435_p6 = scmp.lt.s32.totalorder %s4426_s12, %s4426_s12 }
  0x29   : > { %p4429_p8 = pnand %p4427_p7, %p4722_p0  ;;  %p4436_p5 = por %p4435_p6, %p4434_p9 }
  0x2b   : > { %p4430_p11 = pneg %p4429_p8 }
  0x2d   : > { %p4437_p10 = pnand %p4436_p5, %p4430_p11 }
  0x2f   : > { %4440 = shalt.err (!%p4437_p10)
}
  0x30   : > { %s6770_s13 = smov 384   ;;  %s6771_s19 = smov 24  }
  0x31   : > { %3313 = dma.hbm_to_vmem [thread:$0]  (!%p4708_p12), %s6833_s2, 1536, %s299_s28, [#allocation7], %s6770_s13, %s6770_s13, %s6771_s19  }
  0x32   : > { %s4441_s23 = scalar_lea.hbm %s6752_s0, 512 }
  0x33   : > { %p4442_p5 = scmp.ne.s32.totalorder %s6752_s0, %s4441_s23  ;;  %p4448_p10 = scmp.lt.u32.totalorder %s4441_s23, %s6752_s0 }
  0x35   : > { %p4444_p6 = pnand %p4442_p5, %p4722_p0 }
  0x37   : > { %p4445_p9 = pneg %p4444_p6 }
  0x39   : > { %p4450_p13 = pnand %p4448_p10, %p4445_p9 }
  0x3b   : > { %4453 = shalt.err (!%p4450_p13)
}
  0x3c   : > { %s4454_s28 = scalar_lea.vmem %s4712_s11, 512  ;;  %p4462_p4 = scmp.lt.s32.totalorder %s4712_s11, %s4712_s11 }
  0x3d   : > { %p4455_p1 = scmp.ne.s32.totalorder %s4712_s11, %s4454_s28  ;;  %p4463_p7 = scmp.lt.s32.totalorder %s4454_s28, %s4454_s28 }
  0x3f   : > { %p4457_p2 = pnand %p4455_p1, %p4722_p0  ;;  %p4464_p8 = por %p4463_p7, %p4462_p4 }
  0x41   : > { %p4458_p3 = pneg %p4457_p2 }
  0x43   : > { %p4465_p11 = pnand %p4464_p8, %p4458_p3 }
  0x45   : > { %4468 = shalt.err (!%p4465_p11)
}
  0x46   : > { %s4573_s17 = smov 256   ;;  %s4574_s20 = smov 16  }
  0x47   : > { %3310 = dma.hbm_to_vmem [thread:$0]  (!%p4708_p12), %s6752_s0, 512, %s4712_s11, [#allocation4], %s4573_s17, %s4573_s17, %s4574_s20  }
  0x48   : > { %s4575_s14 = smov [#allocation8]   ;;  %s4469_s12 = scalar_lea.hbm %s6757_s5, 1536 }
  0x49   : > { %s317_s21 = sshll.u32 %s4575_s14, 4  ;;  %p4470_p5 = scmp.ne.s32.totalorder %s6757_s5, %s4469_s12  ;;  %s318_s21 = int_to_ptr.vmem [resolvable:$true] %s317_s21 }
  0x4a   : > { %p4476_p10 = scmp.lt.u32.totalorder %s4469_s12, %s6757_s5 }
  0x4b   : > { %p4472_p6 = pnand %p4470_p5, %p4722_p0 }
  0x4d   : > { %p4473_p9 = pneg %p4472_p6 }
  0x4f   : > { %p4478_p13 = pnand %p4476_p10, %p4473_p9 }
  0x51   : > { %4481 = shalt.err (!%p4478_p13)
}
  0x52   : > { %s4482_s11 = scalar_lea.vmem %s318_s21, 1536  ;;  %p4490_p4 = scmp.lt.s32.totalorder %s318_s21, %s318_s21 }
  0x53   : > { %p4483_p1 = scmp.ne.s32.totalorder %s318_s21, %s4482_s11  ;;  %p4491_p7 = scmp.lt.s32.totalorder %s4482_s11, %s4482_s11 }
  0x55   : > { %p4485_p2 = pnand %p4483_p1, %p4722_p0  ;;  %p4492_p8 = por %p4491_p7, %p4490_p4 }
  0x57   : > { %p4486_p3 = pneg %p4485_p2 }
  0x59   : > { %p4493_p11 = pnand %p4492_p8, %p4486_p3 }
  0x5b   : > { %4496 = shalt.err (!%p4493_p11)
}
  0x5c   : > { %s6835_s13 = smov 24   ;;  %s6836_s17 = smov 384  }
  0x5d   : > { %3316 = dma.hbm_to_vmem [thread:$0]  (!%p4708_p12), %s6757_s5, 1536, %s318_s21, [#allocation7], %s6836_s17, %s6836_s17, %s6835_s13  }
  0x5e   : > { %p6837_p5 = scmp.ne.s32.totalorder %s6831_s26, 0 }
  0x60   : > { %353 = sbr.rel (%p6837_p5) target bundleno = 2110 (0x83e), region = 60 }
  0x67   : > { %p6838_p0 = scmp.eq.s32.totalorder %s4672_s9, 0 }
  0x69   : > { %4542 = dma.done.wait (%p6838_p0), [#allocation4], 512   ;;  %p6839_p6 = pmov %p6838_p0 }
  0x6a   : > { %p6840_p9 = pmov %p6838_p0 }
  0x6b   : > { %4544 = vsyncadd (%p6839_p6), [#allocation4], 4294966784 }
  0x6c   : > { %4546 = dma.done.wait (%p6840_p9), [#allocation7], 3072   ;;  %p6841_p10 = pmov %p6838_p0 }
  0x6d   : > { %v428_v1 = vlaneseq  ;;  %v404_v5 = vld [vmem:[#allocation3] sm:$0xff]  ;;  %v405_v6 = vld [vmem:[#allocation3 + $0x8] sm:$0xff]  ;;  %s4576_s26 = smov 113   ;;  %s4577_s29 = smov 112   ;;  %v3107_v26 = vld [vmem:[#allocation3 + $0x10] ss:$0 sm:$0xff] }
  0x6e   : > { %4548 = vsyncadd (%p6841_p10), [#allocation7], 4294964224  ;;  %s4578_s22 = smov 127   ;;  %s4579_s20 = smov 1   ;;  %v3108_v27 = vld [vmem:[#allocation3 + $0x18] ss:$0 sm:$0xff] }
  0x6f   : > { %v429_v2 = vshrl.u32 %v428_v1, 7  ;;  %p399_p12 = scmp.lt.s32.totalorder %s4672_s9, 1  ;;  %s4580_s23 = smov 15   ;;  %vm659_vm0 = vcmask 138240   ;;  %vm473_vm1 = vcmask 916480   ;;  %vm504_vm2 = vcmask 924672  }
  0x70   : > { %s6810_s14 = smov 16   ;;  %s4582_s27 = smov 111   ;;  %vm535_vm3 = vcmask 1039360   ;;  %vm566_vm4 = vcmask 7168   ;;  %vm597_vm5 = vcmask 121856   ;;  %vm628_vm6 = vcmask 130048  }
  0x71   : > { %v492_v3 = vsub.s32 2, %v429_v2  ;;  %v461_v4 = vsub.s32 1, %v429_v2  ;;  %v523_v11 = vsub.s32 3, %v429_v2  ;;  %v554_v14 = vsub.s32 5, %v429_v2  ;;  %s400_s25 = scalar_select %p399_p12, %s4672_s9, 1 }
  0x72   : > { %v585_v17 = vsub.s32 6, %v429_v2  ;;  %v616_v20 = vsub.s32 7, %v429_v2  ;;  %v4800_v23 = vsub.s32 0, %v429_v2  ;;  %s4583_s11 = smov 17   ;;  %s4584_s13 = smov 94   ;;  %vm442_vm7 = vcmask 908288  }
  0x73   : > { %v493_v7 = vrot.slane %v404_v5, %v492_v3  ;;  %v462_v8 = vrot.slane %v404_v5, %v461_v4  ;;  %v497_v9 = vrot.slane %v405_v6, %v492_v3  ;;  %v466_v10 = vrot.slane %v405_v6, %v461_v4  ;;  %s3123_s21 = sshll.u32 %s400_s25, 6  ;;  %s4585_s17 = smov 126  }
  0x74   : > { %v528_v12 = vrot.slane %v405_v6, %v523_v11  ;;  %v524_v13 = vrot.slane %v404_v5, %v523_v11  ;;  %v559_v15 = vrot.slane %v405_v6, %v554_v14  ;;  %v555_v16 = vrot.slane %v404_v5, %v554_v14  ;;  %6842 = vst [vmem:[#allocation17_spill] sm:$0xff] %v4800_v23  ;;  %s4812_s28 = scalar_lea.vmem %s6753_s1, %s3123_s21  ;;  %s4586_s2 = smov 110  }
  0x75   : > { %500 = vrot.lane.b32.xlu1 %v493_v7, %s4576_s26  ;;  %469 = vrot.lane.b32.xlu0 %v462_v8, %s4577_s29  ;;  %v590_v18 = vrot.slane %v405_v6, %v585_v17  ;;  %v586_v19 = vrot.slane %v404_v5, %v585_v17  ;;  %v621_v21 = vrot.slane %v405_v6, %v616_v20  ;;  %v4815_v28 = vld [vmem:[%s4812_s28 + $0x10] sm:$0xff]  ;;  %v4818_v29 = vld [vmem:[%s4812_s28 + $0x18] sm:$0xff]  ;;  %s4587_s19 = smov 96   ;;  %vm756_vm8 = vcmask 1031168   ;;  %p6927_p1 = scmp.ne.s32.totalorder %s6828_s24, 0 }
  0x76   : > { %v617_v22 = vrot.slane %v404_v5, %v616_v20  ;;  %v435_v24 = vrot.slane %v405_v6, %v4800_v23  ;;  %v431_v25 = vrot.slane %v404_v5, %v4800_v23  ;;  %v4821_v30 = vld [vmem:[%s4812_s28] sm:$0xff]  ;;  %v4824_v31 = vld [vmem:[%s4812_s28 + $0x8] sm:$0xff]  ;;  %v3388_v32 = vpack.i.bf16 %v4818_v29, %v4815_v28  ;;  %v4839_v36 = vld [vmem:[%s4812_s28 + $0x30] sm:$0xff] }
  0x77   : > { %v3383_v33 = vpack.i.bf16 %v4824_v31, %v4821_v30  ;;  %v4833_v34 = vld [vmem:[%s4812_s28 + $0x20] sm:$0xff]  ;;  %v4836_v35 = vld [vmem:[%s4812_s28 + $0x28] sm:$0xff]  ;;  %v4842_v37 = vld [vmem:[%s4812_s28 + $0x38] sm:$0xff]  ;;  %vm873_vm9 = vcmask 900096   ;;  %vm918_vm10 = vcmask 785408   ;;  %vm963_vm11 = vcmask 777216  }
  0x78   : > { %v3393_v38 = vpack.i.bf16 %v4836_v35, %v4833_v34  ;;  %v3398_v39 = vpack.i.bf16 %v4842_v37, %v4839_v36  ;;  %vm1008_vm12 = vcmask 769024   ;;  %vm1389_vm13 = vcmask 261120  }
  0x79   : > { %502 = vrot.lane.b32.xlu1 %v497_v9, %s4576_s26  ;;  %471 = vrot.lane.b32.xlu0 %v466_v10, %s4577_s29  ;;  %s4588_s26 = smov 95  }
  0x7d   : > { %533 = vrot.lane.b32.xlu1 %v528_v12, %s4578_s22  ;;  %531 = vrot.lane.b32.xlu0 %v524_v13, %s4578_s22 }
  0x81   : > { %564 = vrot.lane.b32.xlu1 %v559_v15, %s4579_s20  ;;  %562 = vrot.lane.b32.xlu0 %v555_v16, %s4579_s20 }
  0x85   : > { %595 = vrot.lane.b32.xlu1 %v590_v18, %s4580_s23  ;;  %593 = vrot.lane.b32.xlu0 %v586_v19, %s4580_s23 }
  0x89   : > { %626 = vrot.lane.b32.xlu1 %v621_v21, %s6810_s14  ;;  %624 = vrot.lane.b32.xlu0 %v617_v22, %s6810_s14 }
  0x8d   : > { %440 = vrot.lane.b32.xlu1 %v435_v24, %s4582_s27  ;;  %438 = vrot.lane.b32.xlu0 %v431_v25, %s4582_s27 }
  0x91   : > { %655 = vrot.lane.b32.xlu1 %v3107_v26, %s4583_s11  ;;  %657 = vrot.lane.b32.xlu0 %v3108_v27, %s4583_s11 }
  0x95   : > { %3389 = vrot.lane.b32.xlu1 %v3388_v32, %s4582_s27  ;;  %3384 = vrot.lane.b32.xlu0 %v3383_v33, %s4582_s27 }
  0x99   : > { %3394 = vrot.lane.b32.xlu0 %v3393_v38, %s4582_s27  ;;  %3399 = vrot.lane.b32.xlu1 %v3398_v39, %s4582_s27 }
  0xe7   : > { %v4852_v40 = vpop.permute.xlu1 %500  ;;  %v4854_v41 = vpop.permute.xlu0 %469 }
  0xe8   : > { %6843 = vst [vmem:[#allocation18_spill] sm:$0xff] %v4852_v40  ;;  %6844 = vst [vmem:[#allocation19_spill] sm:$0xff] %v4854_v41  ;;  %v478_v62 = vmul.f32 %v4854_v41, %v4824_v31  ;;  %v481_v63 = vmul.f32 %v4854_v41, %v4818_v29  ;;  %v509_v4 = vmul.f32 %v4852_v40, %v4824_v31 }
  0xe9   : > { %v512_v5 = vmul.f32 %v4852_v40, %v4818_v29  ;;  %v484_v7 = vmul.f32 %v4854_v41, %v4836_v35  ;;  %v487_v8 = vmul.f32 %v4854_v41, %v4842_v37  ;;  %v515_v13 = vmul.f32 %v4852_v40, %v4836_v35 }
  0xea   : > { %v3418_v3 = vpack.i.bf16 %v481_v63, %v478_v62  ;;  %v518_v14 = vmul.f32 %v4852_v40, %v4842_v37 }
  0xeb   : > { %v4856_v42 = vpop.permute.xlu1 %502  ;;  %v4858_v43 = vpop.permute.xlu0 %471  ;;  %v3428_v9 = vpack.i.bf16 %v512_v5, %v509_v4  ;;  %v3423_v12 = vpack.i.bf16 %v487_v8, %v484_v7 }
  0xec   : > { %v3433_v18 = vpack.i.bf16 %v518_v14, %v515_v13  ;;  %v480_v4 = vmul.f32 %v4858_v43, %v4824_v31  ;;  %v483_v13 = vmul.f32 %v4858_v43, %v4818_v29  ;;  %v4992_v14 = vsel %vm504_vm2, %v4852_v40, %v4856_v42 }
  0xef   : > { %v4860_v44 = vpop.permute.xlu1 %533  ;;  %v4862_v45 = vpop.permute.xlu0 %531 }
  0xf0   : > { %6845 = vst [vmem:[#allocation20_spill] sm:$0xff] %v4862_v45  ;;  %v540_v10 = vmul.f32 %v4862_v45, %v4824_v31  ;;  %v543_v11 = vmul.f32 %v4862_v45, %v4818_v29  ;;  %v546_v19 = vmul.f32 %v4862_v45, %v4836_v35  ;;  %v549_v20 = vmul.f32 %v4862_v45, %v4842_v37 }
  0xf2   : > { %v3438_v15 = vpack.i.bf16 %v543_v11, %v540_v10  ;;  %v3443_v25 = vpack.i.bf16 %v549_v20, %v546_v19  ;;  %v489_v10 = vmul.f32 %v4858_v43, %v4842_v37  ;;  %v486_v20 = vmul.f32 %v4858_v43, %v4836_v35 }
  0xf3   : > { %v4864_v46 = vpop.permute.xlu1 %564  ;;  %v4866_v47 = vpop.permute.xlu0 %562 }
  0xf4   : > { %6846 = vst [vmem:[#allocation21_spill] sm:$0xff] %v4864_v46  ;;  %6847 = vst [vmem:[#allocation22_spill] sm:$0xff] %v4866_v47  ;;  %v579_v16 = vmul.f32 %v4864_v46, %v4833_v34  ;;  %v580_v17 = vmul.f32 %v4866_v47, %v4839_v36  ;;  %v573_v26 = vmul.f32 %v4864_v46, %v4821_v30 }
  0xf5   : > { %v574_v27 = vmul.f32 %v4866_v47, %v4815_v28 }
  0xf6   : > { %v3453_v21 = vpack.i.bf16 %v580_v17, %v579_v16  ;;  %v510_v16 = vmul.f32 %v4992_v14, %v4821_v30  ;;  %v511_v17 = vmul.f32 %v4856_v42, %v4824_v31 }
  0xf7   : > { %v4868_v48 = vpop.permute.xlu1 %595  ;;  %v4870_v49 = vpop.permute.xlu0 %593  ;;  %v3448_v39 = vpack.i.bf16 %v574_v27, %v573_v26  ;;  %v513_v26 = vmul.f32 %v4992_v14, %v4815_v28  ;;  %v514_v27 = vmul.f32 %v4856_v42, %v4818_v29 }
  0xf8   : > { %6848 = vst [vmem:[#allocation23_spill] sm:$0xff] %v4868_v48  ;;  %6849 = vst [vmem:[#allocation24_spill] sm:$0xff] %v4870_v49  ;;  %v610_v22 = vmul.f32 %v4868_v48, %v4833_v34  ;;  %v611_v24 = vmul.f32 %v4870_v49, %v4839_v36 }
  0xfa   : > { %v3463_v32 = vpack.i.bf16 %v611_v24, %v610_v22  ;;  %v519_v22 = vmul.f32 %v4992_v14, %v4839_v36  ;;  %v520_v24 = vmul.f32 %v4856_v42, %v4842_v37 }
  0xfb   : > { %v4872_v50 = vpop.permute.xlu1 %626  ;;  %v4874_v51 = vpop.permute.xlu0 %624 }
  0xfc   : > { %6850 = vst [vmem:[#allocation25_spill] sm:$0xff] %v4872_v50  ;;  %6851 = vst [vmem:[#allocation26_spill] sm:$0xff] %v4874_v51  ;;  %v641_v33 = vmul.f32 %v4872_v50, %v4833_v34  ;;  %v642_v38 = vmul.f32 %v4874_v51, %v4839_v36  ;;  %v635_v63 = vmul.f32 %v4872_v50, %v4821_v30 }
  0xff   : > { %v4876_v52 = vpop.permute.xlu1 %440  ;;  %v4878_v53 = vpop.permute.xlu0 %438 }
 0x100   : > { %6852 = vst [vmem:[#allocation27_spill] sm:$0xff] %v4878_v53  ;;  %v456_v7 = vmul.f32 %v4878_v53, %v4842_v37 }
 0x103   : > { %v4880_v54 = vpop.permute.xlu1 %655  ;;  %v4882_v55 = vpop.permute.xlu0 %657 }
 0x104   : > { %6853 = vst [vmem:[#allocation28_spill] sm:$0xff] %v4880_v54  ;;  %6854 = vst [vmem:[#allocation29_spill] sm:$0xff] %v4882_v55  ;;  %v666_v56 = vmul.f32 %v4882_v55, %v4821_v30  ;;  %v667_v57 = vmul.f32 %v4880_v54, %v4815_v28  ;;  %v4891_v58 = vsel %vm659_vm0, %v4880_v54, %v4882_v55 }
 0x105   : > { %6855 = vst [vmem:[#allocation30_spill] sm:$0xff] %v4891_v58  ;;  %v664_v59 = vmul.f32 %v4880_v54, %v4821_v30  ;;  %v665_v60 = vmul.f32 %v4891_v58, %v4824_v31  ;;  %v668_v1 = vmul.f32 %v4891_v58, %v4818_v29  ;;  %v669_v2 = vmul.f32 %v4882_v55, %v4815_v28 }
 0x106   : > { %v3403_v61 = vpack.i.bf16 %v667_v57, %v666_v56  ;;  %v604_v56 = vmul.f32 %v4868_v48, %v4821_v30  ;;  %v605_v57 = vmul.f32 %v4870_v49, %v4815_v28 }
 0x107   : > { %v3408_v0 = vpack.i.bf16 %v665_v60, %v664_v59  ;;  %v3413_v6 = vpack.i.bf16 %v669_v2, %v668_v1  ;;  %v3473_v59 = vpack.i.bf16 %v642_v38, %v641_v33  ;;  %v447_v60 = vmul.f32 %v4878_v53, %v4824_v31 }
 0x108   : > { %3404 = vrot.lane.b32.xlu0 %v3403_v61, %s4584_s13  ;;  %v450_v61 = vmul.f32 %v4878_v53, %v4818_v29  ;;  %v3458_v62 = vpack.i.bf16 %v605_v57, %v604_v56  ;;  %v4968_v1 = vsel %vm473_vm1, %v4854_v41, %v4858_v43  ;;  %v3523_v33 = vpack.i.bf16 %v520_v24, %v519_v22 }
 0x109   : > { %3409 = vrot.lane.b32.xlu1 %v3408_v0, %s4584_s13  ;;  %v636_v0 = vmul.f32 %v4874_v51, %v4815_v28  ;;  %v485_v19 = vmul.f32 %v4968_v1, %v4833_v34  ;;  %v3513_v56 = vpack.i.bf16 %v514_v27, %v513_v26  ;;  %v516_v57 = vmul.f32 %v4992_v14, %v4833_v34 }
 0x10a   : > { %v3478_v2 = vpack.i.bf16 %v450_v61, %v447_v60  ;;  %v582_v24 = vmul.f32 %v4864_v46, %v4839_v36  ;;  %v607_v27 = vmul.f32 %v4868_v48, %v4815_v28 }
 0x10b   : > { %v3468_v5 = vpack.i.bf16 %v636_v0, %v635_v63 }
 0x10c   : > { %3419 = vrot.lane.b32.xlu0 %v3418_v3, %s4578_s22  ;;  %v479_v3 = vmul.f32 %v4968_v1, %v4821_v30 }
 0x10d   : > { %3414 = vrot.lane.b32.xlu1 %v3413_v6, %s4584_s13  ;;  %v453_v6 = vmul.f32 %v4878_v53, %v4836_v35 }
 0x10e   : > { %v3488_v8 = vpack.i.bf16 %v480_v4, %v479_v3  ;;  %v5041_v3 = vsel %vm566_vm4, %v4866_v47, %v4864_v46 }
 0x10f   : > { %v3483_v11 = vpack.i.bf16 %v456_v7, %v453_v6  ;;  %6856 = vst [vmem:[#allocation31_spill] sm:$0xff] %v5041_v3  ;;  %v572_v6 = vmul.f32 %v5041_v3, %v4824_v31  ;;  %v581_v22 = vmul.f32 %v5041_v3, %v4842_v37 }
 0x110   : > { %3429 = vrot.lane.b32.xlu0 %v3428_v9, %s4585_s17  ;;  %v488_v9 = vmul.f32 %v4968_v1, %v4839_v36 }
 0x111   : > { %3424 = vrot.lane.b32.xlu1 %v3423_v12, %s4578_s22  ;;  %v482_v12 = vmul.f32 %v4968_v1, %v4815_v28 }
 0x114   : > { %3439 = vrot.lane.b32.xlu0 %v3438_v15, %s4577_s29  ;;  %v3503_v15 = vpack.i.bf16 %v489_v10, %v488_v9  ;;  %v548_v9 = vmul.f32 %v4860_v44, %v4836_v35 }
 0x115   : > { %3434 = vrot.lane.b32.xlu1 %v3433_v18, %s4585_s17  ;;  %v3493_v18 = vpack.i.bf16 %v483_v13, %v482_v12  ;;  %v576_v12 = vmul.f32 %v4864_v46, %v4815_v28 }
 0x118   : > { %3454 = vrot.lane.b32.xlu0 %v3453_v21, %s4586_s2  ;;  %v3508_v21 = vpack.i.bf16 %v511_v17, %v510_v16  ;;  %v578_v16 = vmul.f32 %v5041_v3, %v4836_v35  ;;  %v5065_v17 = vsel %vm597_vm5, %v4870_v49, %v4868_v48 }
 0x119   : > { %3444 = vrot.lane.b32.xlu1 %v3443_v25, %s4577_s29  ;;  %v3498_v25 = vpack.i.bf16 %v486_v20, %v485_v19  ;;  %6857 = vst [vmem:[#allocation32_spill] sm:$0xff] %v5065_v17  ;;  %v602_v19 = vmul.f32 %v4870_v49, %v4821_v30  ;;  %v603_v20 = vmul.f32 %v5065_v17, %v4824_v31 }
 0x11a   : > { %v606_v26 = vmul.f32 %v5065_v17, %v4818_v29 }
 0x11c   : > { %3464 = vrot.lane.b32.xlu0 %v3463_v32, %s4587_s19  ;;  %v5017_v32 = vsel %vm535_vm3, %v4862_v45, %v4860_v44 }
 0x11d   : > { %3449 = vrot.lane.b32.xlu1 %v3448_v39, %s4586_s2  ;;  %v541_v38 = vmul.f32 %v5017_v32, %v4821_v30  ;;  %v542_v39 = vmul.f32 %v4860_v44, %v4824_v31  ;;  %v550_v61 = vmul.f32 %v5017_v32, %v4839_v36  ;;  %v544_v0 = vmul.f32 %v5017_v32, %v4815_v28 }
 0x11f   : > { %v3528_v60 = vpack.i.bf16 %v542_v39, %v541_v38  ;;  %v608_v38 = vmul.f32 %v4870_v49, %v4833_v34  ;;  %v609_v39 = vmul.f32 %v5065_v17, %v4836_v35 }
 0x120   : > { %3474 = vrot.lane.b32.xlu0 %v3473_v59, %s4588_s26  ;;  %v517_v59 = vmul.f32 %v4856_v42, %v4836_v35 }
 0x121   : > { %3459 = vrot.lane.b32.xlu1 %v3458_v62, %s4587_s19  ;;  %v551_v62 = vmul.f32 %v4860_v44, %v4842_v37 }
 0x122   : > { %v3518_v63 = vpack.i.bf16 %v517_v59, %v516_v57  ;;  %v3573_v57 = vpack.i.bf16 %v607_v27, %v606_v26  ;;  %v633_v59 = vmul.f32 %v4874_v51, %v4821_v30  ;;  %v3390_v26 = vpop.permute.xlu1 %3389 }
 0x123   : > { %v3543_v4 = vpack.i.bf16 %v551_v62, %v550_v61  ;;  %v3578_v61 = vpack.i.bf16 %v609_v39, %v608_v38  ;;  %v612_v62 = vmul.f32 %v5065_v17, %v4842_v37  ;;  %v455_v38 = vmul.f32 %v4876_v52, %v4836_v35 }
 0x124   : > { %3479 = vrot.lane.b32.xlu0 %v3478_v2, %s4583_s11  ;;  %v545_v2 = vmul.f32 %v4860_v44, %v4818_v29 }
 0x125   : > { %3469 = vrot.lane.b32.xlu1 %v3468_v5, %s4588_s26  ;;  %v571_v5 = vmul.f32 %v4866_v47, %v4821_v30 }
 0x126   : > { %v3533_v7 = vpack.i.bf16 %v545_v2, %v544_v0  ;;  %v5105_v0 = vsel %vm442_vm7, %v4878_v53, %v4876_v52 }
 0x127   : > { %v3548_v10 = vpack.i.bf16 %v572_v6, %v571_v5  ;;  %v638_v5 = vmul.f32 %v4872_v50, %v4815_v28 }
 0x128   : > { %3489 = vrot.lane.b32.xlu0 %v3488_v8, %s4578_s22  ;;  %v547_v8 = vmul.f32 %v5017_v32, %v4833_v34 }
 0x129   : > { %3484 = vrot.lane.b32.xlu1 %v3483_v11, %s4583_s11  ;;  %v575_v11 = vmul.f32 %v5041_v3, %v4818_v29 }
 0x12a   : > { %v3538_v13 = vpack.i.bf16 %v548_v9, %v547_v8  ;;  %v449_v8 = vmul.f32 %v4876_v52, %v4824_v31 }
 0x12c   : > { %3504 = vrot.lane.b32.xlu0 %v3503_v15, %s4578_s22  ;;  %v577_v15 = vmul.f32 %v4866_v47, %v4833_v34 }
 0x12d   : > { %3494 = vrot.lane.b32.xlu1 %v3493_v18, %s4578_s22  ;;  %v3553_v18 = vpack.i.bf16 %v576_v12, %v575_v11  ;;  %v452_v11 = vmul.f32 %v4876_v52, %v4818_v29 }
 0x130   : > { %3509 = vrot.lane.b32.xlu0 %v3508_v21, %s4585_s17  ;;  %v3558_v21 = vpack.i.bf16 %v578_v16, %v577_v15  ;;  %v672_v15 = vmul.f32 %v4882_v55, %v4833_v34  ;;  %v3385_v16 = vpop.permute.xlu0 %3384 }
 0x131   : > { %3499 = vrot.lane.b32.xlu1 %v3498_v25, %s4578_s22  ;;  %v3568_v25 = vpack.i.bf16 %v603_v20, %v602_v19  ;;  %v644_v19 = vmul.f32 %v4872_v50, %v4839_v36  ;;  %v3387_v20 = vunpack.i.h.bf16 %v3385_v16 }
 0x134   : > { %3524 = vrot.lane.b32.xlu0 %v3523_v33, %s4585_s17  ;;  %v3563_v33 = vpack.i.bf16 %v582_v24, %v581_v22  ;;  %v457_v24 = vmul.f32 %v5105_v0, %v4839_v36 }
 0x135   : > { %3514 = vrot.lane.b32.xlu1 %v3513_v56, %s4585_s17  ;;  %v5089_v56 = vsel %vm628_vm6, %v4874_v51, %v4872_v50 }
 0x136   : > { %6858 = vst [vmem:[#allocation33_spill] sm:$0xff] %v5089_v56 }
 0x138   : > { %3529 = vrot.lane.b32.xlu0 %v3528_v60, %s4577_s29  ;;  %v634_v60 = vmul.f32 %v5089_v56, %v4824_v31 }
 0x139   : > { %3519 = vrot.lane.b32.xlu1 %v3518_v63, %s4585_s17  ;;  %v613_v63 = vmul.f32 %v4868_v48, %v4839_v36 }
 0x13a   : > { %v3588_v2 = vpack.i.bf16 %v634_v60, %v633_v59  ;;  %v3400_v59 = vpop.permute.xlu1 %3399 }
 0x13b   : > { %v3583_v6 = vpack.i.bf16 %v613_v63, %v612_v62  ;;  %v671_v62 = vmul.f32 %v4891_v58, %v4836_v35 }
 0x13c   : > { %3544 = vrot.lane.b32.xlu0 %v3543_v4, %s4577_s29  ;;  %v637_v4 = vmul.f32 %v5089_v56, %v4818_v29 }
 0x13d   : > { %3534 = vrot.lane.b32.xlu1 %v3533_v7, %s4577_s29  ;;  %v448_v7 = vmul.f32 %v5105_v0, %v4821_v30  ;;  %v640_v30 = vmul.f32 %v5089_v56, %v4836_v35 }
 0x13e   : > { %v3593_v9 = vpack.i.bf16 %v638_v5, %v637_v4  ;;  %v3401_v4 = vunpack.i.l.bf16 %v3400_v59  ;;  %v3392_v5 = vunpack.i.h.bf16 %v3390_v26 }
 0x13f   : > { %v3598_v12 = vpack.i.bf16 %v449_v8, %v448_v7  ;;  %v674_v8 = vmul.f32 %v4891_v58, %v4842_v37 }
 0x140   : > { %3549 = vrot.lane.b32.xlu0 %v3548_v10, %s4586_s2  ;;  %v451_v10 = vmul.f32 %v5105_v0, %v4815_v28  ;;  %v673_v28 = vmul.f32 %v4880_v54, %v4839_v36 }
 0x141   : > { %3539 = vrot.lane.b32.xlu1 %v3538_v13, %s4577_s29  ;;  %v639_v13 = vmul.f32 %v4874_v51, %v4833_v34 }
 0x142   : > { %v3603_v31 = vpack.i.bf16 %v452_v11, %v451_v10  ;;  %v3628_v22 = vpack.i.bf16 %v673_v28, %v672_v15 }
 0x143   : > { %v3608_v29 = vpack.i.bf16 %v640_v30, %v639_v13 }
 0x144   : > { %3554 = vrot.lane.b32.xlu0 %v3553_v18, %s4586_s2  ;;  %v643_v18 = vmul.f32 %v5089_v56, %v4842_v37 }
 0x145   : > { %3559 = vrot.lane.b32.xlu1 %v3558_v21, %s4586_s2  ;;  %v3386_v21 = vunpack.i.l.bf16 %v3385_v16 }
 0x146   : > { %v3613_v27 = vpack.i.bf16 %v644_v19, %v643_v18 }
 0x147   : > { %v833_v39 = vsel %vm442_vm7, %v3386_v21, %v3387_v20 }
 0x148   : > { %3569 = vrot.lane.b32.xlu0 %v3568_v25, %s4587_s19  ;;  %v458_v25 = vmul.f32 %v4876_v52, %v4842_v37  ;;  %v3643_v63 = vpack.i.bf16 %v3387_v20, %v833_v39 }
 0x149   : > { %3564 = vrot.lane.b32.xlu1 %v3563_v33, %s4586_s2  ;;  %v454_v33 = vmul.f32 %v5105_v0, %v4833_v34 }
 0x14b   : > { %v3618_v60 = vpack.i.bf16 %v455_v38, %v454_v33 }
 0x14c   : > { %3574 = vrot.lane.b32.xlu0 %v3573_v57, %s4587_s19  ;;  %v3638_v57 = vpack.i.bf16 %v458_v25, %v457_v24 }
 0x14d   : > { %3579 = vrot.lane.b32.xlu1 %v3578_v61, %s4587_s19  ;;  %v670_v61 = vmul.f32 %v4880_v54, %v4833_v34  ;;  %v3395_v34 = vpop.permute.xlu0 %3394 }
 0x14e   : > { %v3397_v11 = vunpack.i.h.bf16 %v3395_v34 }
 0x14f   : > { %v3623_v7 = vpack.i.bf16 %v671_v62, %v670_v61 }
 0x150   : > { %3589 = vrot.lane.b32.xlu0 %v3588_v2, %s4588_s26  ;;  %v3402_v2 = vunpack.i.h.bf16 %v3400_v59 }
 0x151   : > { %3584 = vrot.lane.b32.xlu1 %v3583_v6, %s4587_s19  ;;  %v3391_v6 = vunpack.i.l.bf16 %v3390_v26 }
 0x152   : > { %v836_v10 = vsel %vm442_vm7, %v3401_v4, %v3402_v2 }
 0x153   : > { %v3653_v35 = vpack.i.bf16 %v3391_v6, %v3386_v21  ;;  %v834_v13 = vsel %vm442_vm7, %v3391_v6, %v3392_v5 }
 0x154   : > { %3594 = vrot.lane.b32.xlu0 %v3593_v9, %s4588_s26  ;;  %v675_v9 = vmul.f32 %v4882_v55, %v4839_v36  ;;  %v3648_v37 = vpack.i.bf16 %v3392_v5, %v834_v13 }
 0x155   : > { %3599 = vrot.lane.b32.xlu1 %v3598_v12, %s4583_s11  ;;  %v3396_v12 = vunpack.i.l.bf16 %v3395_v34 }
 0x156   : > { %v3633_v30 = vpack.i.bf16 %v675_v9, %v674_v8 }
 0x157   : > { %v835_v36 = vsel %vm442_vm7, %v3396_v12, %v3397_v11  ;;  %v3668_v28 = vpack.i.bf16 %v3401_v4, %v3396_v12 }
 0x158   : > { %3604 = vrot.lane.b32.xlu0 %v3603_v31, %s4583_s11  ;;  %v3663_v31 = vpack.i.bf16 %v3402_v2, %v836_v10  ;;  %v3658_v15 = vpack.i.bf16 %v3397_v11, %v835_v36 }
 0x159   : > { %3609 = vrot.lane.b32.xlu1 %v3608_v29, %s4588_s26 }
 0x15c   : > { %3629 = vrot.lane.b32.xlu0 %v3628_v22, %s4584_s13 }
 0x15d   : > { %3614 = vrot.lane.b32.xlu1 %v3613_v27, %s4588_s26 }
 0x160   : > { %3639 = vrot.lane.b32.xlu0 %v3638_v57, %s4583_s11 }
 0x161   : > { %3619 = vrot.lane.b32.xlu1 %v3618_v60, %s4583_s11 }
 0x164   : > { %3644 = vrot.lane.b32.xlu0 %v3643_v63, %s4583_s11 }
 0x165   : > { %3624 = vrot.lane.b32.xlu1 %v3623_v7, %s4584_s13 }
 0x168   : > { %3654 = vrot.lane.b32.xlu0 %v3653_v35, %s4583_s11 }
 0x169   : > { %3634 = vrot.lane.b32.xlu1 %v3633_v30, %s4584_s13 }
 0x16c   : > { %3664 = vrot.lane.b32.xlu0 %v3663_v31, %s4583_s11 }
 0x16d   : > { %3649 = vrot.lane.b32.xlu1 %v3648_v37, %s4583_s11 }
 0x171   : > { %3659 = vrot.lane.b32.xlu1 %v3658_v15, %s4583_s11 }
 0x175   : > { %3669 = vrot.lane.b32.xlu1 %v3668_v28, %s4583_s11 }
 0x17a   : > { %v5170_v16 = vpop.permute.xlu0 %3404 }
 0x17b   : > { %v5172_v29 = vpop.permute.xlu1 %3409 }
 0x17e   : > { %v3420_v18 = vpop.permute.xlu0 %3419 }
 0x17f   : > { %v5174_v19 = vpop.permute.xlu1 %3414  ;;  %v3422_v23 = vunpack.i.h.bf16 %v3420_v18  ;;  %v3421_v50 = vunpack.i.l.bf16 %v3420_v18 }
 0x182   : > { %v5176_v20 = vpop.permute.xlu0 %3429 }
 0x183   : > { %v5178_v21 = vpop.permute.xlu1 %3424 }
 0x186   : > { %v5180_v22 = vpop.permute.xlu0 %3439 }
 0x187   : > { %v5182_v24 = vpop.permute.xlu1 %3434 }
 0x18a   : > { %v5184_v25 = vpop.permute.xlu0 %3454 }
 0x18b   : > { %v5186_v26 = vpop.permute.xlu1 %3444  ;;  %v6794_v53 = vunpack.i.h.bf16 %v5184_v25 }
 0x18e   : > { %v5188_v27 = vpop.permute.xlu0 %3464 }
 0x18f   : > { %v5190_v33 = vpop.permute.xlu1 %3449 }
 0x190   : > { %v6785_v12 = vunpack.i.h.bf16 %v5190_v33 }
 0x192   : > { %v5192_v38 = vpop.permute.xlu0 %3474 }
 0x193   : > { %v5194_v39 = vpop.permute.xlu1 %3459 }
 0x196   : > { %v5196_v57 = vpop.permute.xlu0 %3479 }
 0x197   : > { %v5198_v59 = vpop.permute.xlu1 %3469 }
 0x19a   : > { %v3490_v60 = vpop.permute.xlu0 %3489 }
 0x19b   : > { %v5200_v61 = vpop.permute.xlu1 %3484  ;;  %v3492_v35 = vunpack.i.h.bf16 %v3490_v60  ;;  %v3491_v10 = vunpack.i.l.bf16 %v3490_v60 }
 0x19d   : > { %v713_v15 = vsel %vm535_vm3, %v3491_v10, %v3492_v35 }
 0x19e   : > { %v5202_v62 = vpop.permute.xlu0 %3504  ;;  %v3683_v48 = vpack.i.bf16 %v3492_v35, %v713_v15 }
 0x19f   : > { %v3495_v63 = vpop.permute.xlu1 %3494  ;;  %v3507_v45 = vunpack.i.h.bf16 %v5202_v62 }
 0x1a0   : > { %v3496_v37 = vunpack.i.l.bf16 %v3495_v63  ;;  %v3497_v28 = vunpack.i.h.bf16 %v3495_v63 }
 0x1a2   : > { %v5204_v2 = vpop.permute.xlu0 %3509  ;;  %v715_v18 = vsel %vm535_vm3, %v3496_v37, %v3497_v28 }
 0x1a3   : > { %v3500_v4 = vpop.permute.xlu1 %3499  ;;  %v3688_v56 = vpack.i.bf16 %v3497_v28, %v715_v18 }
 0x1a4   : > { %v3502_v46 = vunpack.i.h.bf16 %v3500_v4  ;;  %v3501_v40 = vunpack.i.l.bf16 %v3500_v4  ;;  %v3511_v4 = vunpack.i.l.bf16 %v5204_v2 }
 0x1a6   : > { %v5206_v5 = vpop.permute.xlu0 %3524 }
 0x1a7   : > { %v5208_v6 = vpop.permute.xlu1 %3514 }
 0x1a8   : > { %v3517_v28 = vunpack.i.h.bf16 %v5208_v6 }
 0x1aa   : > { %v5210_v7 = vpop.permute.xlu0 %3529 }
 0x1ab   : > { %v5212_v8 = vpop.permute.xlu1 %3519 }
 0x1ae   : > { %v5214_v9 = vpop.permute.xlu0 %3544 }
 0x1af   : > { %v5216_v34 = vpop.permute.xlu1 %3534 }
 0x1b0   : > { %v3536_v47 = vunpack.i.l.bf16 %v5216_v34 }
 0x1b2   : > { %v5218_v11 = vpop.permute.xlu0 %3549 }
 0x1b3   : > { %v6784_v13 = vunpack.i.l.bf16 %v5218_v11  ;;  %v5222_v30 = vpop.permute.xlu1 %3539 }
 0x1b5   : > { %v3673_v31 = vpack.i.bf16 %v6785_v12, %v6784_v13  ;;  %v3506_v13 = vunpack.i.l.bf16 %v5202_v62  ;;  %v712_v62 = vsel %vm535_vm3, %v3421_v50, %v3491_v10  ;;  %v3427_v50 = vunpack.i.h.bf16 %v5178_v21 }
 0x1b6   : > { %v5228_v36 = vpop.permute.xlu0 %3554 }
 0x1b7   : > { %v5231_v60 = vpop.permute.xlu1 %3559  ;;  %3674 = vrot.lane.b32.xlu0 %v3673_v31, %s4583_s11  ;;  %v714_v31 = vsel %vm535_vm3, %v3422_v23, %v3496_v37  ;;  %v3512_v23 = vunpack.i.h.bf16 %v5204_v2  ;;  %v3426_v37 = vunpack.i.l.bf16 %v5178_v21 }
 0x1b8   : > { %v6795_v55 = vunpack.i.l.bf16 %v5231_v60  ;;  %v3693_v35 = vpack.i.bf16 %v714_v31, %v712_v62  ;;  %v3522_v62 = vunpack.i.h.bf16 %v5212_v8 }
 0x1b9   : > { %v716_v18 = vsel %vm535_vm3, %v3426_v37, %v3501_v40 }
 0x1ba   : > { %v5238_v12 = vpop.permute.xlu0 %3569  ;;  %v3678_v63 = vpack.i.bf16 %v6794_v53, %v6795_v55  ;;  %v719_v53 = vsel %vm535_vm3, %v3506_v13, %v3507_v45 }
 0x1bb   : > { %v5245_v41 = vpop.permute.xlu1 %3564  ;;  %3684 = vrot.lane.b32.xlu0 %v3683_v48, %s4583_s11  ;;  %v717_v48 = vsel %vm535_vm3, %v3501_v40, %v3502_v46  ;;  %v3703_v10 = vpack.i.bf16 %v3507_v45, %v719_v53  ;;  %v718_v45 = vsel %vm535_vm3, %v3427_v50, %v3506_v13  ;;  %v3482_v13 = vunpack.i.h.bf16 %v5196_v57 }
 0x1bc   : > { %3679 = vrot.lane.b32.xlu1 %v3678_v63, %s4583_s11  ;;  %v3516_v63 = vunpack.i.l.bf16 %v5208_v6  ;;  %v3698_v2 = vpack.i.bf16 %v3502_v46, %v717_v48  ;;  %v3708_v53 = vpack.i.bf16 %v718_v45, %v716_v18  ;;  %v3432_v6 = vunpack.i.h.bf16 %v5176_v20 }
 0x1bd   : > { %v3526_v50 = vunpack.i.l.bf16 %v5206_v5  ;;  %v3527_v45 = vunpack.i.h.bf16 %v5206_v5  ;;  %v3531_v5 = vunpack.i.l.bf16 %v5210_v7 }
 0x1be   : > { %v5251_v15 = vpop.permute.xlu0 %3574  ;;  %v760_v40 = vsel %vm756_vm8, %v3516_v63, %v3517_v28  ;;  %v759_v49 = vsel %vm756_vm8, %v3432_v6, %v3516_v63 }
 0x1bf   : > { %v5256_v55 = vpop.permute.xlu1 %3579  ;;  %3694 = vrot.lane.b32.xlu0 %v3693_v35, %s4583_s11  ;;  %v3521_v35 = vunpack.i.l.bf16 %v5212_v8  ;;  %v3431_v8 = vunpack.i.l.bf16 %v5176_v20  ;;  %v3718_v20 = vpack.i.bf16 %v3517_v28, %v760_v40 }
 0x1c0   : > { %3689 = vrot.lane.b32.xlu1 %v3688_v56, %s4583_s11  ;;  %v758_v56 = vsel %vm756_vm8, %v3511_v4, %v3512_v23 }
 0x1c1   : > { %v3713_v46 = vpack.i.bf16 %v3512_v23, %v758_v56  ;;  %v762_v37 = vsel %vm756_vm8, %v3521_v35, %v3522_v62  ;;  %v3481_v23 = vunpack.i.l.bf16 %v5196_v57  ;;  %v3532_v57 = vunpack.i.h.bf16 %v5210_v7 }
 0x1c2   : > { %v5265_v31 = vpop.permute.xlu0 %3589  ;;  %v3728_v17 = vpack.i.bf16 %v3522_v62, %v762_v37  ;;  %v757_v28 = vsel %vm756_vm8, %v3431_v8, %v3511_v4  ;;  %v764_v7 = vsel %vm756_vm8, %v3526_v50, %v3527_v45  ;;  %v3541_v4 = vunpack.i.l.bf16 %v5222_v30 }
 0x1c3   : > { %v5270_v51 = vpop.permute.xlu1 %3584  ;;  %3704 = vrot.lane.b32.xlu0 %v3703_v10, %s4583_s11  ;;  %v3437_v10 = vunpack.i.h.bf16 %v5182_v24  ;;  %v3723_v62 = vpack.i.bf16 %v759_v49, %v757_v28 }
 0x1c4   : > { %3699 = vrot.lane.b32.xlu1 %v3698_v2, %s4583_s11  ;;  %v3436_v2 = vunpack.i.l.bf16 %v5182_v24  ;;  %v3537_v24 = vunpack.i.h.bf16 %v5216_v34 }
 0x1c5   : > { %v763_v63 = vsel %vm756_vm8, %v3437_v10, %v3526_v50  ;;  %v3442_v10 = vunpack.i.h.bf16 %v5180_v22 }
 0x1c6   : > { %v5276_v21 = vpop.permute.xlu0 %3594  ;;  %v761_v3 = vsel %vm756_vm8, %v3436_v2, %v3521_v35 }
 0x1c7   : > { %v3600_v48 = vpop.permute.xlu1 %3599  ;;  %3709 = vrot.lane.b32.xlu0 %v3708_v53, %s4583_s11  ;;  %v3738_v37 = vpack.i.bf16 %v763_v63, %v761_v3  ;;  %v802_v3 = vsel %vm473_vm1, %v3531_v5, %v3532_v57 }
 0x1c8   : > { %3714 = vrot.lane.b32.xlu1 %v3713_v46, %s4583_s11  ;;  %v3602_v18 = vunpack.i.h.bf16 %v3600_v48  ;;  %v3601_v56 = vunpack.i.l.bf16 %v3600_v48 }
 0x1ca   : > { %v3605_v53 = vpop.permute.xlu0 %3604  ;;  %v1246_v35 = vsel %vm659_vm0, %v3601_v56, %v3602_v18  ;;  %v1245_v2 = vsel %vm659_vm0, %v3481_v23, %v3601_v56  ;;  %v3487_v18 = vunpack.i.h.bf16 %v5200_v61 }
 0x1cb   : > { %v3607_v58 = vunpack.i.h.bf16 %v3605_v53  ;;  %v3606_v54 = vunpack.i.l.bf16 %v3605_v53  ;;  %v5294_v46 = vpop.permute.xlu1 %3609  ;;  %3719 = vrot.lane.b32.xlu0 %v3718_v20, %s4583_s11 }
 0x1cc   : > { %3729 = vrot.lane.b32.xlu1 %v3728_v17, %s4583_s11  ;;  %v3542_v17 = vunpack.i.h.bf16 %v5222_v30  ;;  %v3446_v30 = vunpack.i.l.bf16 %v5186_v26 }
 0x1cd   : > { %v1248_v34 = vsel %vm659_vm0, %v3606_v54, %v3607_v58  ;;  %v1247_v40 = vsel %vm659_vm0, %v3482_v13, %v3606_v54  ;;  %v804_v58 = vsel %vm473_vm1, %v3536_v47, %v3537_v24  ;;  %v3733_v54 = vpack.i.bf16 %v3527_v45, %v764_v7 }
 0x1ce   : > { %v5305_v6 = vpop.permute.xlu0 %3629  ;;  %v3125_v48 = vpack.c.bf16 %v1248_v34, %v1246_v35  ;;  %v3127_v49 = vpack.c.bf16 %v1247_v40, %v1245_v2  ;;  %v3441_v13 = vunpack.i.l.bf16 %v5180_v22  ;;  %v3748_v23 = vpack.i.bf16 %v3537_v24, %v804_v58 }
 0x1cf   : > { %v5311_v8 = vpop.permute.xlu1 %3614  ;;  %3724 = vrot.lane.b32.xlu0 %v3723_v62, %s4583_s11  ;;  %v806_v28 = vsel %vm473_vm1, %v3541_v4, %v3542_v17  ;;  %v3486_v45 = vunpack.i.l.bf16 %v5200_v61  ;;  %v3743_v22 = vpack.i.bf16 %v3532_v57, %v802_v3  ;;  %v3547_v35 = vunpack.i.h.bf16 %v5214_v9 }
 0x1d0   : > { %3126 = vmatprep.subr.bf16.mxu0 %v3125_v48  ;;  %3739 = vrot.lane.b32.xlu1 %v3738_v37, %s4583_s11  ;;  %v3546_v24 = vunpack.i.l.bf16 %v5214_v9  ;;  %v3758_v48 = vpack.i.bf16 %v3542_v17, %v806_v28  ;;  %v803_v61 = vsel %vm473_vm1, %v3442_v10, %v3536_v47  ;;  %v3447_v7 = vunpack.i.h.bf16 %v5186_v26 }
 0x1d1   : > { %3128 = vmatpush1.bf16.msra.mxu0 %v3127_v49  ;;  %v805_v58 = vsel %vm473_vm1, %v3446_v30, %v3541_v4  ;;  %v801_v9 = vsel %vm473_vm1, %v3441_v13, %v3531_v5  ;;  %v3581_v3 = vunpack.i.l.bf16 %v5256_v55  ;;  %v3557_v10 = vunpack.i.h.bf16 %v5228_v36 }
 0x1d2   : > { %v3640_v50 = vpop.permute.xlu0 %3639  ;;  %v3753_v17 = vpack.i.bf16 %v803_v61, %v801_v9  ;;  %v808_v26 = vsel %vm473_vm1, %v3546_v24, %v3547_v35  ;;  %v3467_v4 = vunpack.i.h.bf16 %v5188_v27  ;;  %v3571_v5 = vunpack.i.l.bf16 %v5238_v12 }
 0x1d3   : > { %v3642_v56 = vunpack.i.h.bf16 %v3640_v50  ;;  %v3641_v20 = vunpack.i.l.bf16 %v3640_v50  ;;  %v3620_v53 = vpop.permute.xlu1 %3619  ;;  %3734 = vrot.lane.b32.xlu0 %v3733_v54, %s4583_s11  ;;  %v807_v54 = vsel %vm473_vm1, %v3447_v7, %v3546_v24  ;;  %v3556_v50 = vunpack.i.l.bf16 %v5228_v36 }
 0x1d4   : > { %v3622_v63 = vunpack.i.h.bf16 %v3620_v53  ;;  %v3621_v62 = vunpack.i.l.bf16 %v3620_v53  ;;  %3749 = vrot.lane.b32.xlu1 %v3748_v23, %s4583_s11  ;;  %v3773_v47 = vpack.i.bf16 %v807_v54, %v805_v58  ;;  %v3763_v13 = vpack.i.bf16 %v3547_v35, %v808_v26 }
 0x1d5   : > { %v1252_v34 = vsel %vm659_vm0, %v3641_v20, %v3642_v56  ;;  %v1251_v40 = vsel %vm659_vm0, %v3487_v18, %v3641_v20  ;;  %v3778_v30 = vpack.i.bf16 %v3467_v4, %v3581_v3  ;;  %v3462_v23 = vunpack.i.h.bf16 %v5194_v39 }
 0x1d6   : > { %v1250_v37 = vsel %vm659_vm0, %v3621_v62, %v3622_v63  ;;  %v1249_v2 = vsel %vm659_vm0, %v3486_v45, %v3621_v62  ;;  %v3562_v18 = vunpack.i.h.bf16 %v5231_v60  ;;  %v6859_v36 = vunpack.i.h.bf16 %v5190_v33 }
 0x1d7   : > { %3744 = vrot.lane.b32.xlu0 %v3743_v22, %s4583_s11  ;;  %v3129_v57 = vpack.c.bf16 %v1252_v34, %v1250_v37  ;;  %v3131_v49 = vpack.c.bf16 %v1251_v40, %v1249_v2  ;;  %v877_v20 = vsel %vm873_vm9, %v3556_v50, %v3557_v10  ;;  %v3456_v53 = vunpack.i.l.bf16 %v5184_v25 }
 0x1d8   : > { %3759 = vrot.lane.b32.xlu1 %v3758_v48, %s4583_s11  ;;  %v876_v56 = vsel %vm873_vm9, %v6859_v36, %v3556_v50  ;;  %v3552_v28 = vunpack.i.h.bf16 %v5218_v11  ;;  %v3591_v45 = vunpack.i.l.bf16 %v5265_v31  ;;  %v3768_v63 = vpack.i.bf16 %v3462_v23, %v3571_v5 }
 0x1d9   : > { %3130 = vmatprep.subr.bf16.mxu0 %v3129_v57  ;;  %v3451_v62 = vunpack.i.l.bf16 %v5190_v33  ;;  %v3472_v22 = vunpack.i.h.bf16 %v5198_v59  ;;  %v3793_v35 = vpack.i.bf16 %v877_v20, %v876_v56  ;;  %v6860_v24 = vunpack.i.l.bf16 %v5231_v60 }
 0x1da   : > { %3132 = vmatpush1.bf16.msra.mxu0 %v3131_v49  ;;  %v879_v40 = vsel %vm873_vm9, %v3562_v18, %v3456_v53  ;;  %v3577_v48 = vunpack.i.h.bf16 %v5251_v15  ;;  %v3576_v37 = vunpack.i.l.bf16 %v5251_v15  ;;  %v6861_v60 = vunpack.i.l.bf16 %v5218_v11 }
 0x1db   : > { %3754 = vrot.lane.b32.xlu0 %v3753_v17, %s4583_s11  ;;  %v878_v34 = vsel %vm873_vm9, %v6860_v24, %v3562_v18  ;;  %v875_v2 = vsel %vm873_vm9, %v3552_v28, %v3451_v62  ;;  %v3783_v33 = vpack.i.bf16 %v3472_v22, %v3591_v45  ;;  %v3567_v7 = vunpack.i.h.bf16 %v5245_v41 }
 0x1dc   : > { %3774 = vrot.lane.b32.xlu1 %v3773_v47, %s4583_s11  ;;  %v874_v61 = vsel %vm873_vm9, %v6861_v60, %v3552_v28  ;;  %v3566_v57 = vunpack.i.l.bf16 %v5245_v41  ;;  %v3798_v49 = vpack.i.bf16 %v879_v40, %v878_v34  ;;  %v921_v15 = vsel %vm918_vm10, %v3462_v23, %v3576_v37  ;;  %v3625_v60 = vpop.permute.xlu1 %3624 }
 0x1dd   : > { %v922_v58 = vsel %vm918_vm10, %v3576_v37, %v3577_v48  ;;  %v3582_v9 = vunpack.i.h.bf16 %v5256_v55  ;;  %v3466_v17 = vunpack.i.l.bf16 %v5188_v27  ;;  %v3572_v11 = vunpack.i.h.bf16 %v5238_v12 }
 0x1de   : > { %v3788_v54 = vpack.i.bf16 %v875_v2, %v874_v61  ;;  %v3461_v47 = vunpack.i.l.bf16 %v5194_v39  ;;  %v6862_v41 = vunpack.i.h.bf16 %v5184_v25  ;;  %v881_v10 = vsel %vm873_vm9, %v3566_v57, %v3567_v7 }
 0x1df   : > { %3764 = vrot.lane.b32.xlu0 %v3763_v13, %s4583_s11  ;;  %v3813_v50 = vpack.i.bf16 %v922_v58, %v921_v15  ;;  %v923_v55 = vsel %vm918_vm10, %v3581_v3, %v3582_v9  ;;  %v924_v13 = vsel %vm918_vm10, %v3582_v9, %v3466_v17  ;;  %v3596_v23 = vunpack.i.l.bf16 %v5276_v21 }
 0x1e0   : > { %3779 = vrot.lane.b32.xlu1 %v3778_v30, %s4583_s11  ;;  %v880_v26 = vsel %vm873_vm9, %v6862_v41, %v3566_v57  ;;  %v3597_v30 = vunpack.i.h.bf16 %v5276_v21  ;;  %v920_v39 = vsel %vm918_vm10, %v3572_v11, %v3461_v47  ;;  %v919_v12 = vsel %vm918_vm10, %v3571_v5, %v3572_v11 }
 0x1e1   : > { %v3803_v25 = vpack.i.bf16 %v881_v10, %v880_v26  ;;  %v3587_v18 = vunpack.i.h.bf16 %v5270_v51  ;;  %v3586_v3 = vunpack.i.l.bf16 %v5270_v51  ;;  %v3818_v36 = vpack.i.bf16 %v924_v13, %v923_v55  ;;  %v3635_v10 = vpop.permute.xlu1 %3634 }
 0x1e2   : > { %v966_v56 = vsel %vm963_vm11, %v3472_v22, %v3596_v23  ;;  %v967_v20 = vsel %vm963_vm11, %v3596_v23, %v3597_v30  ;;  %v3612_v21 = vunpack.i.h.bf16 %v5294_v46  ;;  %v3611_v53 = vunpack.i.l.bf16 %v5294_v46 }
 0x1e3   : > { %3769 = vrot.lane.b32.xlu0 %v3768_v63, %s4583_s11  ;;  %v3476_v28 = vunpack.i.l.bf16 %v5192_v38  ;;  %v3592_v5 = vunpack.i.h.bf16 %v5265_v31  ;;  %v3808_v63 = vpack.i.bf16 %v920_v39, %v919_v12  ;;  %v925_v51 = vsel %vm918_vm10, %v3467_v4, %v3586_v3 }
 0x1e4   : > { %3794 = vrot.lane.b32.xlu1 %v3793_v35, %s4583_s11  ;;  %v926_v62 = vsel %vm918_vm10, %v3586_v3, %v3587_v18  ;;  %v3833_v22 = vpack.i.bf16 %v967_v20, %v966_v56  ;;  %v3471_v35 = vunpack.i.l.bf16 %v5198_v59  ;;  %v968_v46 = vsel %vm963_vm11, %v3611_v53, %v3612_v21 }
 0x1e5   : > { %v969_v24 = vsel %vm963_vm11, %v3612_v21, %v3476_v28  ;;  %v3823_v40 = vpack.i.bf16 %v926_v62, %v925_v51  ;;  %v964_v27 = vsel %vm963_vm11, %v3591_v45, %v3592_v5  ;;  %v3617_v4 = vunpack.i.h.bf16 %v5311_v8  ;;  %v5454_v56 = vpop.permute.xlu1 %3649 }
 0x1e6   : > { %v965_v34 = vsel %vm963_vm11, %v3592_v5, %v3471_v35  ;;  %v3616_v48 = vunpack.i.l.bf16 %v5311_v8  ;;  %v3838_v59 = vpack.i.bf16 %v969_v24, %v968_v46  ;;  %v3417_v37 = vunpack.i.h.bf16 %v5174_v19 }
 0x1e7   : > { %3784 = vrot.lane.b32.xlu0 %v3783_v33, %s4583_s11  ;;  %v3416_v2 = vunpack.i.l.bf16 %v5174_v19  ;;  %v3477_v33 = vunpack.i.h.bf16 %v5192_v38  ;;  %v3407_v31 = vunpack.i.h.bf16 %v5170_v16  ;;  %v3406_v45 = vunpack.i.l.bf16 %v5170_v16  ;;  %v417_v16 = vld [vmem:[#allocation6 + $0x8] sm:$0xff] }
 0x1e8   : > { %3799 = vrot.lane.b32.xlu1 %v3798_v49, %s4583_s11  ;;  %v3412_v61 = vunpack.i.h.bf16 %v5172_v29  ;;  %v3828_v8 = vpack.i.bf16 %v965_v34, %v964_v27  ;;  %v3411_v7 = vunpack.i.l.bf16 %v5172_v29  ;;  %v971_v49 = vsel %vm963_vm11, %v3616_v48, %v3617_v4  ;;  %1466 = vmatprep.mubr.f32.mxu0 %v417_v16 }
 0x1e9   : > { %v3848_v57 = vpack.i.bf16 %v3477_v33, %v3611_v53  ;;  %v970_v19 = vsel %vm963_vm11, %v3477_v33, %v3616_v48  ;;  %v1011_v15 = vsel %vm1008_vm12, %v3407_v31, %v3416_v2  ;;  %v1012_v38 = vsel %vm1008_vm12, %v3416_v2, %v3417_v37  ;;  %v5458_v20 = vpop.permute.xlu1 %3659 }
 0x1ea   : > { %v3627_v58 = vunpack.i.h.bf16 %v3625_v60  ;;  %v3626_v9 = vunpack.i.l.bf16 %v3625_v60  ;;  %v3631_v17 = vunpack.i.l.bf16 %v5305_v6  ;;  %v3843_v11 = vpack.i.bf16 %v971_v49, %v970_v19 }
 0x1eb   : > { %3789 = vrot.lane.b32.xlu0 %v3788_v54, %s4583_s11  ;;  %v1009_v29 = vsel %vm1008_vm12, %v3411_v7, %v3412_v61  ;;  %v1010_v54 = vsel %vm1008_vm12, %v3412_v61, %v3406_v45  ;;  %v3858_v47 = vpack.i.bf16 %v1012_v38, %v1011_v15  ;;  %v3637_v55 = vunpack.i.h.bf16 %v3635_v10 }
 0x1ec   : > { %3814 = vrot.lane.b32.xlu1 %v3813_v50, %s4583_s11  ;;  %v1013_v41 = vsel %vm1008_vm12, %v3626_v9, %v3627_v58  ;;  %v1014_v26 = vsel %vm1008_vm12, %v3627_v58, %v3631_v17  ;;  %v3853_v50 = vpack.i.bf16 %v1010_v54, %v1009_v29  ;;  %v3636_v13 = vunpack.i.l.bf16 %v3635_v10 }
 0x1ed   : > { %v3868_v30 = vpack.i.bf16 %v1014_v26, %v1013_v41  ;;  %v3632_v23 = vunpack.i.h.bf16 %v5305_v6  ;;  %v3863_v39 = vpack.i.bf16 %v3407_v31, %v3411_v7  ;;  %v5464_v28 = vpop.permute.xlu1 %3669 }
 0x1ee   : > { %v1016_v18 = vsel %vm1008_vm12, %v3636_v13, %v3637_v55 }
 0x1ef   : > { %3804 = vrot.lane.b32.xlu0 %v3803_v25, %s4583_s11  ;;  %v3878_v25 = vpack.i.bf16 %v3632_v23, %v3626_v9  ;;  %v1015_v12 = vsel %vm1008_vm12, %v3632_v23, %v3636_v13 }
 0x1f0   : > { %3819 = vrot.lane.b32.xlu1 %v3818_v36, %s4583_s11  ;;  %v3873_v3 = vpack.i.bf16 %v1016_v18, %v1015_v12  ;;  %v5452_v36 = vpop.permute.xlu0 %3644 }
 0x1f3   : > { %3809 = vrot.lane.b32.xlu0 %v3808_v63, %s4583_s11 }
 0x1f4   : > { %3834 = vrot.lane.b32.xlu1 %v3833_v22, %s4583_s11  ;;  %v5456_v6 = vpop.permute.xlu0 %3654 }
 0x1f7   : > { %3824 = vrot.lane.b32.xlu0 %v3823_v40, %s4583_s11 }
 0x1f8   : > { %3839 = vrot.lane.b32.xlu1 %v3838_v59, %s4583_s11  ;;  %v5460_v21 = vpop.permute.xlu0 %3664 }
 0x1fb   : > { %3829 = vrot.lane.b32.xlu0 %v3828_v8, %s4583_s11 }
 0x1fc   : > { %3849 = vrot.lane.b32.xlu1 %v3848_v57, %s4583_s11 }
 0x1ff   : > { %3844 = vrot.lane.b32.xlu0 %v3843_v11, %s4583_s11 }
 0x200   : > { %3859 = vrot.lane.b32.xlu1 %v3858_v47, %s4583_s11 }
 0x203   : > { %3854 = vrot.lane.b32.xlu0 %v3853_v50, %s4583_s11 }
 0x204   : > { %3869 = vrot.lane.b32.xlu1 %v3868_v30, %s4583_s11 }
 0x207   : > { %3864 = vrot.lane.b32.xlu0 %v3863_v39, %s4583_s11 }
 0x208   : > { %3879 = vrot.lane.b32.xlu1 %v3878_v25, %s4583_s11 }
 0x20b   : > { %3874 = vrot.lane.b32.xlu0 %v3873_v3, %s4583_s11 }
 0x229   : > { %v5462_v53 = vpop.permute.xlu0 %3674 }
 0x22d   : > { %v3685_v5 = vpop.permute.xlu0 %3684 }
 0x22e   : > { %v5466_v63 = vpop.permute.xlu1 %3679  ;;  %v3687_v51 = vunpack.i.h.bf16 %v3685_v5  ;;  %v3686_v62 = vunpack.i.l.bf16 %v3685_v5 }
 0x230   : > { %v1254_v48 = vsel %vm659_vm0, %v3686_v62, %v3687_v51 }
 0x231   : > { %v3695_v22 = vpop.permute.xlu0 %3694 }
 0x232   : > { %v3697_v35 = vunpack.i.h.bf16 %v3695_v22  ;;  %v3696_v46 = vunpack.i.l.bf16 %v3695_v22  ;;  %v3690_v24 = vpop.permute.xlu1 %3689 }
 0x233   : > { %v3692_v34 = vunpack.i.h.bf16 %v3690_v24  ;;  %v3691_v40 = vunpack.i.l.bf16 %v3690_v24 }
 0x234   : > { %v1253_v27 = vsel %vm659_vm0, %v3696_v46, %v3686_v62 }
 0x235   : > { %v3705_v4 = vpop.permute.xlu0 %3704  ;;  %v1256_v59 = vsel %vm659_vm0, %v3691_v40, %v3692_v34  ;;  %v1255_v37 = vsel %vm659_vm0, %v3697_v35, %v3691_v40 }
 0x236   : > { %v3707_v2 = vunpack.i.h.bf16 %v3705_v4  ;;  %v3706_v33 = vunpack.i.l.bf16 %v3705_v4  ;;  %v3700_v60 = vpop.permute.xlu1 %3699  ;;  %v3133_v31 = vpack.c.bf16 %v1256_v59, %v1254_v48  ;;  %v3135_v45 = vpack.c.bf16 %v1255_v37, %v1253_v27 }
 0x237   : > { %v3702_v61 = vunpack.i.h.bf16 %v3700_v60  ;;  %v3701_v8 = vunpack.i.l.bf16 %v3700_v60 }
 0x238   : > { %3134 = vmatprep.subr.bf16.mxu0 %v3133_v31  ;;  %v1260_v7 = vsel %vm659_vm0, %v3706_v33, %v3707_v2 }
 0x239   : > { %v3710_v57 = vpop.permute.xlu0 %3709  ;;  %3136 = vmatpush1.bf16.msra.mxu0 %v3135_v45  ;;  %v1258_v19 = vsel %vm659_vm0, %v3701_v8, %v3702_v61 }
 0x23a   : > { %v3712_v49 = vunpack.i.h.bf16 %v3710_v57  ;;  %v3711_v15 = vunpack.i.l.bf16 %v3710_v57  ;;  %v3715_v38 = vpop.permute.xlu1 %3714  ;;  %v3137_v58 = vpack.c.bf16 %v1260_v7, %v1258_v19  ;;  %v3647_v7 = vunpack.i.h.bf16 %v5452_v36 }
 0x23b   : > { %v3717_v9 = vunpack.i.h.bf16 %v3715_v38  ;;  %v3716_v16 = vunpack.i.l.bf16 %v3715_v38  ;;  %v3646_v57 = vunpack.i.l.bf16 %v5452_v36  ;;  %v3656_v36 = vunpack.i.l.bf16 %v5456_v6 }
 0x23c   : > { %3138 = vmatprep.subr.bf16.mxu0 %v3137_v58  ;;  %v1257_v17 = vsel %vm659_vm0, %v3711_v15, %v3701_v8  ;;  %v1259_v11 = vsel %vm659_vm0, %v3712_v49, %v3706_v33 }
 0x23d   : > { %v3720_v29 = vpop.permute.xlu0 %3719  ;;  %v3139_v54 = vpack.c.bf16 %v1259_v11, %v1257_v17  ;;  %v1262_v10 = vsel %vm659_vm0, %v3716_v16, %v3717_v9  ;;  %v3652_v9 = vunpack.i.h.bf16 %v5454_v56 }
 0x23e   : > { %v3722_v47 = vunpack.i.h.bf16 %v3720_v29  ;;  %v3721_v41 = vunpack.i.l.bf16 %v3720_v29  ;;  %v3730_v26 = vpop.permute.xlu1 %3729 }
 0x23f   : > { %3140 = vmatpush1.bf16.msra.mxu0 %v3139_v54  ;;  %v3732_v25 = vunpack.i.h.bf16 %v3730_v26  ;;  %v3731_v12 = vunpack.i.l.bf16 %v3730_v26 }
 0x240   : > { %v1264_v50 = vsel %vm659_vm0, %v3721_v41, %v3722_v47 }
 0x241   : > { %v3725_v55 = vpop.permute.xlu0 %3724  ;;  %v3141_v13 = vpack.c.bf16 %v1264_v50, %v1262_v10  ;;  %v1266_v34 = vsel %vm659_vm0, %v3731_v12, %v3732_v25  ;;  %v1278_v50 = vsel %vm659_vm0, %v3646_v57, %v3647_v7  ;;  %v3661_v25 = vunpack.i.l.bf16 %v5458_v20 }
 0x242   : > { %v3727_v30 = vunpack.i.h.bf16 %v3725_v55  ;;  %v3726_v23 = vunpack.i.l.bf16 %v3725_v55  ;;  %v3740_v39 = vpop.permute.xlu1 %3739  ;;  %v3667_v55 = vunpack.i.h.bf16 %v5460_v21  ;;  %v3676_v7 = vunpack.i.l.bf16 %v5462_v53 }
 0x243   : > { %v3741_v18 = vunpack.i.l.bf16 %v3740_v39  ;;  %3142 = vmatprep.subr.bf16.mxu0 %v3141_v13  ;;  %v3742_v22 = vunpack.i.h.bf16 %v3740_v39  ;;  %v3662_v39 = vunpack.i.h.bf16 %v5458_v20  ;;  %v3671_v20 = vunpack.i.l.bf16 %v5464_v28 }
 0x244   : > { %v1261_v3 = vsel %vm659_vm0, %v3726_v23, %v3716_v16  ;;  %v1263_v5 = vsel %vm659_vm0, %v3727_v30, %v3721_v41  ;;  %v3651_v16 = vunpack.i.l.bf16 %v5454_v56  ;;  %v3657_v41 = vunpack.i.h.bf16 %v5456_v6 }
 0x245   : > { %v3735_v51 = vpop.permute.xlu0 %3734  ;;  %v3143_v62 = vpack.c.bf16 %v1263_v5, %v1261_v3  ;;  %v1265_v40 = vsel %vm659_vm0, %v3741_v18, %v3731_v12  ;;  %v3666_v12 = vunpack.i.l.bf16 %v5460_v21 }
 0x246   : > { %v3737_v35 = vunpack.i.h.bf16 %v3735_v51  ;;  %v3736_v46 = vunpack.i.l.bf16 %v3735_v51  ;;  %v3750_v24 = vpop.permute.xlu1 %3749  ;;  %v1280_v6 = vsel %vm659_vm0, %v3651_v16, %v3652_v9 }
 0x247   : > { %3144 = vmatpush1.bf16.msra.mxu0 %v3143_v62  ;;  %v3752_v27 = vunpack.i.h.bf16 %v3750_v24  ;;  %v3751_v4 = vunpack.i.l.bf16 %v3750_v24  ;;  %v3157_v24 = vpack.c.bf16 %v1280_v6, %v1278_v50 }
 0x248   : > { %v1268_v48 = vsel %vm659_vm0, %v3736_v46, %v3737_v35  ;;  %v1267_v59 = vsel %vm659_vm0, %v3742_v22, %v3736_v46  ;;  %v3672_v46 = vunpack.i.h.bf16 %v5464_v28 }
 0x249   : > { %v3745_v37 = vpop.permute.xlu0 %3744  ;;  %v3145_v2 = vpack.c.bf16 %v1268_v48, %v1266_v34  ;;  %v3147_v33 = vpack.c.bf16 %v1267_v59, %v1265_v40  ;;  %v1272_v8 = vsel %vm659_vm0, %v3751_v4, %v3752_v27  ;;  %v1277_v34 = vsel %vm659_vm0, %v3656_v36, %v3646_v57 }
 0x24a   : > { %v3747_v60 = vunpack.i.h.bf16 %v3745_v37  ;;  %v3746_v31 = vunpack.i.l.bf16 %v3745_v37  ;;  %v3760_v45 = vpop.permute.xlu1 %3759  ;;  %v1279_v40 = vsel %vm659_vm0, %v3657_v41, %v3651_v16  ;;  %v1282_v27 = vsel %vm659_vm0, %v3661_v25, %v3662_v39 }
 0x24b   : > { %3146 = vmatprep.subr.bf16.mxu0 %v3145_v2  ;;  %v3762_v17 = vunpack.i.h.bf16 %v3760_v45  ;;  %v3761_v11 = vunpack.i.l.bf16 %v3760_v45  ;;  %v3159_v37 = vpack.c.bf16 %v1279_v40, %v1277_v34  ;;  %v1281_v2 = vsel %vm659_vm0, %v3671_v20, %v3661_v25 }
 0x24c   : > { %3148 = vmatpush1.bf16.msra.mxu0 %v3147_v33  ;;  %v1270_v61 = vsel %vm659_vm0, %v3746_v31, %v3747_v60  ;;  %v1283_v28 = vsel %vm659_vm0, %v3672_v46, %v3666_v12 }
 0x24d   : > { %v3755_v19 = vpop.permute.xlu0 %3754  ;;  %v3149_v49 = vpack.c.bf16 %v1272_v8, %v1270_v61  ;;  %v1274_v18 = vsel %vm659_vm0, %v3761_v11, %v3762_v17  ;;  %v3163_v61 = vpack.c.bf16 %v1283_v28, %v1281_v2  ;;  %v3677_v8 = vunpack.i.h.bf16 %v5462_v53 }
 0x24e   : > { %v3757_v15 = vunpack.i.h.bf16 %v3755_v19  ;;  %v3756_v38 = vunpack.i.l.bf16 %v3755_v19  ;;  %v3775_v58 = vpop.permute.xlu1 %3774  ;;  %v3682_v53 = vunpack.i.h.bf16 %v5466_v63 }
 0x24f   : > { %3150 = vmatprep.subr.bf16.mxu0 %v3149_v49  ;;  %v3776_v29 = vunpack.i.l.bf16 %v3775_v58  ;;  %v3777_v13 = vunpack.i.h.bf16 %v3775_v58 }
 0x250   : > { %v1269_v54 = vsel %vm659_vm0, %v3756_v38, %v3746_v31  ;;  %v1271_v47 = vsel %vm659_vm0, %v3757_v15, %v3751_v4  ;;  %v1284_v4 = vsel %vm659_vm0, %v3666_v12, %v3667_v55 }
 0x251   : > { %v3765_v26 = vpop.permute.xlu0 %3764  ;;  %v3151_v10 = vpack.c.bf16 %v1271_v47, %v1269_v54  ;;  %v1273_v5 = vsel %vm659_vm0, %v3776_v29, %v3761_v11  ;;  %v3161_v33 = vpack.c.bf16 %v1284_v4, %v1282_v27  ;;  %v3681_v11 = vunpack.i.l.bf16 %v5466_v63 }
 0x252   : > { %v3767_v56 = vunpack.i.h.bf16 %v3765_v26  ;;  %v3766_v30 = vunpack.i.l.bf16 %v3765_v26  ;;  %v5496_v23 = vpop.permute.xlu1 %3779 }
 0x253   : > { %3152 = vmatpush1.bf16.msra.mxu0 %v3151_v10  ;;  %v3782_v27 = vunpack.i.h.bf16 %v5496_v23 }
 0x254   : > { %v1276_v3 = vsel %vm659_vm0, %v3766_v30, %v3767_v56  ;;  %v1275_v51 = vsel %vm659_vm0, %v3777_v13, %v3766_v30 }
 0x255   : > { %v5506_v62 = vpop.permute.xlu0 %3769  ;;  %v3153_v22 = vpack.c.bf16 %v1276_v3, %v1274_v18  ;;  %v3155_v35 = vpack.c.bf16 %v1275_v51, %v1273_v5 }
 0x256   : > { %v3795_v21 = vpop.permute.xlu1 %3794  ;;  %v3772_v63 = vunpack.i.h.bf16 %v5506_v62  ;;  %v3771_v6 = vunpack.i.l.bf16 %v5506_v62 }
 0x257   : > { %3154 = vmatprep.subr.bf16.mxu0 %v3153_v22  ;;  %v3797_v60 = vunpack.i.h.bf16 %v3795_v21  ;;  %v3796_v31 = vunpack.i.l.bf16 %v3795_v21 }
 0x258   : > { %3156 = vmatpush1.bf16.msra.mxu0 %v3155_v35 }
 0x259   : > { %v5514_v48 = vpop.permute.xlu0 %3784  ;;  %3158 = vmatprep.subr.bf16.mxu0 %v3157_v24  ;;  %v1288_v9 = vsel %vm659_vm0, %v3796_v31, %v3797_v60  ;;  %v1287_v17 = vsel %vm659_vm0, %v3677_v8, %v3796_v31  ;;  %v3781_v24 = vunpack.i.l.bf16 %v5496_v23 }
 0x25a   : > { %v3800_v59 = vpop.permute.xlu1 %3799  ;;  %v3787_v23 = vunpack.i.h.bf16 %v5514_v48 }
 0x25b   : > { %v3802_v15 = vunpack.i.h.bf16 %v3800_v59  ;;  %v3801_v38 = vunpack.i.l.bf16 %v3800_v59 }
 0x25c   : > { %3160 = vmatpush1.bf16.msra.mxu0 %v3159_v37 }
 0x25d   : > { %v3790_v45 = vpop.permute.xlu0 %3789  ;;  %3162 = vmatprep.subr.bf16.mxu0 %v3161_v33  ;;  %v1290_v10 = vsel %vm659_vm0, %v3801_v38, %v3802_v15  ;;  %v1289_v50 = vsel %vm659_vm0, %v3681_v11, %v3801_v38 }
 0x25e   : > { %v3792_v57 = vunpack.i.h.bf16 %v3790_v45  ;;  %v3791_v19 = vunpack.i.l.bf16 %v3790_v45  ;;  %v3815_v49 = vpop.permute.xlu1 %3814 }
 0x25f   : > { %v3817_v55 = vunpack.i.h.bf16 %v3815_v49  ;;  %v3816_v13 = vunpack.i.l.bf16 %v3815_v49 }
 0x260   : > { %3164 = vmatpush1.bf16.msra.mxu0 %v3163_v61  ;;  %v1286_v58 = vsel %vm659_vm0, %v3791_v19, %v3792_v57  ;;  %v1285_v16 = vsel %vm659_vm0, %v3676_v7, %v3791_v19  ;;  %v3786_v57 = vunpack.i.l.bf16 %v5514_v48 }
 0x261   : > { %v3805_v29 = vpop.permute.xlu0 %3804  ;;  %v3165_v54 = vpack.c.bf16 %v1288_v9, %v1286_v58  ;;  %v3167_v47 = vpack.c.bf16 %v1287_v17, %v1285_v16  ;;  %v1296_v46 = vsel %vm659_vm0, %v3816_v13, %v3817_v55  ;;  %v1295_v21 = vsel %vm659_vm0, %v3772_v63, %v3816_v13 }
 0x262   : > { %v3807_v41 = vunpack.i.h.bf16 %v3805_v29  ;;  %v3806_v36 = vunpack.i.l.bf16 %v3805_v29  ;;  %v3820_v26 = vpop.permute.xlu1 %3819 }
 0x263   : > { %3166 = vmatprep.subr.bf16.mxu0 %v3165_v54  ;;  %v3822_v51 = vunpack.i.h.bf16 %v3820_v26  ;;  %v3821_v22 = vunpack.i.l.bf16 %v3820_v26 }
 0x264   : > { %3168 = vmatpush1.bf16.msra.mxu0 %v3167_v47  ;;  %v1292_v56 = vsel %vm659_vm0, %v3806_v36, %v3807_v41  ;;  %v1291_v30 = vsel %vm659_vm0, %v3682_v53, %v3806_v36 }
 0x265   : > { %v3810_v39 = vpop.permute.xlu0 %3809  ;;  %v3169_v25 = vpack.c.bf16 %v1292_v56, %v1290_v10  ;;  %v3171_v12 = vpack.c.bf16 %v1291_v30, %v1289_v50  ;;  %v1298_v2 = vsel %vm659_vm0, %v3821_v22, %v3822_v51  ;;  %v1297_v28 = vsel %vm659_vm0, %v3781_v24, %v3821_v22 }
 0x266   : > { %v3812_v18 = vunpack.i.h.bf16 %v3810_v39  ;;  %v3811_v3 = vunpack.i.l.bf16 %v3810_v39  ;;  %v3835_v5 = vpop.permute.xlu1 %3834 }
 0x267   : > { %3170 = vmatprep.subr.bf16.mxu0 %v3169_v25  ;;  %v3837_v33 = vunpack.i.h.bf16 %v3835_v5  ;;  %v3836_v60 = vunpack.i.l.bf16 %v3835_v5 }
 0x268   : > { %3172 = vmatpush1.bf16.msra.mxu0 %v3171_v12  ;;  %v1294_v35 = vsel %vm659_vm0, %v3811_v3, %v3812_v18  ;;  %v1293_v20 = vsel %vm659_vm0, %v3771_v6, %v3811_v3  ;;  %v416_v3 = vld [vmem:[#allocation6] sm:$0xff] }
 0x269   : > { %v3825_v34 = vpop.permute.xlu0 %3824  ;;  %v3173_v40 = vpack.c.bf16 %v1296_v46, %v1294_v35  ;;  %v3175_v62 = vpack.c.bf16 %v1295_v21, %v1293_v20  ;;  %v1304_v17 = vsel %vm659_vm0, %v3836_v60, %v3837_v33  ;;  %v1303_v29 = vsel %vm659_vm0, %v3787_v23, %v3836_v60  ;;  %v420_v46 = vld [vmem:[#allocation6 + $0x20] sm:$0xff] }
 0x26a   : > { %v3827_v4 = vunpack.i.h.bf16 %v3825_v34  ;;  %v3826_v59 = vunpack.i.l.bf16 %v3825_v34  ;;  %v3840_v37 = vpop.permute.xlu1 %3839 }
 0x26b   : > { %3174 = vmatprep.subr.bf16.mxu0 %v3173_v40  ;;  %v3842_v38 = vunpack.i.h.bf16 %v3840_v37  ;;  %v3841_v58 = vunpack.i.l.bf16 %v3840_v37 }
 0x26c   : > { %3176 = vmatpush1.bf16.msra.mxu0 %v3175_v62  ;;  %v1300_v31 = vsel %vm659_vm0, %v3826_v59, %v3827_v4  ;;  %v1299_v45 = vsel %vm659_vm0, %v3782_v27, %v3826_v59  ;;  %v419_v59 = vld [vmem:[#allocation6 + $0x18] sm:$0xff] }
 0x26d   : > { %v3830_v61 = vpop.permute.xlu0 %3829  ;;  %v3177_v8 = vpack.c.bf16 %v1300_v31, %v1298_v2  ;;  %v3179_v7 = vpack.c.bf16 %v1299_v45, %v1297_v28  ;;  %v1306_v10 = vsel %vm659_vm0, %v3841_v58, %v3842_v38  ;;  %v423_v28 = vld [vmem:[#allocation6 + $0x38] sm:$0xff]  ;;  %v6811_v38 = vmov 0.0  }
 0x26e   : > { %v3832_v19 = vunpack.i.h.bf16 %v3830_v61  ;;  %v3831_v49 = vunpack.i.l.bf16 %v3830_v61  ;;  %v3850_v15 = vpop.permute.xlu1 %3849 }
 0x26f   : > { %v3851_v9 = vunpack.i.l.bf16 %v3850_v15  ;;  %3178 = vmatprep.subr.bf16.mxu0 %v3177_v8  ;;  %v3852_v48 = vunpack.i.h.bf16 %v3850_v15  ;;  %v425_v15 = vld [vmem:[#allocation6 + $0x48] sm:$0xff] }
 0x270   : > { %3180 = vmatpush1.bf16.msra.mxu0 %v3179_v7  ;;  %v1302_v16 = vsel %vm659_vm0, %v3831_v49, %v3832_v19  ;;  %v1301_v11 = vsel %vm659_vm0, %v3786_v57, %v3831_v49  ;;  %v422_v7 = vld [vmem:[#allocation6 + $0x30] sm:$0xff] }
 0x271   : > { %v3845_v54 = vpop.permute.xlu0 %3844  ;;  %v3181_v47 = vpack.c.bf16 %v1304_v17, %v1302_v16  ;;  %v3183_v53 = vpack.c.bf16 %v1303_v29, %v1301_v11  ;;  %v1305_v50 = vsel %vm659_vm0, %v3851_v9, %v3841_v58  ;;  %v426_v49 = vld [vmem:[#allocation6 + $0x50] sm:$0xff]  ;;  %v421_v9 = vld [vmem:[#allocation6 + $0x28] sm:$0xff]  ;;  %v424_v16 = vld [vmem:[#allocation6 + $0x40] sm:$0xff] }
 0x272   : > { %v3847_v41 = vunpack.i.h.bf16 %v3845_v54  ;;  %v3846_v36 = vunpack.i.l.bf16 %v3845_v54  ;;  %v3860_v26 = vpop.permute.xlu1 %3859  ;;  %v418_v58 = vld [vmem:[#allocation6 + $0x10] sm:$0xff]  ;;  %v427_v17 = vld [vmem:[#allocation6 + $0x58] sm:$0xff] }
 0x273   : > { %3182 = vmatprep.subr.bf16.mxu0 %v3181_v47  ;;  %v3862_v55 = vunpack.i.h.bf16 %v3860_v26  ;;  %v3861_v13 = vunpack.i.l.bf16 %v3860_v26 }
 0x274   : > { %3184 = vmatpush1.bf16.msra.mxu0 %v3183_v53  ;;  %v1308_v56 = vsel %vm659_vm0, %v3846_v36, %v3847_v41  ;;  %v1307_v30 = vsel %vm659_vm0, %v3852_v48, %v3846_v36 }
 0x275   : > { %v3855_v39 = vpop.permute.xlu0 %3854  ;;  %v3185_v25 = vpack.c.bf16 %v1308_v56, %v1306_v10  ;;  %v3187_v12 = vpack.c.bf16 %v1307_v30, %v1305_v50  ;;  %v1312_v51 = vsel %vm659_vm0, %v3861_v13, %v3862_v55 }
 0x276   : > { %v3857_v63 = vunpack.i.h.bf16 %v3855_v39  ;;  %v3856_v6 = vunpack.i.l.bf16 %v3855_v39  ;;  %v3870_v18 = vpop.permute.xlu1 %3869 }
 0x277   : > { %3186 = vmatprep.subr.bf16.mxu0 %v3185_v25  ;;  %v3872_v34 = vunpack.i.h.bf16 %v3870_v18  ;;  %v3871_v40 = vunpack.i.l.bf16 %v3870_v18 }
 0x278   : > { %3188 = vmatpush1.bf16.msra.mxu0 %v3187_v12  ;;  %v1310_v5 = vsel %vm659_vm0, %v3856_v6, %v3857_v63 }
 0x279   : > { %v3865_v22 = vpop.permute.xlu0 %3864  ;;  %v3189_v35 = vpack.c.bf16 %v1312_v51, %v1310_v5  ;;  %v1314_v45 = vsel %vm659_vm0, %v3871_v40, %v3872_v34 }
 0x27a   : > { %v3867_v20 = vunpack.i.h.bf16 %v3865_v22  ;;  %v3866_v21 = vunpack.i.l.bf16 %v3865_v22  ;;  %v3880_v24 = vpop.permute.xlu1 %3879  ;;  %v4590_v22 = vmov 0  }
 0x27b   : > { %1467 = vmatmul.mubr.f32.vlgmr.msra.gmra.mrb[0].mxu0 %v416_v3  ;;  %3190 = vmatprep.subr.bf16.mxu0 %v3189_v35  ;;  %v3881_v4 = vunpack.i.l.bf16 %v3880_v24  ;;  %v3882_v33 = vunpack.i.h.bf16 %v3880_v24 }
 0x27c   : > { %v1311_v62 = vsel %vm659_vm0, %v3867_v20, %v3861_v13  ;;  %v1309_v27 = vsel %vm659_vm0, %v3866_v21, %v3856_v6  ;;  %1472 = vmatprep.mubr.f32.mxu0 %v420_v46  ;;  %3883 = vset.pattern.permute.xlu1 %v4590_v22 }
 0x27d   : > { %v3875_v37 = vpop.permute.xlu0 %3874  ;;  %v3191_v2 = vpack.c.bf16 %v1311_v62, %v1309_v27  ;;  %v1313_v61 = vsel %vm659_vm0, %v3881_v4, %v3871_v40  ;;  %3884 = vset.pattern.permute.xlu0 %v4590_v22 }
 0x27e   : > { %v3877_v60 = vunpack.i.h.bf16 %v3875_v37  ;;  %v3876_v31 = vunpack.i.l.bf16 %v3875_v37 }
 0x27f   : > { %1473 = vmatmul.mubr.f32.gmra.mrb[2].mxu0 %v419_v59 }
 0x280   : > { %v1315_v8 = vsel %vm659_vm0, %v3882_v33, %v3876_v31  ;;  %3192 = vmatpush1.bf16.msra.mxu0 %v3191_v2  ;;  %1478 = vmatprep.mubr.f32.mxu0 %v423_v28  ;;  %v1316_v23 = vsel %vm659_vm0, %v3876_v31, %v3877_v60 }
 0x281   : > { %v3193_v57 = vpack.c.bf16 %v1316_v23, %v1314_v45  ;;  %v3195_v19 = vpack.c.bf16 %v1315_v8, %v1313_v61 }
 0x283   : > { %1479 = vmatmul.mubr.f32.gmra.mrb[4].mxu0 %v422_v7  ;;  %3194 = vmatprep.subr.bf16.mxu0 %v3193_v57 }
 0x284   : > { %3196 = vmatpush1.bf16.msra.mxu0 %v3195_v19  ;;  %1484 = vmatprep.mubr.f32.mxu0 %v426_v49 }
 0x287   : > { %1485 = vmatmul.mubr.f32.gmra.mrb[6].mxu0 %v425_v15 }
 0x288   : > { %1555 = vmatprep.mubr.f32.mxu0 %v6811_v38 }
 0x28b   : > { %3109 = vmatmul.mubr.msk.f32.vlgmr.msra.gmra.mrb[0].mxu0 %vm1389_vm13, %v418_v58 }
 0x28c   : > { %1561 = vmatprep.mubr.f32.mxu0 %v6811_v38 }
 0x28f   : > { %3110 = vmatmul.mubr.msk.f32.gmra.mrb[2].mxu0 %vm1389_vm13, %v421_v9  ;;  %v1580_v9 = vld [vmem:[%s6755_s3] sm:$0xff] }
 0x290   : > { %1567 = vmatprep.mubr.f32.mxu0 %v6811_v38 }
 0x293   : > { %3111 = vmatmul.mubr.msk.f32.gmra.mrb[4].mxu0 %vm1389_vm13, %v424_v16 }
 0x294   : > { %1573 = vmatprep.mubr.f32.mxu0 %v6811_v38 }
 0x297   : > { %3112 = vmatmul.mubr.msk.f32.gmra.mrb[6].mxu0 %vm1389_vm13, %v427_v17 }
 0x298   : > { %2936 = vmatprep.mubr.f32.mxu0 %v6811_v38  ;;  %v6878_v38 = vld [vmem:[#allocation29_spill] sm:$0xff] }
 0x35e   : > { %v5569_v11 = vpop.f32.mrb[0].mxu0 }
 0x35f   : > { %v1600_v29 = vmul.f32 %v5569_v11, %v5569_v11  ;;  %v5573_v54 = vpop.f32.mrb[1].mxu0 }
 0x360   : > { %v1588_v47 = vadd.f32 %v5573_v54, %v5569_v11  ;;  %v1601_v53 = vmul.f32 %v5573_v54, %v5573_v54 }
 0x362   : > { %1589 = vadd.xlane.f32.xlu0 %v1588_v47  ;;  %v5579_v48 = vpop.f32.mrb[2].mxu0  ;;  %v1608_v41 = vadd.f32 %v1601_v53, %v1600_v29  ;;  %v1584_v47 = vld [vmem:[%s6756_s4] sm:$0xff]  ;;  %v1581_v53 = vld [vmem:[%s6755_s3 + $0x8] sm:$0xff] }
 0x363   : > { %v1602_v36 = vmul.f32 %v5579_v48, %v5579_v48  ;;  %v5583_v26 = vpop.f32.mrb[3].mxu0 }
 0x364   : > { %v1591_v10 = vadd.f32 %v5583_v26, %v5579_v48  ;;  %v1603_v50 = vmul.f32 %v5583_v26, %v5583_v26 }
 0x366   : > { %1609 = vadd.xlane.f32.xlu0 %v1608_v41  ;;  %1592 = vadd.xlane.f32.xlu1 %v1591_v10  ;;  %v5589_v55 = vpop.f32.mrb[4].mxu0  ;;  %v1611_v13 = vadd.f32 %v1603_v50, %v1602_v36 }
 0x367   : > { %v1604_v56 = vmul.f32 %v5589_v55, %v5589_v55  ;;  %v5593_v30 = vpop.f32.mrb[5].mxu0 }
 0x368   : > { %v1594_v39 = vadd.f32 %v5593_v30, %v5589_v55  ;;  %v1605_v25 = vmul.f32 %v5593_v30, %v5593_v30 }
 0x36a   : > { %1612 = vadd.xlane.f32.xlu0 %v1611_v13  ;;  %1595 = vadd.xlane.f32.xlu1 %v1594_v39  ;;  %v5599_v12 = vpop.f32.mrb[6].mxu0  ;;  %v1614_v63 = vadd.f32 %v1605_v25, %v1604_v56  ;;  %v1585_v13 = vld [vmem:[%s6756_s4 + $0x8] sm:$0xff] }
 0x36b   : > { %v1606_v6 = vmul.f32 %v5599_v12, %v5599_v12  ;;  %v5603_v18 = vpop.f32.mrb[7].mxu0 }
 0x36c   : > { %v1597_v3 = vadd.f32 %v5603_v18, %v5599_v12  ;;  %v1607_v5 = vmul.f32 %v5603_v18, %v5603_v18 }
 0x36e   : > { %1615 = vadd.xlane.f32.xlu1 %v1614_v63  ;;  %1598 = vadd.xlane.f32.xlu0 %v1597_v3  ;;  %v1617_v51 = vadd.f32 %v1607_v5, %v1606_v6  ;;  %v1582_v63 = vld [vmem:[%s6755_s3 + $0x10] sm:$0xff]  ;;  %v1583_v5 = vld [vmem:[%s6755_s3 + $0x18] sm:$0xff] }
 0x372   : > { %1618 = vadd.xlane.f32.xlu0 %v1617_v51 }
 0x3ef   : > { %v1590_v35 = vpop.xlane.xlu0 %1589 }
 0x3f0   : > { %v1620_v46 = vmul.f32 0.00390625, %v1590_v35  ;;  %v1586_v35 = vld [vmem:[%s6756_s4 + $0x10] sm:$0xff] }
 0x3f2   : > { %v1628_v24 = vmul.f32 %v1620_v46, %v1620_v46 }
 0x3f3   : > { %v1610_v20 = vpop.xlane.xlu0 %1609  ;;  %v1593_v21 = vpop.xlane.xlu1 %1592 }
 0x3f4   : > { %v1624_v34 = vmul.f32 0.00390625, %v1610_v20  ;;  %v1621_v40 = vmul.f32 0.00390625, %v1593_v21  ;;  %v1587_v21 = vld [vmem:[%s6756_s4 + $0x18] sm:$0xff] }
 0x3f6   : > { %v1632_v62 = vsub.f32 %v1624_v34, %v1628_v24  ;;  %v1629_v37 = vmul.f32 %v1621_v40, %v1621_v40 }
 0x3f7   : > { %v1613_v27 = vpop.xlane.xlu0 %1612  ;;  %v1596_v4 = vpop.xlane.xlu1 %1595 }
 0x3f8   : > { %v1636_v59 = vadd.f32 1e-05, %v1632_v62  ;;  %v1625_v2 = vmul.f32 0.00390625, %v1613_v27  ;;  %v1622_v28 = vmul.f32 0.00390625, %v1596_v4 }
 0x3fa   : > { %4385 = vrsqrt.f32 %v1636_v59  ;;  %v1633_v33 = vsub.f32 %v1625_v2, %v1629_v37  ;;  %v1630_v61 = vmul.f32 %v1622_v28, %v1622_v28 }
 0x3fb   : > { %v1616_v60 = vpop.xlane.xlu1 %1615  ;;  %v1599_v31 = vpop.xlane.xlu0 %1598 }
 0x3fc   : > { %v1637_v45 = vadd.f32 1e-05, %v1633_v33  ;;  %v1626_v8 = vmul.f32 0.00390625, %v1616_v60  ;;  %v1623_v7 = vmul.f32 0.00390625, %v1599_v31 }
 0x3fe   : > { %4387 = vrsqrt.f32 %v1637_v45  ;;  %v1634_v23 = vsub.f32 %v1626_v8, %v1630_v61  ;;  %v1631_v49 = vmul.f32 %v1623_v7, %v1623_v7 }
 0x3ff   : > { %v1619_v57 = vpop.xlane.xlu0 %1618 }
 0x400   : > { %v1638_v19 = vadd.f32 1e-05, %v1634_v23  ;;  %v1627_v15 = vmul.f32 0.00390625, %v1619_v57 }
 0x402   : > { %v1635_v58 = vsub.f32 %v1627_v15, %v1631_v49  ;;  %4389 = vrsqrt.f32 %v1638_v19 }
 0x404   : > { %v4386_v16 = vpop.eup %4385  ;;  %v1639_v17 = vadd.f32 1e-05, %v1635_v58 }
 0x405   : > { %v1644_v29 = vmul.f32 %v4386_v16, %v1580_v9 }
 0x406   : > { %4391 = vrsqrt.f32 %v1639_v17  ;;  %v6863_v17 = vld [vmem:[#allocation28_spill] sm:$0xff] }
 0x407   : > { %1658 = vperm.xlu1 %3883, %v1644_v29   ;;  %v1648_v41 = vmul.f32 %v1644_v29, %v1620_v46 }
 0x408   : > { %v4388_v36 = vpop.eup %4387 }
 0x409   : > { %v1652_v10 = vsub.f32 %v1584_v47, %v1648_v41  ;;  %v1645_v50 = vmul.f32 %v4388_v36, %v1581_v53  ;;  %v6864_v36 = vld [vmem:[#allocation30_spill] sm:$0xff] }
 0x40b   : > { %1686 = vperm.xlu1 %3883, %v1652_v10   ;;  %1663 = vperm.xlu0 %3884, %v1645_v50   ;;  %v1649_v56 = vmul.f32 %v1645_v50, %v1621_v40 }
 0x40c   : > { %v4390_v25 = vpop.eup %4389 }
 0x40d   : > { %v1653_v39 = vsub.f32 %v1585_v13, %v1649_v56  ;;  %v1646_v6 = vmul.f32 %v4390_v25, %v1582_v63  ;;  %v6865_v13 = vld [vmem:[#allocation22_spill] sm:$0xff] }
 0x40f   : > { %1691 = vperm.xlu1 %3883, %v1653_v39   ;;  %v1650_v22 = vmul.f32 %v1646_v6, %v1622_v28  ;;  %v6866_v39 = vld [vmem:[#allocation31_spill] sm:$0xff] }
 0x410   : > { %v4392_v3 = vpop.eup %4391 }
 0x411   : > { %v1647_v51 = vmul.f32 %v4392_v3, %v1583_v5  ;;  %v1654_v46 = vsub.f32 %v1586_v35, %v1650_v22  ;;  %v6868_v3 = vld [vmem:[#allocation32_spill] sm:$0xff] }
 0x413   : > { %1668 = vperm.xlu1 %3883, %v1646_v6   ;;  %v1651_v20 = vmul.f32 %v1647_v51, %v1623_v7 }
 0x415   : > { %v1655_v24 = vsub.f32 %v1587_v21, %v1651_v20  ;;  %v6869_v20 = vld [vmem:[#allocation26_spill] sm:$0xff] }
 0x417   : > { %1673 = vperm.xlu1 %3883, %v1647_v51  }
 0x41b   : > { %1696 = vperm.xlu1 %3883, %v1654_v46  }
 0x41f   : > { %1701 = vperm.xlu1 %3883, %v1655_v24   ;;  %v6870_v24 = vld [vmem:[#allocation33_spill] sm:$0xff] }
 0x486   : > { %v1659_v34 = vpop.permute.xlu1 %1658 }
 0x487   : > { %v1676_v40 = vmul.f32 %v1659_v34, %v5569_v11  ;;  %v1677_v62 = vmul.f32 %v1659_v34, %v5573_v54 }
 0x48a   : > { %v1687_v27 = vpop.permute.xlu1 %1686  ;;  %v1664_v4 = vpop.permute.xlu0 %1663 }
 0x48b   : > { %v1704_v59 = vadd.f32 %v1687_v27, %v1676_v40  ;;  %v1705_v37 = vadd.f32 %v1687_v27, %v1677_v62  ;;  %v1678_v33 = vmul.f32 %v1664_v4, %v5579_v48  ;;  %v1679_v60 = vmul.f32 %v1664_v4, %v5583_v26 }
 0x48d   : > { %v5635_v2 = vmax.f32 %v1704_v59, 0.0  ;;  %v5637_v28 = vmax.f32 %v1705_v37, 0.0 }
 0x48e   : > { %v1692_v31 = vpop.permute.xlu1 %1691 }
 0x48f   : > { %v1706_v45 = vadd.f32 %v1692_v31, %v1678_v33  ;;  %v1707_v61 = vadd.f32 %v1692_v31, %v1679_v60  ;;  %v3885_v11 = vpack.i.bf16 %v5637_v28, %v5635_v2  ;;  %v1745_v54 = vmul.f32 %v5635_v2, %v4968_v1 }
 0x490   : > { %v1746_v8 = vmul.f32 %v5637_v28, %v4858_v43  ;;  %v1757_v7 = vmul.f32 %v5635_v2, %v4992_v14  ;;  %v1758_v48 = vmul.f32 %v5637_v28, %v4856_v42  ;;  %v1733_v26 = vmul.f32 %v5635_v2, %v5105_v0 }
 0x491   : > { %v5653_v23 = vmax.f32 %v1706_v45, 0.0  ;;  %v5655_v57 = vmax.f32 %v1707_v61, 0.0  ;;  %3886 = vrot.lane.b32.xlu0 %v3885_v11, %s4582_s27  ;;  %v1734_v19 = vmul.f32 %v5637_v28, %v4876_v52  ;;  %v1769_v49 = vmul.f32 %v5635_v2, %v5017_v32  ;;  %v6872_v61 = vld [vmem:[#allocation18_spill] sm:$0xff] }
 0x492   : > { %v1669_v15 = vpop.permute.xlu1 %1668  ;;  %v3890_v58 = vpack.i.bf16 %v1746_v8, %v1745_v54  ;;  %v3895_v9 = vpack.i.bf16 %v1758_v48, %v1757_v7  ;;  %v1770_v16 = vmul.f32 %v5637_v28, %v4860_v44  ;;  %v1816_v29 = vmul.f32 %v5635_v2, %v6863_v17  ;;  %v6873_v48 = vld [vmem:[#allocation21_spill] sm:$0xff]  ;;  %v6883_v8 = vld [vmem:[#allocation27_spill] sm:$0xff] }
 0x493   : > { %v1680_v47 = vmul.f32 %v1669_v15, %v5589_v55  ;;  %v1681_v53 = vmul.f32 %v1669_v15, %v5593_v30  ;;  %v3920_v41 = vpack.i.bf16 %v1734_v19, %v1733_v26  ;;  %v1817_v10 = vmul.f32 %v5637_v28, %v6864_v36  ;;  %v6867_v30 = vld [vmem:[#allocation24_spill] sm:$0xff] }
 0x494   : > { %3891 = vrot.lane.b32.xlu1 %v3890_v58, %s4578_s22  ;;  %v3900_v50 = vpack.i.bf16 %v1770_v16, %v1769_v49  ;;  %v1780_v56 = vmul.f32 %v5635_v2, %v6865_v13  ;;  %v1781_v25 = vmul.f32 %v5637_v28, %v6866_v39  ;;  %v3930_v63 = vpack.i.bf16 %v5655_v57, %v5653_v23 }
 0x495   : > { %3896 = vrot.lane.b32.xlu0 %v3895_v9, %s4585_s17  ;;  %v3925_v55 = vpack.i.bf16 %v1817_v10, %v1816_v29  ;;  %v1792_v6 = vmul.f32 %v5635_v2, %v6867_v30  ;;  %v1793_v5 = vmul.f32 %v5637_v28, %v6868_v3  ;;  %v5684_v51 = vmul.f32 %v5653_v23, %v4968_v1 }
 0x496   : > { %v1674_v22 = vpop.permute.xlu1 %1673  ;;  %v3905_v35 = vpack.i.bf16 %v1781_v25, %v1780_v56  ;;  %v5688_v46 = vmul.f32 %v5655_v57, %v4858_v43  ;;  %v5692_v21 = vmul.f32 %v5635_v2, %v6869_v20  ;;  %v5696_v34 = vmul.f32 %v5637_v28, %v6870_v24  ;;  %v6875_v56 = vld [vmem:[#allocation23_spill] sm:$0xff] }
 0x497   : > { %v1682_v40 = vmul.f32 %v1674_v22, %v5599_v12  ;;  %v1683_v62 = vmul.f32 %v1674_v22, %v5603_v18  ;;  %v3910_v27 = vpack.i.bf16 %v1793_v5, %v1792_v6  ;;  %v5702_v4 = vmul.f32 %v5653_v23, %v4992_v14  ;;  %v6871_v12 = vld [vmem:[#allocation19_spill] sm:$0xff] }
 0x498   : > { %3921 = vrot.lane.b32.xlu1 %v3920_v41, %s4583_s11  ;;  %v3935_v59 = vpack.i.bf16 %v5688_v46, %v5684_v51  ;;  %v3915_v37 = vpack.i.bf16 %v5696_v34, %v5692_v21  ;;  %v5711_v33 = vmul.f32 %v5655_v57, %v4856_v42  ;;  %v5715_v18 = vmul.f32 %v5637_v28, %v6871_v12  ;;  %v6874_v41 = vld [vmem:[#allocation20_spill] sm:$0xff] }
 0x499   : > { %3901 = vrot.lane.b32.xlu0 %v3900_v50, %s4577_s29  ;;  %v5720_v60 = vmul.f32 %v5655_v57, %v6871_v12  ;;  %v5724_v31 = vmul.f32 %v5653_v23, %v5017_v32  ;;  %v5728_v45 = vmul.f32 %v5655_v57, %v4860_v44  ;;  %v5732_v11 = vmul.f32 %v5637_v28, %v6872_v61 }
 0x49a   : > { %v1697_v54 = vpop.permute.xlu1 %1696  ;;  %v5738_v7 = vmul.f32 %v5655_v57, %v6872_v61  ;;  %v5742_v26 = vmul.f32 %v5635_v2, %v6873_v48  ;;  %v5746_v19 = vmul.f32 %v5653_v23, %v6865_v13  ;;  %v5759_v10 = vmul.f32 %v5637_v28, %v6874_v41 }
 0x49b   : > { %v1708_v49 = vadd.f32 %v1697_v54, %v1680_v47  ;;  %v1709_v15 = vadd.f32 %v1697_v54, %v1681_v53  ;;  %v3940_v58 = vpack.i.bf16 %v5720_v60, %v5715_v18  ;;  %v5763_v47 = vmul.f32 %v5655_v57, %v6874_v41 }
 0x49c   : > { %3926 = vrot.lane.b32.xlu1 %v3925_v55, %s4584_s13  ;;  %v5772_v25 = vmul.f32 %v5635_v2, %v6875_v56  ;;  %v5776_v55 = vmul.f32 %v5653_v23, %v6867_v30  ;;  %v5782_v51 = vmul.f32 %v5655_v57, %v6866_v39  ;;  %v5786_v22 = vmul.f32 %v5653_v23, %v6873_v48 }
 0x49d   : > { %v5765_v53 = vmax.f32 %v1708_v49, 0.0  ;;  %v5767_v50 = vmax.f32 %v1709_v15, 0.0  ;;  %3906 = vrot.lane.b32.xlu0 %v3905_v35, %s4586_s2  ;;  %v6876_v35 = vld [vmem:[#allocation25_spill] sm:$0xff]  ;;  %v5796_v60 = vmul.f32 %v5653_v23, %v6869_v20  ;;  %v5803_v49 = vmul.f32 %v5655_v57, %v6868_v3 }
 0x49e   : > { %v1702_v6 = vpop.permute.xlu1 %1701  ;;  %v5790_v46 = vmul.f32 %v5635_v2, %v6876_v35  ;;  %v5822_v54 = vmul.f32 %v5653_v23, %v6878_v38  ;;  %v5828_v5 = vmul.f32 %v5655_v57, %v6870_v24  ;;  %v5846_v18 = vmul.f32 %v5653_v23, %v5105_v0 }
 0x49f   : > { %v1710_v21 = vadd.f32 %v1702_v6, %v1682_v40  ;;  %v1711_v34 = vadd.f32 %v1702_v6, %v1683_v62  ;;  %v5807_v40 = vmul.f32 %v5653_v23, %v6875_v56  ;;  %v5811_v62 = vmul.f32 %v5655_v57, %v6864_v36 }
 0x4a0   : > { %3931 = vrot.lane.b32.xlu1 %v3930_v63, %s4582_s27  ;;  %6879 = vst [vmem:[#allocation30_spill] sm:$0xff] %v5828_v5  ;;  %v5842_v63 = vmul.f32 %v5767_v50, %v4858_v43  ;;  %6881 = vst [vmem:[#allocation31_spill] sm:$0xff] %v5846_v18  ;;  %v5850_v29 = vmul.f32 %v5655_v57, %v4876_v52  ;;  %v5861_v9 = vmul.f32 %v5767_v50, %v4856_v42 }
 0x4a1   : > { %6877 = vst [vmem:[#allocation28_spill] sm:$0xff] %v5811_v62  ;;  %v5813_v15 = vmax.f32 %v1710_v21, 0.0  ;;  %v5815_v6 = vmax.f32 %v1711_v34, 0.0  ;;  %3911 = vrot.lane.b32.xlu0 %v3910_v27, %s4587_s19  ;;  %v5832_v21 = vmul.f32 %v5653_v23, %v6876_v35  ;;  %v5836_v27 = vmul.f32 %v5765_v53, %v4968_v1 }
 0x4a2   : > { %v5857_v34 = vmul.f32 %v5765_v53, %v4992_v14  ;;  %v5865_v62 = vmul.f32 %v5637_v28, %v6883_v8  ;;  %v5874_v5 = vmul.f32 %v5655_v57, %v6883_v8  ;;  %v5892_v16 = vmul.f32 %v5653_v23, %v6863_v17 }
 0x4a3   : > { %6880 = vst [vmem:[#allocation22_spill] sm:$0xff] %v5832_v21  ;;  %v5878_v21 = vmul.f32 %v5765_v53, %v5017_v32  ;;  %v5898_v18 = vmul.f32 %v5765_v53, %v6865_v13  ;;  %v5902_v28 = vmul.f32 %v5767_v50, %v6866_v39  ;;  %v5955_v23 = vmul.f32 %v5765_v53, %v5105_v0 }
 0x4a4   : > { %3936 = vrot.lane.b32.xlu1 %v3935_v59, %s4578_s22  ;;  %6882 = vst [vmem:[#allocation24_spill] sm:$0xff] %v5857_v34  ;;  %6884 = vst [vmem:[#allocation32_spill] sm:$0xff] %v5865_v62  ;;  %v5888_v59 = vmul.f32 %v5635_v2, %v6878_v38  ;;  %v6886_v2 = vpack.i.bf16 %v5711_v33, %v5702_v4  ;;  %v5916_v62 = vmul.f32 %v5765_v53, %v6867_v30 }
 0x4a5   : > { %3916 = vrot.lane.b32.xlu0 %v3915_v37, %s4588_s26  ;;  %6885 = vst [vmem:[#allocation26_spill] sm:$0xff] %v5874_v5  ;;  %v5884_v37 = vmul.f32 %v5767_v50, %v4860_v44  ;;  %v5920_v5 = vmul.f32 %v5767_v50, %v6868_v3  ;;  %v5927_v33 = vmul.f32 %v5813_v15, %v4968_v1  ;;  %6890 = vst [vmem:[#allocation21_spill] sm:$0xff] %v5955_v23 }
 0x4a6   : > { %6887 = vst [vmem:[#allocation33_spill] sm:$0xff] %v5916_v62  ;;  %v5935_v34 = vmul.f32 %v5765_v53, %v6869_v20  ;;  %v5945_v4 = vmul.f32 %v5813_v15, %v4992_v14  ;;  %v5949_v1 = vmul.f32 %v5815_v6, %v4856_v42  ;;  %v5959_v57 = vmul.f32 %v5767_v50, %v4876_v52 }
 0x4a7   : > { %6888 = vst [vmem:[#allocation19_spill] sm:$0xff] %v5927_v33  ;;  %v5963_v62 = vmul.f32 %v5813_v15, %v5017_v32  ;;  %v6891_v42 = vpack.i.bf16 %v5728_v45, %v5724_v31  ;;  %v5975_v33 = vmul.f32 %v5815_v6, %v4860_v44  ;;  %v6892_v32 = vpack.i.bf16 %v5738_v7, %v5732_v11 }
 0x4a8   : > { %3946 = vrot.lane.b32.xlu1 %v6886_v2, %s4585_s17  ;;  %v5931_v2 = vmul.f32 %v5815_v6, %v4858_v43  ;;  %v5989_v45 = vmul.f32 %v5767_v50, %v6864_v36  ;;  %v5993_v44 = vmul.f32 %v5765_v53, %v6873_v48  ;;  %v4060_v11 = vpack.i.bf16 %v5815_v6, %v5813_v15 }
 0x4a9   : > { %3941 = vrot.lane.b32.xlu0 %v3940_v58, %s4578_s22  ;;  %v5941_v58 = vmul.f32 %v5767_v50, %v6870_v24  ;;  %v4085_v43 = vpack.i.bf16 %v5975_v33, %v5963_v62  ;;  %v6005_v7 = vmul.f32 %v5765_v53, %v6875_v56  ;;  %v1750_v14 = vmul.f32 %v5767_v50, %v6871_v12 }
 0x4aa   : > { %6889 = vst [vmem:[#allocation18_spill] sm:$0xff] %v5931_v2  ;;  %v5979_v2 = vmul.f32 %v5765_v53, %v6863_v17  ;;  %v1753_v62 = vmul.f32 %v5815_v6, %v6871_v12  ;;  %v6893_v33 = vpack.i.bf16 %v5746_v19, %v5742_v26  ;;  %v6894_v12 = vpack.i.bf16 %v5763_v47, %v5759_v10 }
 0x4ab   : > { %v1765_v26 = vmul.f32 %v5815_v6, %v6872_v61  ;;  %v1742_v19 = vmul.f32 %v5813_v15, %v5105_v0  ;;  %v1824_v10 = vmul.f32 %v5765_v53, %v6878_v38  ;;  %v1790_v0 = vmul.f32 %v5815_v6, %v6866_v39 }
 0x4ac   : > { %3956 = vrot.lane.b32.xlu1 %v6891_v42, %s4577_s29  ;;  %v5997_v42 = vmul.f32 %v5813_v15, %v6865_v13  ;;  %v4055_v31 = vpack.i.bf16 %v5989_v45, %v5979_v2  ;;  %v1813_v2 = vmul.f32 %v5813_v15, %v6869_v20  ;;  %v1762_v45 = vmul.f32 %v5767_v50, %v6872_v61 }
 0x4ad   : > { %3951 = vrot.lane.b32.xlu0 %v6892_v32, %s4585_s17  ;;  %v1801_v32 = vmul.f32 %v5813_v15, %v6867_v30  ;;  %v1812_v30 = vmul.f32 %v5765_v53, %v6876_v35  ;;  %v1774_v20 = vmul.f32 %v5767_v50, %v6874_v41  ;;  %v1825_v61 = vmul.f32 %v5813_v15, %v6863_v17 }
 0x4ae   : > { %v4095_v13 = vpack.i.bf16 %v5997_v42, %v5993_v44  ;;  %v4070_v44 = vpack.i.bf16 %v1753_v62, %v1750_v14  ;;  %v1743_v42 = vmul.f32 %v5815_v6, %v4876_v52  ;;  %v4080_v47 = vpack.i.bf16 %v1765_v26, %v1762_v45 }
 0x4af   : > { %v4105_v23 = vpack.i.bf16 %v1801_v32, %v6005_v7  ;;  %v4115_v7 = vpack.i.bf16 %v1813_v2, %v1812_v30  ;;  %v1777_v32 = vmul.f32 %v5815_v6, %v6874_v41  ;;  %v6895_v52 = vpack.i.bf16 %v5776_v55, %v5772_v25 }
 0x4b0   : > { %3966 = vrot.lane.b32.xlu1 %v6893_v33, %s4586_s2  ;;  %v4125_v14 = vpack.i.bf16 %v1743_v42, %v1742_v19  ;;  %v1791_v41 = vmul.f32 %v5813_v15, %v6873_v48  ;;  %v1802_v33 = vmul.f32 %v5815_v6, %v6868_v3  ;;  %v1803_v30 = vmul.f32 %v5813_v15, %v6875_v56  ;;  %v6909_v19 = vld [vmem:[#allocation26_spill] sm:$0xff]  ;;  %v6910_v42 = vld [vmem:[#allocation32_spill] sm:$0xff] }
 0x4b1   : > { %3961 = vrot.lane.b32.xlu0 %v6894_v12, %s4577_s29  ;;  %v4090_v62 = vpack.i.bf16 %v1777_v32, %v1774_v20  ;;  %v6896_v17 = vpack.i.bf16 %v5786_v22, %v5782_v51  ;;  %v4135_v39 = vpack.i.bf16 %v1825_v61, %v1824_v10  ;;  %v1814_v25 = vmul.f32 %v5815_v6, %v6870_v24  ;;  %v6916_v32 = vld [vmem:[#allocation33_spill] sm:$0xff]  ;;  %v6919_v10 = vld [vmem:[#allocation19_spill] sm:$0xff] }
 0x4b2   : > { %v1815_v55 = vmul.f32 %v5813_v15, %v6876_v35  ;;  %v1738_v48 = vmul.f32 %v5767_v50, %v6883_v8  ;;  %v4100_v2 = vpack.i.bf16 %v1791_v41, %v1790_v0  ;;  %v4110_v3 = vpack.i.bf16 %v1803_v30, %v1802_v33 }
 0x4b3   : > { %v1741_v56 = vmul.f32 %v5815_v6, %v6883_v8  ;;  %v1826_v45 = vmul.f32 %v5815_v6, %v6864_v36  ;;  %v1827_v22 = vmul.f32 %v5813_v15, %v6878_v38  ;;  %v6897_v24 = vpack.i.bf16 %v5796_v60, %v5790_v46  ;;  %v6899_v8 = vld [vmem:[#allocation28_spill] sm:$0xff]  ;;  %v6901_v6 = vld [vmem:[#allocation22_spill] sm:$0xff]  ;;  %v6905_v60 = vld [vmem:[#allocation31_spill] sm:$0xff] }
 0x4b4   : > { %3976 = vrot.lane.b32.xlu1 %v6895_v52, %s4587_s19  ;;  %v4120_v51 = vpack.i.bf16 %v1815_v55, %v1814_v25  ;;  %v6898_v12 = vpack.i.bf16 %v5807_v40, %v5803_v49  ;;  %v6900_v36 = vpack.i.bf16 %v5822_v54, %v6899_v8  ;;  %v6902_v38 = vld [vmem:[#allocation30_spill] sm:$0xff]  ;;  %v6904_v46 = vpack.i.bf16 %v5842_v63, %v5836_v27  ;;  %v6907_v40 = vld [vmem:[#allocation24_spill] sm:$0xff] }
 0x4b5   : > { %3971 = vrot.lane.b32.xlu0 %v6896_v17, %s4586_s2  ;;  %v4130_v35 = vpack.i.bf16 %v1741_v56, %v1738_v48  ;;  %v4140_v26 = vpack.i.bf16 %v1827_v22, %v1826_v45  ;;  %v6903_v15 = vpack.i.bf16 %v6901_v6, %v6902_v38  ;;  %v6906_v49 = vpack.i.bf16 %v5850_v29, %v6905_v60 }
 0x4b6   : > { %v6908_v54 = vpack.i.bf16 %v5861_v9, %v6907_v40  ;;  %v6911_v20 = vpack.i.bf16 %v6909_v19, %v6910_v42  ;;  %v6912_v63 = vpack.i.bf16 %v5884_v37, %v5878_v21  ;;  %v6913_v29 = vpack.i.bf16 %v5892_v16, %v5888_v59  ;;  %v6918_v37 = vld [vmem:[#allocation18_spill] sm:$0xff] }
 0x4b7   : > { %v6914_v9 = vpack.i.bf16 %v5902_v28, %v5898_v18  ;;  %v6915_v27 = vpack.i.bf16 %v5767_v50, %v5765_v53  ;;  %v6917_v21 = vpack.i.bf16 %v5920_v5, %v6916_v32  ;;  %v6920_v16 = vpack.i.bf16 %v6918_v37, %v6919_v10  ;;  %v6923_v50 = vld [vmem:[#allocation21_spill] sm:$0xff] }
 0x4b8   : > { %3986 = vrot.lane.b32.xlu1 %v6897_v24, %s4588_s26  ;;  %v6921_v18 = vpack.i.bf16 %v5941_v58, %v5935_v34  ;;  %v6922_v53 = vpack.i.bf16 %v5949_v1, %v5945_v4  ;;  %v6924_v5 = vpack.i.bf16 %v5959_v57, %v6923_v50 }
 0x4b9   : > { %3981 = vrot.lane.b32.xlu0 %v6898_v12, %s4587_s19 }
 0x4bc   : > { %4011 = vrot.lane.b32.xlu1 %v6900_v36, %s4584_s13 }
 0x4bd   : > { %3991 = vrot.lane.b32.xlu0 %v6903_v15, %s4588_s26 }
 0x4c0   : > { %4021 = vrot.lane.b32.xlu1 %v6904_v46, %s4578_s22 }
 0x4c1   : > { %3996 = vrot.lane.b32.xlu0 %v6906_v49, %s4583_s11 }
 0x4c4   : > { %4026 = vrot.lane.b32.xlu1 %v6908_v54, %s4585_s17 }
 0x4c5   : > { %4001 = vrot.lane.b32.xlu0 %v6911_v20, %s4583_s11 }
 0x4c8   : > { %4031 = vrot.lane.b32.xlu1 %v6912_v63, %s4577_s29 }
 0x4c9   : > { %4006 = vrot.lane.b32.xlu0 %v6913_v29, %s4584_s13 }
 0x4cc   : > { %4036 = vrot.lane.b32.xlu1 %v6914_v9, %s4586_s2 }
 0x4cd   : > { %4016 = vrot.lane.b32.xlu0 %v6915_v27, %s4582_s27 }
 0x4d0   : > { %4041 = vrot.lane.b32.xlu1 %v6917_v21, %s4587_s19 }
 0x4d1   : > { %4066 = vrot.lane.b32.xlu0 %v6920_v16, %s4578_s22 }
 0x4d4   : > { %4046 = vrot.lane.b32.xlu1 %v6921_v18, %s4588_s26 }
 0x4d5   : > { %4076 = vrot.lane.b32.xlu0 %v6922_v53, %s4585_s17 }
 0x4d8   : > { %4051 = vrot.lane.b32.xlu1 %v6924_v5, %s4583_s11 }
 0x4d9   : > { %4086 = vrot.lane.b32.xlu0 %v4085_v43, %s4577_s29 }
 0x4dc   : > { %4056 = vrot.lane.b32.xlu1 %v4055_v31, %s4584_s13 }
 0x4dd   : > { %4096 = vrot.lane.b32.xlu0 %v4095_v13, %s4586_s2 }
 0x4e0   : > { %4061 = vrot.lane.b32.xlu1 %v4060_v11, %s4582_s27 }
 0x4e1   : > { %4106 = vrot.lane.b32.xlu0 %v4105_v23, %s4587_s19 }
 0x4e4   : > { %4071 = vrot.lane.b32.xlu1 %v4070_v44, %s4578_s22  ;;  %s396_s22 = sand.u32 1, %s4559_s16  }
 0x4e5   : > { %4116 = vrot.lane.b32.xlu0 %v4115_v7, %s4588_s26  ;;  %s3104_s14 = sshll.u32 %s396_s22, 6 }
 0x4e6   : > { %s6683_s27 = scalar_lea.vmem [#allocation9], %s3104_s14 }
 0x4e8   : > { %4081 = vrot.lane.b32.xlu1 %v4080_v47, %s4585_s17 }
 0x4e9   : > { %4126 = vrot.lane.b32.xlu0 %v4125_v14, %s4583_s11 }
 0x4ec   : > { %4091 = vrot.lane.b32.xlu1 %v4090_v62, %s4577_s29 }
 0x4ed   : > { %4136 = vrot.lane.b32.xlu0 %v4135_v39, %s4584_s13 }
 0x4f0   : > { %4101 = vrot.lane.b32.xlu1 %v4100_v2, %s4586_s2 }
 0x4f4   : > { %4111 = vrot.lane.b32.xlu1 %v4110_v3, %s4587_s19 }
 0x4f8   : > { %4121 = vrot.lane.b32.xlu1 %v4120_v51, %s4588_s26  ;;  %s4591_s26 = smov [#allocation9]  }
 0x4f9   : > { %s4501_s21 = sshll.u32 %s4591_s26, 4  ;;  %s4502_s21 = int_to_ptr.vmem [resolvable:$false] %s4501_s21 }
 0x4fa   : > { %s4503_s30 = scalar_lea.vmem %s4502_s21, 2048 }
 0x4fc   : > { %4131 = vrot.lane.b32.xlu1 %v4130_v35, %s4583_s11 }
 0x500   : > { %4141 = vrot.lane.b32.xlu1 %v4140_v26, %s4584_s13 }
 0x503   : > { %v3887_v34 = vpop.permute.xlu0 %3886 }
 0x504   : > { %v3889_v59 = vunpack.i.h.bf16 %v3887_v34  ;;  %v3888_v28 = vunpack.i.l.bf16 %v3887_v34 }
 0x506   : > { %v1984_v57 = vsel %vm442_vm7, %v3888_v28, %v3889_v59  ;;  %v3892_v23 = vpop.permute.xlu1 %3891 }
 0x507   : > { %v4145_v4 = vpack.i.bf16 %v3889_v59, %v1984_v57  ;;  %v3894_v58 = vunpack.i.h.bf16 %v3892_v23  ;;  %v3893_v1 = vunpack.i.l.bf16 %v3892_v23  ;;  %v3897_v43 = vpop.permute.xlu0 %3896 }
 0x508   : > { %v3899_v31 = vunpack.i.h.bf16 %v3897_v43  ;;  %v3898_v11 = vunpack.i.l.bf16 %v3897_v43 }
 0x509   : > { %v1865_v13 = vsel %vm535_vm3, %v3893_v1, %v3894_v58  ;;  %4146 = vrot.lane.b32.xlu0 %v4145_v4, %s4583_s11 }
 0x50a   : > { %v1909_v44 = vsel %vm756_vm8, %v3898_v11, %v3899_v31  ;;  %v6162_v7 = vpop.permute.xlu1 %3921  ;;  %v4150_v47 = vpack.i.bf16 %v3894_v58, %v1865_v13 }
 0x50b   : > { %v4155_v14 = vpack.i.bf16 %v3899_v31, %v1909_v44  ;;  %v3902_v61 = vpop.permute.xlu0 %3901  ;;  %v3923_v43 = vunpack.i.l.bf16 %v6162_v7 }
 0x50c   : > { %v3904_v0 = vunpack.i.h.bf16 %v3902_v61  ;;  %v3903_v52 = vunpack.i.l.bf16 %v3902_v61 }
 0x50d   : > { %4156 = vrot.lane.b32.xlu1 %v4155_v14, %s4583_s11  ;;  %4151 = vrot.lane.b32.xlu0 %v4150_v47, %s4583_s11 }
 0x50e   : > { %v1953_v62 = vsel %vm473_vm1, %v3903_v52, %v3904_v0  ;;  %v6167_v41 = vpop.permute.xlu1 %3926 }
 0x50f   : > { %v4160_v33 = vpack.i.bf16 %v3904_v0, %v1953_v62  ;;  %v6169_v30 = vpop.permute.xlu0 %3906 }
 0x511   : > { %4161 = vrot.lane.b32.xlu0 %v4160_v33, %s4583_s11 }
 0x512   : > { %v3932_v17 = vpop.permute.xlu1 %3931 }
 0x513   : > { %v3934_v39 = vunpack.i.h.bf16 %v3932_v17  ;;  %v3933_v25 = vunpack.i.l.bf16 %v3932_v17  ;;  %v6172_v55 = vpop.permute.xlu0 %3911 }
 0x515   : > { %v1985_v48 = vsel %vm442_vm7, %v3933_v25, %v3934_v39  ;;  %v4165_v2 = vpack.i.bf16 %v3933_v25, %v3888_v28 }
 0x516   : > { %v4170_v3 = vpack.i.bf16 %v3934_v39, %v1985_v48  ;;  %v3937_v56 = vpop.permute.xlu1 %3936 }
 0x517   : > { %v3939_v45 = vunpack.i.h.bf16 %v3937_v56  ;;  %v3938_v51 = vunpack.i.l.bf16 %v3937_v56  ;;  %4166 = vrot.lane.b32.xlu0 %v4165_v2, %s4583_s11  ;;  %v6176_v22 = vpop.permute.xlu0 %3916 }
 0x518   : > { %4171 = vrot.lane.b32.xlu1 %v4170_v3, %s4583_s11 }
 0x519   : > { %v1867_v24 = vsel %vm535_vm3, %v3938_v51, %v3939_v45 }
 0x51a   : > { %v4175_v35 = vpack.i.bf16 %v3939_v45, %v1867_v24  ;;  %v3947_v12 = vpop.permute.xlu1 %3946 }
 0x51b   : > { %v3942_v26 = vpop.permute.xlu0 %3941  ;;  %v3949_v8 = vunpack.i.h.bf16 %v3947_v12  ;;  %v3948_v36 = vunpack.i.l.bf16 %v3947_v12 }
 0x51c   : > { %v3944_v6 = vunpack.i.h.bf16 %v3942_v26  ;;  %v3943_v38 = vunpack.i.l.bf16 %v3942_v26  ;;  %4176 = vrot.lane.b32.xlu1 %v4175_v35, %s4583_s11 }
 0x51d   : > { %v1911_v42 = vsel %vm756_vm8, %v3948_v36, %v3949_v8 }
 0x51e   : > { %v1866_v15 = vsel %vm535_vm3, %v3944_v6, %v3938_v51  ;;  %v1864_v46 = vsel %vm535_vm3, %v3943_v38, %v3893_v1  ;;  %v3957_v60 = vpop.permute.xlu1 %3956  ;;  %v4185_v32 = vpack.i.bf16 %v3949_v8, %v1911_v42  ;;  %v3924_v1 = vunpack.i.h.bf16 %v6162_v7 }
 0x51f   : > { %v3959_v49 = vunpack.i.h.bf16 %v3957_v60  ;;  %v3958_v40 = vunpack.i.l.bf16 %v3957_v60  ;;  %v3952_v54 = vpop.permute.xlu0 %3951  ;;  %v4180_v19 = vpack.i.bf16 %v1866_v15, %v1864_v46 }
 0x520   : > { %v3954_v20 = vunpack.i.h.bf16 %v3952_v54  ;;  %v3953_v63 = vunpack.i.l.bf16 %v3952_v54  ;;  %v2393_v14 = vsel %vm659_vm0, %v3923_v43, %v3924_v1 }
 0x521   : > { %v1955_v29 = vsel %vm473_vm1, %v3958_v40, %v3959_v49  ;;  %4181 = vrot.lane.b32.xlu0 %v4180_v19, %s4583_s11 }
 0x522   : > { %v4195_v9 = vpack.i.bf16 %v3959_v49, %v1955_v29  ;;  %v6186_v27 = vpop.permute.xlu1 %3966  ;;  %v1910_v37 = vsel %vm756_vm8, %v3954_v20, %v3948_v36  ;;  %v1908_v10 = vsel %vm756_vm8, %v3953_v63, %v3898_v11 }
 0x523   : > { %v3962_v21 = vpop.permute.xlu0 %3961  ;;  %v4190_v5 = vpack.i.bf16 %v1910_v37, %v1908_v10 }
 0x524   : > { %v3964_v16 = vunpack.i.h.bf16 %v3962_v21  ;;  %v3963_v18 = vunpack.i.l.bf16 %v3962_v21  ;;  %4196 = vrot.lane.b32.xlu1 %v4195_v9, %s4583_s11 }
 0x525   : > { %4186 = vrot.lane.b32.xlu0 %v4185_v32, %s4583_s11 }
 0x526   : > { %v6192_v53 = vpop.permute.xlu1 %3976  ;;  %v1954_v34 = vsel %vm473_vm1, %v3964_v16, %v3958_v40  ;;  %v1952_v59 = vsel %vm473_vm1, %v3963_v18, %v3903_v52 }
 0x527   : > { %v6194_v50 = vpop.permute.xlu0 %3971  ;;  %v4200_v23 = vpack.i.bf16 %v1954_v34, %v1952_v59 }
 0x529   : > { %4191 = vrot.lane.b32.xlu0 %v4190_v5, %s4583_s11 }
 0x52a   : > { %v6199_v28 = vpop.permute.xlu1 %3986 }
 0x52b   : > { %v6201_v57 = vpop.permute.xlu0 %3981 }
 0x52d   : > { %4201 = vrot.lane.b32.xlu0 %v4200_v23, %s4583_s11 }
 0x52e   : > { %v4012_v4 = vpop.permute.xlu1 %4011 }
 0x52f   : > { %v6204_v58 = vpop.permute.xlu0 %3991  ;;  %v4014_v17 = vunpack.i.h.bf16 %v4012_v4  ;;  %v4013_v39 = vunpack.i.l.bf16 %v4012_v4 }
 0x531   : > { %v6222_v45 = vsel %vm1008_vm12, %v4013_v39, %v4014_v17 }
 0x532   : > { %v6208_v31 = vpop.permute.xlu1 %4021 }
 0x533   : > { %v3997_v11 = vpop.permute.xlu0 %3996  ;;  %v4024_v35 = vunpack.i.h.bf16 %v6208_v31  ;;  %v4023_v12 = vunpack.i.l.bf16 %v6208_v31 }
 0x534   : > { %v3999_v13 = vunpack.i.h.bf16 %v3997_v11  ;;  %v3998_v44 = vunpack.i.l.bf16 %v3997_v11 }
 0x535   : > { %v1869_v46 = vsel %vm535_vm3, %v4023_v12, %v4024_v35 }
 0x536   : > { %v6210_v47 = vpop.permute.xlu1 %4026  ;;  %v2395_v61 = vsel %vm659_vm0, %v3998_v44, %v3999_v13  ;;  %v4210_v29 = vpack.i.bf16 %v4024_v35, %v1869_v46 }
 0x537   : > { %v4002_v0 = vpop.permute.xlu0 %4001  ;;  %v3197_v52 = vpack.c.bf16 %v2395_v61, %v2393_v14  ;;  %v4029_v40 = vunpack.i.h.bf16 %v6210_v47  ;;  %v4028_v54 = vunpack.i.l.bf16 %v6210_v47 }
 0x538   : > { %v4004_v62 = vunpack.i.h.bf16 %v4002_v0  ;;  %v4003_v33 = vunpack.i.l.bf16 %v4002_v0  ;;  %v3969_v0 = vunpack.i.h.bf16 %v6186_v27 }
 0x539   : > { %3198 = vmatprep.subr.bf16.mxu1 %v3197_v52  ;;  %v1913_v21 = vsel %vm756_vm8, %v4028_v54, %v4029_v40  ;;  %v3974_v52 = vunpack.i.h.bf16 %v6194_v50 }
 0x53a   : > { %v6214_v25 = vpop.permute.xlu1 %4031  ;;  %v2392_v7 = vsel %vm659_vm0, %v4003_v33, %v3923_v43  ;;  %v2394_v48 = vsel %vm659_vm0, %v4004_v62, %v3998_v44  ;;  %v4215_v18 = vpack.i.bf16 %v4029_v40, %v1913_v21  ;;  %v3973_v62 = vunpack.i.l.bf16 %v6194_v50 }
 0x53b   : > { %v6218_v2 = vpop.permute.xlu0 %4006  ;;  %v3199_v3 = vpack.c.bf16 %v2394_v48, %v2392_v7  ;;  %v4034_v37 = vunpack.i.h.bf16 %v6214_v25  ;;  %v4033_v10 = vunpack.i.l.bf16 %v6214_v25  ;;  %v3968_v50 = vunpack.i.l.bf16 %v6186_v27 }
 0x53c   : > { %v4009_v56 = vunpack.i.h.bf16 %v6218_v2  ;;  %v2027_v40 = vsel %vm873_vm9, %v3973_v62, %v3974_v52 }
 0x53d   : > { %3200 = vmatpush1.bf16.msra.mxu1 %v3199_v3  ;;  %v1957_v34 = vsel %vm473_vm1, %v4033_v10, %v4034_v37 }
 0x53e   : > { %v6227_v51 = vsel %vm1008_vm12, %v4009_v56, %v4013_v39  ;;  %v6229_v24 = vpop.permute.xlu1 %4036  ;;  %v4220_v23 = vpack.i.bf16 %v4034_v37, %v1957_v34 }
 0x53f   : > { %v4360_v26 = vpack.i.bf16 %v6222_v45, %v6227_v51  ;;  %v4017_v8 = vpop.permute.xlu0 %4016 }
 0x540   : > { %v4019_v36 = vunpack.i.h.bf16 %v4017_v8  ;;  %v4018_v6 = vunpack.i.l.bf16 %v4017_v8 }
 0x542   : > { %v1986_v38 = vsel %vm442_vm7, %v4018_v6, %v4019_v36  ;;  %v6236_v15 = vpop.permute.xlu1 %4041 }
 0x543   : > { %v4205_v60 = vpack.i.bf16 %v4019_v36, %v1986_v38  ;;  %v4067_v49 = vpop.permute.xlu0 %4066  ;;  %v4043_v27 = vunpack.i.l.bf16 %v6236_v15 }
 0x544   : > { %v4069_v19 = vunpack.i.h.bf16 %v4067_v49  ;;  %v4068_v42 = vunpack.i.l.bf16 %v4067_v49  ;;  %v2026_v49 = vsel %vm873_vm9, %v3969_v0, %v3973_v62 }
 0x545   : > { %4206 = vrot.lane.b32.xlu1 %v4205_v60, %s4583_s11 }
 0x546   : > { %v1871_v20 = vsel %vm535_vm3, %v4068_v42, %v4069_v19  ;;  %v6243_v63 = vpop.permute.xlu1 %4046 }
 0x547   : > { %v4225_v9 = vpack.i.bf16 %v4069_v19, %v1871_v20  ;;  %v6245_v32 = vpop.permute.xlu0 %4076 }
 0x548   : > { %v4079_v39 = vunpack.i.h.bf16 %v6245_v32  ;;  %v4078_v8 = vunpack.i.l.bf16 %v6245_v32 }
 0x549   : > { %4211 = vrot.lane.b32.xlu1 %v4210_v29, %s4583_s11  ;;  %4226 = vrot.lane.b32.xlu0 %v4225_v9, %s4583_s11 }
 0x54a   : > { %v6252_v16 = vpop.permute.xlu1 %4051  ;;  %v1915_v37 = vsel %vm756_vm8, %v4078_v8, %v4079_v39 }
 0x54b   : > { %v6254_v5 = vpop.permute.xlu0 %4086  ;;  %v4054_v7 = vunpack.i.h.bf16 %v6252_v16  ;;  %v4053_v48 = vunpack.i.l.bf16 %v6252_v16 }
 0x54d   : > { %4216 = vrot.lane.b32.xlu1 %v4215_v18, %s4583_s11  ;;  %v2397_v32 = vsel %vm659_vm0, %v4053_v48, %v4054_v7 }
 0x54e   : > { %v6260_v59 = vpop.permute.xlu1 %4056 }
 0x54f   : > { %v6262_v4 = vpop.permute.xlu0 %4096 }
 0x550   : > { %v4098_v52 = vunpack.i.l.bf16 %v6262_v4 }
 0x551   : > { %4221 = vrot.lane.b32.xlu1 %v4220_v23, %s4583_s11 }
 0x552   : > { %v4062_v1 = vpop.permute.xlu1 %4061 }
 0x553   : > { %v4063_v43 = vunpack.i.l.bf16 %v4062_v1  ;;  %v6265_v31 = vpop.permute.xlu0 %4106  ;;  %v4064_v44 = vunpack.i.h.bf16 %v4062_v1  ;;  %v3908_v1 = vunpack.i.l.bf16 %v6169_v30 }
 0x554   : > { %v4109_v16 = vunpack.i.h.bf16 %v6265_v31 }
 0x555   : > { %v4240_v11 = vpack.i.bf16 %v4063_v43, %v4018_v6  ;;  %v1987_v36 = vsel %vm442_vm7, %v4063_v43, %v4064_v44  ;;  %v4088_v43 = vunpack.i.l.bf16 %v6254_v5 }
 0x556   : > { %v4072_v13 = vpop.permute.xlu1 %4071  ;;  %v4235_v20 = vpack.i.bf16 %v4064_v44, %v1987_v36  ;;  %v4245_v44 = vpack.i.bf16 %v4079_v39, %v1915_v37  ;;  %v4038_v39 = vunpack.i.l.bf16 %v6229_v24 }
 0x557   : > { %v4074_v47 = vunpack.i.h.bf16 %v4072_v13  ;;  %v4073_v14 = vunpack.i.l.bf16 %v4072_v13  ;;  %4241 = vrot.lane.b32.xlu1 %v4240_v11, %s4583_s11  ;;  %v6268_v61 = vpop.permute.xlu0 %4116  ;;  %v4260_v13 = vpack.i.bf16 %v2027_v40, %v2026_v49  ;;  %v3978_v49 = vunpack.i.l.bf16 %v6192_v53 }
 0x558   : > { %v3914_v40 = vunpack.i.h.bf16 %v6172_v55 }
 0x559   : > { %v1868_v33 = vsel %vm535_vm3, %v4073_v14, %v4023_v12  ;;  %v1870_v17 = vsel %vm535_vm3, %v4074_v47, %v4068_v42  ;;  %v4089_v14 = vunpack.i.h.bf16 %v6254_v5 }
 0x55a   : > { %v4230_v3 = vpack.i.bf16 %v1870_v17, %v1868_v33  ;;  %v4082_v35 = vpop.permute.xlu1 %4081  ;;  %v4039_v17 = vunpack.i.h.bf16 %v6229_v24 }
 0x55b   : > { %v4084_v6 = vunpack.i.h.bf16 %v4082_v35  ;;  %v4083_v38 = vunpack.i.l.bf16 %v4082_v35  ;;  %v6280_v46 = vpop.permute.xlu0 %4126  ;;  %v1959_v25 = vsel %vm473_vm1, %v4088_v43, %v4089_v14 }
 0x55c   : > { %v4129_v12 = vunpack.i.h.bf16 %v6280_v46  ;;  %v4128_v60 = vunpack.i.l.bf16 %v6280_v46  ;;  %4231 = vrot.lane.b32.xlu0 %v4230_v3, %s4583_s11  ;;  %v2028_v35 = vsel %vm873_vm9, %v4038_v39, %v4039_v17  ;;  %v4265_v36 = vpack.i.bf16 %v4089_v14, %v1959_v25 }
 0x55d   : > { %v1912_v19 = vsel %vm756_vm8, %v4083_v38, %v4028_v54  ;;  %v1914_v42 = vsel %vm756_vm8, %v4084_v6, %v4078_v8  ;;  %v3909_v54 = vunpack.i.h.bf16 %v6169_v30  ;;  %v3983_v8 = vunpack.i.l.bf16 %v6201_v57 }
 0x55e   : > { %v4255_v29 = vpack.i.bf16 %v1914_v42, %v1912_v19  ;;  %v4092_v9 = vpop.permute.xlu1 %4091  ;;  %v2399_v21 = vsel %vm659_vm0, %v4128_v60, %v4129_v12  ;;  %v4099_v6 = vunpack.i.h.bf16 %v6262_v4  ;;  %v3979_v12 = vunpack.i.h.bf16 %v6192_v53 }
 0x55f   : > { %v4094_v18 = vunpack.i.h.bf16 %v4092_v9  ;;  %v4093_v34 = vunpack.i.l.bf16 %v4092_v9  ;;  %v3201_v23 = vpack.c.bf16 %v2399_v21, %v2397_v32  ;;  %v2025_v11 = vsel %vm873_vm9, %v3909_v54, %v3968_v50 }
 0x560   : > { %4256 = vrot.lane.b32.xlu1 %v4255_v29, %s4583_s11  ;;  %4236 = vrot.lane.b32.xlu0 %v4235_v20, %s4583_s11  ;;  %v2024_v30 = vsel %vm873_vm9, %v3908_v1, %v3909_v54  ;;  %v3984_v50 = vunpack.i.h.bf16 %v6201_v57  ;;  %v3913_v19 = vunpack.i.l.bf16 %v6172_v55  ;;  %v4270_v4 = vpack.i.bf16 %v3969_v0, %v3908_v1 }
 0x561   : > { %3202 = vmatprep.subr.bf16.mxu1 %v3201_v23  ;;  %v1956_v62 = vsel %vm473_vm1, %v4093_v34, %v4033_v10  ;;  %v1958_v33 = vsel %vm473_vm1, %v4094_v18, %v4088_v43  ;;  %v4250_v3 = vpack.i.bf16 %v2025_v11, %v2024_v30  ;;  %v2029_v10 = vsel %vm873_vm9, %v4039_v17, %v4098_v52 }
 0x562   : > { %v6305_v47 = vpop.permute.xlu1 %4101  ;;  %v4275_v7 = vpack.i.bf16 %v1958_v33, %v1956_v62  ;;  %v4280_v24 = vpack.i.bf16 %v2029_v10, %v2028_v35  ;;  %v2070_v42 = vsel %vm918_vm10, %v3979_v12, %v3983_v8  ;;  %v4285_v20 = vpack.i.bf16 %v4099_v6, %v4038_v39 }
 0x563   : > { %v2071_v57 = vsel %vm918_vm10, %v3983_v8, %v3984_v50  ;;  %v4108_v9 = vunpack.i.l.bf16 %v6265_v31  ;;  %v2069_v21 = vsel %vm918_vm10, %v3914_v40, %v3978_v49  ;;  %v4044_v55 = vunpack.i.h.bf16 %v6236_v15 }
 0x564   : > { %4261 = vrot.lane.b32.xlu1 %v4260_v13, %s4583_s11  ;;  %4246 = vrot.lane.b32.xlu0 %v4245_v44, %s4583_s11  ;;  %v2068_v18 = vsel %vm918_vm10, %v3913_v19, %v3914_v40  ;;  %v4295_v34 = vpack.i.bf16 %v2071_v57, %v2070_v42  ;;  %v4104_v43 = vunpack.i.h.bf16 %v6305_v47  ;;  %v4103_v11 = vunpack.i.l.bf16 %v6305_v47  ;;  %v6362_v44 = vpop.permute.xlu0 %4136 }
 0x565   : > { %v2073_v54 = vsel %vm918_vm10, %v4044_v55, %v4108_v9  ;;  %v4290_v1 = vpack.i.bf16 %v2069_v21, %v2068_v18  ;;  %v2072_v15 = vsel %vm918_vm10, %v4043_v27, %v4044_v55  ;;  %v4300_v46 = vpack.i.bf16 %v3979_v12, %v3913_v19 }
 0x566   : > { %v6318_v5 = vpop.permute.xlu1 %4111  ;;  %v3993_v13 = vunpack.i.l.bf16 %v6204_v58  ;;  %v3988_v14 = vunpack.i.l.bf16 %v6199_v28  ;;  %v2030_v47 = vsel %vm873_vm9, %v4099_v6, %v4103_v11  ;;  %v2031_v52 = vsel %vm873_vm9, %v4103_v11, %v4104_v43 }
 0x567   : > { %v3989_v62 = vunpack.i.h.bf16 %v6199_v28  ;;  %v3919_v31 = vunpack.i.h.bf16 %v6176_v22  ;;  %v3918_v33 = vunpack.i.l.bf16 %v6176_v22  ;;  %v4310_v30 = vpack.i.bf16 %v4109_v16, %v4043_v27 }
 0x568   : > { %4276 = vrot.lane.b32.xlu1 %v4275_v7, %s4583_s11  ;;  %4251 = vrot.lane.b32.xlu0 %v4250_v3, %s4583_s11  ;;  %v4118_v39 = vunpack.i.l.bf16 %v6268_v61  ;;  %v4315_v7 = vpack.i.bf16 %v2031_v52, %v2030_v47  ;;  %v4114_v10 = vunpack.i.h.bf16 %v6318_v5  ;;  %v4113_v28 = vunpack.i.l.bf16 %v6318_v5 }
 0x569   : > { %v2113_v25 = vsel %vm963_vm11, %v3919_v31, %v3988_v14  ;;  %v4049_v35 = vunpack.i.h.bf16 %v6243_v63  ;;  %v4048_v22 = vunpack.i.l.bf16 %v6243_v63  ;;  %v2112_v8 = vsel %vm963_vm11, %v3918_v33, %v3919_v31 }
 0x56a   : > { %v6327_v38 = vpop.permute.xlu1 %4121  ;;  %v4320_v50 = vpack.i.bf16 %v2113_v25, %v2112_v8  ;;  %v2074_v12 = vsel %vm918_vm10, %v4109_v16, %v4113_v28  ;;  %v2075_v5 = vsel %vm918_vm10, %v4113_v28, %v4114_v10  ;;  %v4119_v63 = vunpack.i.h.bf16 %v6268_v61 }
 0x56b   : > { %v2117_v6 = vsel %vm963_vm11, %v4049_v35, %v4118_v39  ;;  %v2116_v49 = vsel %vm963_vm11, %v4048_v22, %v4049_v35  ;;  %v3929_v57 = vunpack.i.h.bf16 %v6167_v41  ;;  %v3928_v9 = vunpack.i.l.bf16 %v6167_v41 }
 0x56c   : > { %4281 = vrot.lane.b32.xlu1 %v4280_v24, %s4583_s11  ;;  %4266 = vrot.lane.b32.xlu0 %v4265_v36, %s4583_s11  ;;  %v4340_v40 = vpack.i.bf16 %v2117_v6, %v2116_v49  ;;  %v4008_v61 = vunpack.i.l.bf16 %v6218_v2  ;;  %v4335_v21 = vpack.i.bf16 %v3989_v62, %v3918_v33  ;;  %v4059_v55 = vunpack.i.h.bf16 %v6260_v59  ;;  %v6459_v49 = vld [vmem:[%s4812_s28 + $0x8] sm:$0xff] }
 0x56d   : > { %v4058_v27 = vunpack.i.l.bf16 %v6260_v59  ;;  %v4139_v45 = vunpack.i.h.bf16 %v6362_v44  ;;  %v4365_v35 = vpack.i.bf16 %v4009_v56, %v3928_v9 }
 0x56e   : > { %v4132_v29 = vpop.permute.xlu1 %4131 }
 0x56f   : > { %v4134_v53 = vunpack.i.h.bf16 %v4132_v29  ;;  %v4133_v32 = vunpack.i.l.bf16 %v4132_v29  ;;  %v4123_v29 = vunpack.i.l.bf16 %v6327_v38  ;;  %v4380_v10 = vpack.i.bf16 %v4139_v45, %v4058_v27 }
 0x570   : > { %4286 = vrot.lane.b32.xlu1 %v4285_v20, %s4583_s11  ;;  %4271 = vrot.lane.b32.xlu0 %v4270_v4, %s4583_s11  ;;  %v4330_v4 = vpack.i.bf16 %v2075_v5, %v2074_v12  ;;  %v4124_v20 = vunpack.i.h.bf16 %v6327_v38  ;;  %v4138_v38 = vunpack.i.l.bf16 %v6362_v44  ;;  %v6456_v5 = vld [vmem:[%s4812_s28 + $0x18] sm:$0xff] }
 0x571   : > { %v2396_v0 = vsel %vm659_vm0, %v4133_v32, %v4053_v48  ;;  %v2398_v37 = vsel %vm659_vm0, %v4134_v53, %v4128_v60  ;;  %v4305_v48 = vpack.i.bf16 %v2073_v54, %v2072_v15  ;;  %v3994_v60 = vunpack.i.h.bf16 %v6204_v58 }
 0x572   : > { %v3203_v23 = vpack.c.bf16 %v2398_v37, %v2396_v0  ;;  %v2114_v58 = vsel %vm963_vm11, %v3989_v62, %v3993_v13  ;;  %v6392_v19 = vpop.permute.xlu1 %4141  ;;  %v4350_v53 = vpack.i.bf16 %v4119_v63, %v4048_v22  ;;  %v2118_v0 = vsel %vm963_vm11, %v4119_v63, %v4123_v29 }
 0x573   : > { %v2115_v17 = vsel %vm963_vm11, %v3993_v13, %v3994_v60  ;;  %v2119_v37 = vsel %vm963_vm11, %v4123_v29, %v4124_v20  ;;  %v2157_v54 = vsel %vm1008_vm12, %v3929_v57, %v4008_v61  ;;  %v2161_v11 = vsel %vm1008_vm12, %v4059_v55, %v4138_v38  ;;  %v6472_v20 = vld [vmem:[%s4812_s28 + $0x28] sm:$0xff]  ;;  %v6475_v29 = vld [vmem:[%s4812_s28 + $0x38] sm:$0xff]  ;;  %v6483_v61 = vld [vmem:[%s4812_s28 + $0x30] sm:$0xff] }
 0x574   : > { %3204 = vmatpush1.bf16.msra.mxu1 %v3203_v23  ;;  %4296 = vrot.lane.b32.xlu1 %v4295_v34, %s4583_s11  ;;  %v4325_v36 = vpack.i.bf16 %v2115_v17, %v2114_v58  ;;  %v2156_v23 = vsel %vm1008_vm12, %v3928_v9, %v3929_v57  ;;  %v4345_v15 = vpack.i.bf16 %v2119_v37, %v2118_v0  ;;  %v6480_v9 = vld [vmem:[%s4812_s28 + $0x20] sm:$0xff] }
 0x575   : > { %4291 = vrot.lane.b32.xlu0 %v4290_v1, %s4583_s11  ;;  %v2160_v60 = vsel %vm1008_vm12, %v4058_v27, %v4059_v55  ;;  %v4355_v58 = vpack.i.bf16 %v2157_v54, %v2156_v23  ;;  %v3269_v63 = vpack.c.bf16 %v6456_v5, %v6459_v49  ;;  %v3273_v57 = vpack.c.bf16 %v6475_v29, %v6472_v20  ;;  %v2858_v55 = vld [vmem:[%s6760_s8] sm:$0x1] }
 0x576   : > { %v4370_v51 = vpack.i.bf16 %v2161_v11, %v2160_v60 }
 0x577   : > { %3270 = vmatprep.subr.bf16.mxu0 %v3269_v63 }
 0x578   : > { %4306 = vrot.lane.b32.xlu1 %v4305_v48, %s4583_s11 }
 0x579   : > { %4301 = vrot.lane.b32.xlu0 %v4300_v46, %s4583_s11  ;;  %v1721_v46 = vld [vmem:[#allocation8 + $0x8] sm:$0xff] }
 0x57a   : > { %2612 = vmatprep.mubr.f32.mxu1 %v1721_v46 }
 0x57b   : > { %v4147_v3 = vpop.permute.xlu0 %4146 }
 0x57c   : > { %4311 = vrot.lane.b32.xlu1 %v4310_v30, %s4583_s11  ;;  %v4149_v18 = vunpack.i.h.bf16 %v4147_v3  ;;  %v4148_v34 = vunpack.i.l.bf16 %v4147_v3  ;;  %v4143_v3 = vunpack.i.l.bf16 %v6392_v19 }
 0x57d   : > { %4316 = vrot.lane.b32.xlu0 %v4315_v7, %s4583_s11  ;;  %v4144_v7 = vunpack.i.h.bf16 %v6392_v19  ;;  %v6467_v19 = vld [vmem:[%s4812_s28] sm:$0xff] }
 0x57e   : > { %v6421_v13 = vsel %vm659_vm0, %v4148_v34, %v4149_v18  ;;  %v2162_v8 = vsel %vm1008_vm12, %v4139_v45, %v4143_v3 }
 0x57f   : > { %v6384_v24 = vpop.permute.xlu0 %4151  ;;  %v6403_v32 = vpop.permute.xlu1 %4156 }
 0x580   : > { %4326 = vrot.lane.b32.xlu1 %v4325_v36, %s4583_s11  ;;  %v4154_v47 = vunpack.i.h.bf16 %v6384_v24  ;;  %v4153_v52 = vunpack.i.l.bf16 %v6384_v24  ;;  %v2163_v36 = vsel %vm1008_vm12, %v4143_v3, %v4144_v7  ;;  %v4159_v60 = vunpack.i.h.bf16 %v6403_v32 }
 0x581   : > { %4321 = vrot.lane.b32.xlu0 %v4320_v50, %s4583_s11  ;;  %v4375_v50 = vpack.i.bf16 %v2163_v36, %v2162_v8 }
 0x582   : > { %v2401_v44 = vsel %vm659_vm0, %v4153_v52, %v4154_v47  ;;  %v4158_v47 = vunpack.i.l.bf16 %v6403_v32 }
 0x583   : > { %v6394_v42 = vpop.permute.xlu0 %4161 }
 0x584   : > { %4341 = vrot.lane.b32.xlu1 %v4340_v40, %s4583_s11  ;;  %v6464_v40 = vld [vmem:[%s4812_s28 + $0x10] sm:$0xff]  ;;  %s3124_s28 = sshll.u32 %s4672_s9, 10  ;;  %s6710_s9 = scalar_lea.sflag [#allocation5], %s396_s22 }
 0x585   : > { %4331 = vrot.lane.b32.xlu0 %v4330_v4, %s4583_s11  ;;  %v3271_v4 = vpack.c.bf16 %v6464_v40, %v6467_v19  ;;  %s6700_s2 = scalar_lea.hbm %s6762_s10, %s3124_s28 }
 0x587   : > { %3272 = vmatpush1.bf16.msra.mxu0 %v3271_v4 }
 0x588   : > { %4351 = vrot.lane.b32.xlu1 %v4350_v53, %s4583_s11  ;;  %v3275_v53 = vpack.c.bf16 %v6483_v61, %v6480_v9  ;;  %3274 = vmatprep.subr.bf16.mxu0 %v3273_v57 }
 0x589   : > { %4336 = vrot.lane.b32.xlu0 %v4335_v21, %s4583_s11  ;;  %v4167_v41 = vpop.permute.xlu0 %4166 }
 0x58a   : > { %v4169_v1 = vunpack.i.h.bf16 %v4167_v41  ;;  %v4168_v43 = vunpack.i.l.bf16 %v4167_v41  ;;  %v4172_v59 = vpop.permute.xlu1 %4171 }
 0x58b   : > { %v4174_v16 = vunpack.i.h.bf16 %v4172_v59  ;;  %v4173_v48 = vunpack.i.l.bf16 %v4172_v59  ;;  %3276 = vmatpush1.bf16.msra.mxu0 %v3275_v53 }
 0x58c   : > { %4361 = vrot.lane.b32.xlu1 %v4360_v26, %s4583_s11  ;;  %v6424_v14 = vsel %vm659_vm0, %v4168_v43, %v4148_v34 }
 0x58d   : > { %4346 = vrot.lane.b32.xlu0 %v4345_v15, %s4583_s11  ;;  %v6430_v62 = vsel %vm659_vm0, %v4173_v48, %v4174_v16  ;;  %v6433_v31 = vsel %vm659_vm0, %v4169_v1, %v4173_v48 }
 0x58e   : > { %v4177_v26 = vpop.permute.xlu1 %4176  ;;  %v3229_v33 = vpack.c.bf16 %v6430_v62, %v6421_v13  ;;  %v3231_v30 = vpack.c.bf16 %v6433_v31, %v6424_v14  ;;  %3117 = vmatmul.mubr.msk.f32.vlgmr.msra.gmra.mrb[8].mxu0 %vm1389_vm13, %v2858_v55 }
 0x58f   : > { %v4179_v17 = vunpack.i.h.bf16 %v4177_v26  ;;  %v4178_v39 = vunpack.i.l.bf16 %v4177_v26 }
 0x590   : > { %4371 = vrot.lane.b32.xlu1 %v4370_v51, %s4583_s11 }
 0x591   : > { %4356 = vrot.lane.b32.xlu0 %v4355_v58, %s4583_s11  ;;  %v2403_v25 = vsel %vm659_vm0, %v4178_v39, %v4179_v17 }
 0x592   : > { %v3205_v28 = vpack.c.bf16 %v2403_v25, %v2401_v44 }
 0x593   : > { %v4182_v22 = vpop.permute.xlu0 %4181 }
 0x594   : > { %4381 = vrot.lane.b32.xlu1 %v4380_v10, %s4583_s11  ;;  %3206 = vmatprep.subr.bf16.mxu1 %v3205_v28  ;;  %v4184_v6 = vunpack.i.h.bf16 %v4182_v22  ;;  %v4183_v24 = vunpack.i.l.bf16 %v4182_v22  ;;  %v2409_v28 = vsel %vm659_vm0, %v4158_v47, %v4159_v60 }
 0x595   : > { %4366 = vrot.lane.b32.xlu0 %v4365_v35, %s4583_s11 }
 0x596   : > { %v2400_v2 = vsel %vm659_vm0, %v4183_v24, %v4153_v52  ;;  %v2402_v56 = vsel %vm659_vm0, %v4184_v6, %v4178_v39  ;;  %v6491_v38 = vpop.permute.xlu1 %4196 }
 0x597   : > { %v3207_v12 = vpack.c.bf16 %v2402_v56, %v2400_v2  ;;  %v4187_v21 = vpop.permute.xlu0 %4186  ;;  %v4199_v8 = vunpack.i.h.bf16 %v6491_v38  ;;  %v4198_v36 = vunpack.i.l.bf16 %v6491_v38  ;;  %v4164_v56 = vunpack.i.h.bf16 %v6394_v42 }
 0x598   : > { %v4189_v48 = vunpack.i.h.bf16 %v4187_v21  ;;  %v4188_v46 = vunpack.i.l.bf16 %v4187_v21 }
 0x599   : > { %4376 = vrot.lane.b32.xlu0 %v4375_v50, %s4583_s11  ;;  %3208 = vmatpush1.bf16.msra.mxu1 %v3207_v12  ;;  %v4163_v50 = vunpack.i.l.bf16 %v6394_v42  ;;  %v2419_v38 = vsel %vm659_vm0, %v4198_v36, %v4199_v8  ;;  %s3001_s11 = sshll.u32 %s6683_s27, 4  ;;  %s6704_s11 = int_to_ptr.vmem [resolvable:$true] %s3001_s11 }
 0x59a   : > { %v2411_v39 = vsel %vm659_vm0, %v4188_v46, %v4189_v48  ;;  %s4497_s19 = scalar_lea.vmem %s6704_s11, 1024  ;;  %p4504_p4 = scmp.lt.s32.totalorder %s6704_s11, %s4502_s21 }
 0x59b   : > { %v4192_v27 = vpop.permute.xlu0 %4191  ;;  %v3213_v32 = vpack.c.bf16 %v2411_v39, %v2409_v28  ;;  %p4498_p13 = scmp.ne.s32.totalorder %s6704_s11, %s4497_s19  ;;  %p4505_p7 = scmp.lt.s32.totalorder %s4503_s30, %s4497_s19 }
 0x59c   : > { %v4194_v51 = vunpack.i.h.bf16 %v4192_v27  ;;  %v4193_v26 = vunpack.i.l.bf16 %v4192_v27 }
 0x59d   : > { %p4499_p2 = pnand %p4498_p13, %p6927_p1  ;;  %p4506_p8 = por %p4505_p7, %p4504_p4 }
 0x59e   : > { %v2408_v35 = vsel %vm659_vm0, %v4193_v26, %v4158_v47  ;;  %v2410_v22 = vsel %vm659_vm0, %v4194_v51, %v4188_v46 }
 0x59f   : > { %v6493_v0 = vpop.permute.xlu0 %4201  ;;  %v3215_v4 = vpack.c.bf16 %v2410_v22, %v2408_v35  ;;  %p4500_p3 = pneg %p4499_p2 }
 0x5a0   : > { %v4204_v55 = vunpack.i.h.bf16 %v6493_v0  ;;  %v4203_v27 = vunpack.i.l.bf16 %v6493_v0 }
 0x5a1   : > { %p4507_p11 = pnand %p4506_p8, %p4500_p3 }
 0x5a2   : > { %v2416_v48 = vsel %vm659_vm0, %v4203_v27, %v4163_v50  ;;  %v2418_v46 = vsel %vm659_vm0, %v4204_v55, %v4198_v36 }
 0x5b7   : > { %v6495_v37 = vpop.permute.xlu1 %4206 }
 0x5b8   : > { %v4209_v8 = vunpack.i.h.bf16 %v6495_v37  ;;  %v4208_v36 = vunpack.i.l.bf16 %v6495_v37 }
 0x5bb   : > { %v4212_v18 = vpop.permute.xlu1 %4211  ;;  %v4227_v34 = vpop.permute.xlu0 %4226 }
 0x5bc   : > { %v4214_v41 = vunpack.i.h.bf16 %v4212_v18  ;;  %v4213_v23 = vunpack.i.l.bf16 %v4212_v18  ;;  %v4229_v54 = vunpack.i.h.bf16 %v4227_v34  ;;  %v4228_v1 = vunpack.i.l.bf16 %v4227_v34 }
 0x5be   : > { %v2405_v43 = vsel %vm659_vm0, %v4213_v23, %v4214_v41  ;;  %v2407_v59 = vsel %vm659_vm0, %v4228_v1, %v4229_v54 }
 0x5bf   : > { %v3209_v11 = vpack.c.bf16 %v2407_v59, %v2405_v43  ;;  %v4217_v15 = vpop.permute.xlu1 %4216  ;;  %v2417_v59 = vsel %vm659_vm0, %v4163_v50, %v4164_v56 }
 0x5c0   : > { %v4219_v6 = vunpack.i.h.bf16 %v4217_v15  ;;  %v4218_v24 = vunpack.i.l.bf16 %v4217_v15 }
 0x5c1   : > { %3210 = vmatprep.subr.bf16.mxu1 %v3209_v11  ;;  %v3221_v11 = vpack.c.bf16 %v2419_v38, %v2417_v59 }
 0x5c2   : > { %v2413_v18 = vsel %vm659_vm0, %v4218_v24, %v4219_v6 }
 0x5c3   : > { %v6499_v16 = vpop.permute.xlu1 %4221 }
 0x5c4   : > { %v4224_v0 = vunpack.i.h.bf16 %v6499_v16  ;;  %v4223_v15 = vunpack.i.l.bf16 %v6499_v16 }
 0x5c9   : > { %v6503_v52 = vpop.permute.xlu1 %4241 }
 0x5ca   : > { %v4243_v56 = vunpack.i.l.bf16 %v6503_v52 }
 0x5cc   : > { %v2428_v62 = vsel %vm659_vm0, %v4243_v56, %v4208_v36 }
 0x5ce   : > { %v4232_v45 = vpop.permute.xlu0 %4231 }
 0x5cf   : > { %v4234_v58 = vunpack.i.h.bf16 %v4232_v45  ;;  %v4233_v17 = vunpack.i.l.bf16 %v4232_v45 }
 0x5d1   : > { %v2404_v7 = vsel %vm659_vm0, %v4233_v17, %v4213_v23  ;;  %v2406_v3 = vsel %vm659_vm0, %v4234_v58, %v4228_v1  ;;  %v3223_v17 = vpack.c.bf16 %v2418_v46, %v2416_v48 }
 0x5d2   : > { %v4257_v44 = vpop.permute.xlu1 %4256  ;;  %v6508_v25 = vpop.permute.xlu0 %4236  ;;  %v3211_v10 = vpack.c.bf16 %v2406_v3, %v2404_v7  ;;  %v2421_v7 = vsel %vm659_vm0, %v4223_v15, %v4224_v0 }
 0x5d3   : > { %v4258_v2 = vunpack.i.l.bf16 %v4257_v44  ;;  %v4259_v57 = vunpack.i.h.bf16 %v4257_v44  ;;  %v4239_v39 = vunpack.i.h.bf16 %v6508_v25  ;;  %v4238_v16 = vunpack.i.l.bf16 %v6508_v25 }
 0x5d4   : > { %3212 = vmatpush1.bf16.msra.mxu1 %v3211_v10 }
 0x5d5   : > { %3214 = vmatprep.subr.bf16.mxu1 %v3213_v32  ;;  %v2412_v42 = vsel %vm659_vm0, %v4258_v2, %v4218_v24  ;;  %v2431_v25 = vsel %vm659_vm0, %v4238_v16, %v4239_v39  ;;  %v4244_v2 = vunpack.i.h.bf16 %v6503_v52 }
 0x5d6   : > { %v6517_v12 = vpop.permute.xlu1 %4261  ;;  %v4247_v63 = vpop.permute.xlu0 %4246 }
 0x5d7   : > { %v4249_v53 = vunpack.i.h.bf16 %v4247_v63  ;;  %v4248_v21 = vunpack.i.l.bf16 %v4247_v63  ;;  %v4264_v63 = vunpack.i.h.bf16 %v6517_v12  ;;  %v2430_v27 = vsel %vm659_vm0, %v4244_v2, %v4238_v16 }
 0x5d8   : > { %3216 = vmatpush1.bf16.msra.mxu1 %v3215_v4  ;;  %v4263_v4 = vunpack.i.l.bf16 %v6517_v12  ;;  %v3235_v12 = vpack.c.bf16 %v2430_v27, %v2428_v62 }
 0x5d9   : > { %v2415_v34 = vsel %vm659_vm0, %v4248_v21, %v4249_v53  ;;  %v2414_v41 = vsel %vm659_vm0, %v4259_v57, %v4248_v21  ;;  %v2429_v57 = vsel %vm659_vm0, %v4208_v36, %v4209_v8 }
 0x5da   : > { %v4277_v23 = vpop.permute.xlu1 %4276  ;;  %v4252_v54 = vpop.permute.xlu0 %4251  ;;  %v3217_v1 = vpack.c.bf16 %v2415_v34, %v2413_v18  ;;  %v3219_v43 = vpack.c.bf16 %v2414_v41, %v2412_v42  ;;  %v3233_v55 = vpack.c.bf16 %v2431_v25, %v2429_v57  ;;  %v2435_v38 = vsel %vm659_vm0, %v4263_v4, %v4264_v63 }
 0x5db   : > { %v4278_v60 = vunpack.i.l.bf16 %v4277_v23  ;;  %v4279_v51 = vunpack.i.h.bf16 %v4277_v23  ;;  %v4254_v6 = vunpack.i.h.bf16 %v4252_v54  ;;  %v4253_v24 = vunpack.i.l.bf16 %v4252_v54 }
 0x5dc   : > { %3218 = vmatprep.subr.bf16.mxu1 %v3217_v1 }
 0x5dd   : > { %3220 = vmatpush1.bf16.msra.mxu1 %v3219_v43  ;;  %v2420_v44 = vsel %vm659_vm0, %v4278_v60, %v4223_v15  ;;  %v2433_v52 = vsel %vm659_vm0, %v4253_v24, %v4254_v6 }
 0x5de   : > { %v6531_v47 = vpop.permute.xlu1 %4281  ;;  %v4267_v45 = vpop.permute.xlu0 %4266  ;;  %3222 = vmatprep.subr.bf16.mxu1 %v3221_v11  ;;  %v3237_v18 = vpack.c.bf16 %v2435_v38, %v2433_v52 }
 0x5df   : > { %v4269_v26 = vunpack.i.h.bf16 %v4267_v45  ;;  %v4268_v58 = vunpack.i.l.bf16 %v4267_v45  ;;  %v4284_v41 = vunpack.i.h.bf16 %v6531_v47  ;;  %v4283_v14 = vunpack.i.l.bf16 %v6531_v47 }
 0x5e1   : > { %3224 = vmatpush1.bf16.msra.mxu1 %v3223_v17  ;;  %v2423_v3 = vsel %vm659_vm0, %v4268_v58, %v4269_v26  ;;  %v2422_v10 = vsel %vm659_vm0, %v4279_v51, %v4268_v58  ;;  %v2437_v45 = vsel %vm659_vm0, %v4283_v14, %v4284_v41 }
 0x5e2   : > { %v4287_v28 = vpop.permute.xlu1 %4286  ;;  %v4272_v32 = vpop.permute.xlu0 %4271  ;;  %v3225_v35 = vpack.c.bf16 %v2423_v3, %v2421_v7  ;;  %v3227_v22 = vpack.c.bf16 %v2422_v10, %v2420_v44 }
 0x5e3   : > { %v4274_v53 = vunpack.i.h.bf16 %v4272_v32  ;;  %v4273_v21 = vunpack.i.l.bf16 %v4272_v32  ;;  %v4288_v31 = vunpack.i.l.bf16 %v4287_v28  ;;  %v4289_v0 = vunpack.i.h.bf16 %v4287_v28 }
 0x5e4   : > { %3226 = vmatprep.subr.bf16.mxu1 %v3225_v35 }
 0x5e5   : > { %3228 = vmatpush1.bf16.msra.mxu1 %v3227_v22  ;;  %v2432_v34 = vsel %vm659_vm0, %v4273_v21, %v4253_v24  ;;  %v2434_v42 = vsel %vm659_vm0, %v4274_v53, %v4263_v4  ;;  %v2436_v47 = vsel %vm659_vm0, %v4288_v31, %v4283_v14 }
 0x5e6   : > { %v4297_v50 = vpop.permute.xlu1 %4296  ;;  %3230 = vmatprep.subr.bf16.mxu1 %v3229_v33  ;;  %v3239_v11 = vpack.c.bf16 %v2434_v42, %v2432_v34 }
 0x5e7   : > { %v4292_v37 = vpop.permute.xlu0 %4291  ;;  %v4298_v23 = vunpack.i.l.bf16 %v4297_v50 }
 0x5e8   : > { %v4294_v54 = vunpack.i.h.bf16 %v4292_v37  ;;  %v4293_v1 = vunpack.i.l.bf16 %v4292_v37 }
 0x5e9   : > { %3232 = vmatpush1.bf16.msra.mxu1 %v3231_v30  ;;  %v4299_v30 = vunpack.i.h.bf16 %v4297_v50 }
 0x5ea   : > { %v4307_v13 = vpop.permute.xlu1 %4306  ;;  %3234 = vmatprep.subr.bf16.mxu1 %v3233_v55  ;;  %v2441_v17 = vsel %vm659_vm0, %v4293_v1, %v4294_v54 }
 0x5eb   : > { %v4302_v33 = vpop.permute.xlu0 %4301  ;;  %v2443_v39 = vsel %vm659_vm0, %v4298_v23, %v4299_v30  ;;  %v4309_v44 = vunpack.i.h.bf16 %v4307_v13  ;;  %v4308_v10 = vunpack.i.l.bf16 %v4307_v13 }
 0x5ec   : > { %v4304_v46 = vunpack.i.h.bf16 %v4302_v33  ;;  %v4303_v60 = vunpack.i.l.bf16 %v4302_v33  ;;  %v3245_v32 = vpack.c.bf16 %v2443_v39, %v2441_v17  ;;  %v1720_v39 = vld [vmem:[#allocation8] sm:$0xff] }
 0x5ed   : > { %3236 = vmatpush1.bf16.msra.mxu1 %v3235_v12  ;;  %v2445_v37 = vsel %vm659_vm0, %v4308_v10, %v4309_v44 }
 0x5ee   : > { %v4312_v43 = vpop.permute.xlu1 %4311  ;;  %3238 = vmatprep.subr.bf16.mxu1 %v3237_v18  ;;  %v2440_v35 = vsel %vm659_vm0, %v4303_v60, %v4293_v1  ;;  %v2442_v22 = vsel %vm659_vm0, %v4304_v46, %v4298_v23 }
 0x5ef   : > { %v4317_v59 = vpop.permute.xlu0 %4316  ;;  %v4313_v28 = vunpack.i.l.bf16 %v4312_v43  ;;  %v4314_v56 = vunpack.i.h.bf16 %v4312_v43  ;;  %v3247_v4 = vpack.c.bf16 %v2442_v22, %v2440_v35 }
 0x5f0   : > { %v4319_v15 = vunpack.i.h.bf16 %v4317_v59  ;;  %v4318_v48 = vunpack.i.l.bf16 %v4317_v59 }
 0x5f1   : > { %3240 = vmatpush1.bf16.msra.mxu1 %v3239_v11  ;;  %v2444_v57 = vsel %vm659_vm0, %v4313_v28, %v4308_v10  ;;  %v1724_v28 = vld [vmem:[#allocation8 + $0x20] sm:$0xff] }
 0x5f2   : > { %v4327_v51 = vpop.permute.xlu1 %4326  ;;  %v2439_v26 = vsel %vm659_vm0, %v4318_v48, %v4319_v15  ;;  %v2438_v58 = vsel %vm659_vm0, %v4289_v0, %v4318_v48 }
 0x5f3   : > { %v4322_v7 = vpop.permute.xlu0 %4321  ;;  %v3241_v16 = vpack.c.bf16 %v2439_v26, %v2437_v45  ;;  %v3243_v3 = vpack.c.bf16 %v2438_v58, %v2436_v47  ;;  %v4329_v8 = vunpack.i.h.bf16 %v4327_v51  ;;  %v4328_v36 = vunpack.i.l.bf16 %v4327_v51 }
 0x5f4   : > { %v4324_v6 = vunpack.i.h.bf16 %v4322_v7  ;;  %v4323_v24 = vunpack.i.l.bf16 %v4322_v7 }
 0x5f5   : > { %3242 = vmatprep.subr.bf16.mxu1 %v3241_v16  ;;  %v2451_v52 = vsel %vm659_vm0, %v4328_v36, %v4329_v8 }
 0x5f6   : > { %3244 = vmatpush1.bf16.msra.mxu1 %v3243_v3  ;;  %v4342_v25 = vpop.permute.xlu1 %4341  ;;  %v2449_v27 = vsel %vm659_vm0, %v4323_v24, %v4324_v6 }
 0x5f7   : > { %v4332_v2 = vpop.permute.xlu0 %4331  ;;  %3246 = vmatprep.subr.bf16.mxu1 %v3245_v32  ;;  %v4344_v18 = vunpack.i.h.bf16 %v4342_v25  ;;  %v4343_v34 = vunpack.i.l.bf16 %v4342_v25  ;;  %v3253_v41 = vpack.c.bf16 %v2451_v52, %v2449_v27  ;;  %v1723_v25 = vld [vmem:[#allocation8 + $0x18] sm:$0xff] }
 0x5f8   : > { %v4334_v50 = vunpack.i.h.bf16 %v4332_v2  ;;  %v4333_v63 = vunpack.i.l.bf16 %v4332_v2 }
 0x5f9   : > { %v2453_v11 = vsel %vm659_vm0, %v4343_v34, %v4344_v18  ;;  %v1725_v18 = vld [vmem:[#allocation8 + $0x28] sm:$0xff] }
 0x5fa   : > { %3248 = vmatpush1.bf16.msra.mxu1 %v3247_v4  ;;  %v4352_v53 = vpop.permute.xlu1 %4351  ;;  %v2447_v21 = vsel %vm659_vm0, %v4333_v63, %v4334_v50  ;;  %v2446_v55 = vsel %vm659_vm0, %v4314_v56, %v4333_v63  ;;  %v1727_v50 = vld [vmem:[#allocation8 + $0x38] sm:$0xff] }
 0x5fb   : > { %v4337_v13 = vpop.permute.xlu0 %4336  ;;  %v3249_v62 = vpack.c.bf16 %v2447_v21, %v2445_v37  ;;  %v3251_v33 = vpack.c.bf16 %v2446_v55, %v2444_v57  ;;  %v4353_v42 = vunpack.i.l.bf16 %v4352_v53  ;;  %v4354_v1 = vunpack.i.h.bf16 %v4352_v53  ;;  %v1726_v55 = vld [vmem:[#allocation8 + $0x30] sm:$0xff] }
 0x5fc   : > { %v4339_v12 = vunpack.i.h.bf16 %v4337_v13  ;;  %v4338_v38 = vunpack.i.l.bf16 %v4337_v13 }
 0x5fd   : > { %3250 = vmatprep.subr.bf16.mxu1 %v3249_v62  ;;  %v2452_v0 = vsel %vm659_vm0, %v4353_v42, %v4343_v34  ;;  %v1730_v62 = vld [vmem:[#allocation8 + $0x50] sm:$0xff]  ;;  %v1728_v34 = vld [vmem:[#allocation8 + $0x40] sm:$0xff]  ;;  %v1731_v42 = vld [vmem:[#allocation8 + $0x58] sm:$0xff] }
 0x5fe   : > { %3252 = vmatpush1.bf16.msra.mxu1 %v3251_v33  ;;  %v4362_v14 = vpop.permute.xlu1 %4361  ;;  %v2448_v31 = vsel %vm659_vm0, %v4338_v38, %v4323_v24  ;;  %v2450_v30 = vsel %vm659_vm0, %v4339_v12, %v4328_v36  ;;  %v1729_v33 = vld [vmem:[#allocation8 + $0x48] sm:$0xff]  ;;  %v6925_v12 = vmov 0.0   ;;  %v1722_v38 = vld [vmem:[#allocation8 + $0x10] sm:$0xff] }
 0x5ff   : > { %v4347_v23 = vpop.permute.xlu0 %4346  ;;  %3254 = vmatprep.subr.bf16.mxu1 %v3253_v41  ;;  %v3255_v54 = vpack.c.bf16 %v2450_v30, %v2448_v31  ;;  %v4364_v15 = vunpack.i.h.bf16 %v4362_v14  ;;  %v4363_v48 = vunpack.i.l.bf16 %v4362_v14 }
 0x600   : > { %v4349_v43 = vunpack.i.h.bf16 %v4347_v23  ;;  %v4348_v59 = vunpack.i.l.bf16 %v4347_v23 }
 0x601   : > { %v2459_v16 = vsel %vm659_vm0, %v4363_v48, %v4364_v15 }
 0x602   : > { %3256 = vmatpush1.bf16.msra.mxu1 %v3255_v54  ;;  %v4372_v46 = vpop.permute.xlu1 %4371  ;;  %v2455_v60 = vsel %vm659_vm0, %v4348_v59, %v4349_v43  ;;  %v2454_v45 = vsel %vm659_vm0, %v4354_v1, %v4348_v59 }
 0x603   : > { %v4357_v47 = vpop.permute.xlu0 %4356  ;;  %v3257_v51 = vpack.c.bf16 %v2455_v60, %v2453_v11  ;;  %v3259_v26 = vpack.c.bf16 %v2454_v45, %v2452_v0  ;;  %v4374_v22 = vunpack.i.h.bf16 %v4372_v46  ;;  %v4373_v8 = vunpack.i.l.bf16 %v4372_v46 }
 0x604   : > { %v4359_v58 = vunpack.i.h.bf16 %v4357_v47  ;;  %v4358_v17 = vunpack.i.l.bf16 %v4357_v47 }
 0x605   : > { %3258 = vmatprep.subr.bf16.mxu1 %v3257_v51  ;;  %v2461_v57 = vsel %vm659_vm0, %v4373_v8, %v4374_v22 }
 0x606   : > { %3260 = vmatpush1.bf16.msra.mxu1 %v3259_v26  ;;  %v2457_v7 = vsel %vm659_vm0, %v4358_v17, %v4359_v58  ;;  %v4382_v3 = vpop.permute.xlu1 %4381 }
 0x607   : > { %v4367_v44 = vpop.permute.xlu0 %4366  ;;  %v3261_v10 = vpack.c.bf16 %v2459_v16, %v2457_v7  ;;  %v4383_v36 = vunpack.i.l.bf16 %v4382_v3  ;;  %v4384_v63 = vunpack.i.h.bf16 %v4382_v3  ;;  %v2859_v3 = vld [vmem:[#allocation2] sm:$0x1] }
 0x608   : > { %v4369_v32 = vunpack.i.h.bf16 %v4367_v44  ;;  %v4368_v35 = vunpack.i.l.bf16 %v4367_v44 }
 0x609   : > { %2613 = vmatmul.mubr.f32.vlgmr.msra.gmra.mrb[0].mxu1 %v1720_v39  ;;  %3262 = vmatprep.subr.bf16.mxu1 %v3261_v10  ;;  %v2460_v53 = vsel %vm659_vm0, %v4383_v36, %v4373_v8 }
 0x60a   : > { %v2458_v6 = vsel %vm659_vm0, %v4369_v32, %v4363_v48  ;;  %v2456_v24 = vsel %vm659_vm0, %v4368_v35, %v4358_v17  ;;  %2618 = vmatprep.mubr.f32.mxu1 %v1724_v28 }
 0x60b   : > { %v3263_v2 = vpack.c.bf16 %v2458_v6, %v2456_v24  ;;  %v4377_v56 = vpop.permute.xlu0 %4376 }
 0x60c   : > { %v4379_v4 = vunpack.i.h.bf16 %v4377_v56  ;;  %v4378_v37 = vunpack.i.l.bf16 %v4377_v56 }
 0x60d   : > { %2619 = vmatmul.mubr.f32.gmra.mrb[2].mxu1 %v1723_v25 }
 0x60e   : > { %v2462_v21 = vsel %vm659_vm0, %v4384_v63, %v4378_v37  ;;  %3264 = vmatpush1.bf16.msra.mxu1 %v3263_v2  ;;  %2624 = vmatprep.mubr.f32.mxu1 %v1727_v50  ;;  %v2463_v27 = vsel %vm659_vm0, %v4378_v37, %v4379_v4 }
 0x60f   : > { %v3267_v52 = vpack.c.bf16 %v2462_v21, %v2460_v53  ;;  %v3265_v13 = vpack.c.bf16 %v2463_v27, %v2461_v57 }
 0x611   : > { %2625 = vmatmul.mubr.f32.gmra.mrb[4].mxu1 %v1726_v55  ;;  %3266 = vmatprep.subr.bf16.mxu1 %v3265_v13 }
 0x612   : > { %3268 = vmatpush1.bf16.msra.mxu1 %v3267_v52  ;;  %2630 = vmatprep.mubr.f32.mxu1 %v1730_v62 }
 0x615   : > { %2631 = vmatmul.mubr.f32.gmra.mrb[6].mxu1 %v1729_v33  ;;  %v2726_v33 = vld [vmem:[%s6758_s6] sm:$0xff] }
 0x616   : > { %2701 = vmatprep.mubr.f32.mxu1 %v6925_v12 }
 0x619   : > { %3113 = vmatmul.mubr.msk.f32.vlgmr.msra.gmra.mrb[0].mxu1 %vm1389_vm13, %v1722_v38 }
 0x61a   : > { %2707 = vmatprep.mubr.f32.mxu1 %v6925_v12 }
 0x61d   : > { %3114 = vmatmul.mubr.msk.f32.gmra.mrb[2].mxu1 %vm1389_vm13, %v1725_v18 }
 0x61e   : > { %2713 = vmatprep.mubr.f32.mxu1 %v6925_v12 }
 0x621   : > { %3115 = vmatmul.mubr.msk.f32.gmra.mrb[4].mxu1 %vm1389_vm13, %v1728_v34 }
 0x622   : > { %2719 = vmatprep.mubr.f32.mxu1 %v6925_v12 }
 0x625   : > { %3116 = vmatmul.mubr.msk.f32.gmra.mrb[6].mxu1 %vm1389_vm13, %v1731_v42 }
 0x661   : > { %v6637_v44 = vpop.f32.mrb[8].mxu0 }
 0x662   : > { %v6639_v10 = vpop.f32.mrb[9].mxu0 }
 0x6ec   : > { %v6597_v41 = vpop.f32.mrb[0].mxu1 }
 0x6ed   : > { %v2746_v14 = vmul.f32 %v6597_v41, %v6597_v41  ;;  %v6601_v31 = vpop.f32.mrb[1].mxu1 }
 0x6ee   : > { %v2734_v30 = vadd.f32 %v6601_v31, %v6597_v41  ;;  %v2747_v23 = vmul.f32 %v6601_v31, %v6601_v31 }
 0x6f0   : > { %2735 = vadd.xlane.f32.xlu0 %v2734_v30  ;;  %v6607_v54 = vpop.f32.mrb[2].mxu1  ;;  %v2754_v1 = vadd.f32 %v2747_v23, %v2746_v14  ;;  %v2727_v30 = vld [vmem:[%s6758_s6 + $0x8] sm:$0xff] }
 0x6f1   : > { %v2748_v43 = vmul.f32 %v6607_v54, %v6607_v54  ;;  %v6611_v59 = vpop.f32.mrb[3].mxu1 }
 0x6f2   : > { %v2737_v11 = vadd.f32 %v6611_v59, %v6607_v54  ;;  %v2749_v0 = vmul.f32 %v6611_v59, %v6611_v59  ;;  %2755 = vadd.xlane.f32.xlu1 %v2754_v1 }
 0x6f4   : > { %v6617_v15 = vpop.f32.mrb[4].mxu1  ;;  %v2757_v48 = vadd.f32 %v2749_v0, %v2748_v43  ;;  %v2731_v0 = vld [vmem:[%s6759_s7 + $0x8] sm:$0xff] }
 0x6f5   : > { %v2750_v46 = vmul.f32 %v6617_v15, %v6617_v15  ;;  %v6621_v60 = vpop.f32.mrb[5].mxu1 }
 0x6f6   : > { %v2740_v45 = vadd.f32 %v6621_v60, %v6617_v15  ;;  %v2751_v47 = vmul.f32 %v6621_v60, %v6621_v60  ;;  %2758 = vadd.xlane.f32.xlu0 %v2757_v48  ;;  %2738 = vadd.xlane.f32.xlu1 %v2737_v11  ;;  %v2728_v48 = vld [vmem:[%s6758_s6 + $0x10] sm:$0xff] }
 0x6f8   : > { %v6627_v51 = vpop.f32.mrb[6].mxu1  ;;  %v2760_v26 = vadd.f32 %v2751_v47, %v2750_v46  ;;  %v2730_v46 = vld [vmem:[%s6759_s7] sm:$0xff] }
 0x6f9   : > { %v2752_v58 = vmul.f32 %v6627_v51, %v6627_v51  ;;  %v6631_v17 = vpop.f32.mrb[7].mxu1 }
 0x6fa   : > { %v2743_v39 = vadd.f32 %v6631_v17, %v6627_v51  ;;  %v2753_v7 = vmul.f32 %v6631_v17, %v6631_v17  ;;  %2761 = vadd.xlane.f32.xlu1 %v2760_v26  ;;  %2741 = vadd.xlane.f32.xlu0 %v2740_v45 }
 0x6fc   : > { %v2763_v16 = vadd.f32 %v2753_v7, %v2752_v58  ;;  %v2729_v7 = vld [vmem:[%s6758_s6 + $0x18] sm:$0xff] }
 0x6fe   : > { %2744 = vadd.xlane.f32.xlu0 %v2743_v39 }
 0x702   : > { %2764 = vadd.xlane.f32.xlu0 %v2763_v16 }
 0x70b   : > { %2862 = vperm.xlu1 %3883, %v2859_v3  }
 0x77d   : > { %v2736_v28 = vpop.xlane.xlu0 %2735 }
 0x77e   : > { %v2766_v32 = vmul.f32 0.00390625, %v2736_v28  ;;  %v2732_v28 = vld [vmem:[%s6759_s7 + $0x10] sm:$0xff] }
 0x77f   : > { %v2756_v35 = vpop.xlane.xlu1 %2755 }
 0x780   : > { %v2774_v22 = vmul.f32 %v2766_v32, %v2766_v32  ;;  %v2770_v8 = vmul.f32 0.00390625, %v2756_v35  ;;  %v2733_v35 = vld [vmem:[%s6759_s7 + $0x18] sm:$0xff] }
 0x782   : > { %v2778_v36 = vsub.f32 %v2770_v8, %v2774_v22 }
 0x783   : > { %v2759_v6 = vpop.xlane.xlu0 %2758  ;;  %v2739_v24 = vpop.xlane.xlu1 %2738 }
 0x784   : > { %v2782_v25 = vadd.f32 1e-05, %v2778_v36  ;;  %v2767_v2 = vmul.f32 0.00390625, %v2739_v24  ;;  %v2771_v56 = vmul.f32 0.00390625, %v2759_v6  ;;  %v6926_v24 = vld [vmem:[#allocation17_spill] sm:$0xff] }
 0x786   : > { %4393 = vrsqrt.f32 %v2782_v25  ;;  %v2775_v50 = vmul.f32 %v2767_v2, %v2767_v2 }
 0x787   : > { %v2762_v63 = vpop.xlane.xlu1 %2761  ;;  %v2742_v4 = vpop.xlane.xlu0 %2741 }
 0x788   : > { %v2779_v37 = vsub.f32 %v2771_v56, %v2775_v50  ;;  %v2768_v57 = vmul.f32 0.00390625, %v2742_v4  ;;  %v2772_v21 = vmul.f32 0.00390625, %v2762_v63 }
 0x78a   : > { %v2783_v53 = vadd.f32 1e-05, %v2779_v37  ;;  %v2776_v55 = vmul.f32 %v2768_v57, %v2768_v57 }
 0x78b   : > { %v2745_v27 = vpop.xlane.xlu0 %2744  ;;  %v2863_v6 = vpop.permute.xlu1 %2862 }
 0x78c   : > { %4395 = vrsqrt.f32 %v2783_v53  ;;  %v2780_v52 = vsub.f32 %v2772_v21, %v2776_v55  ;;  %v2769_v13 = vmul.f32 0.00390625, %v2745_v27  ;;  %v2868_v25 = vrot.slane %v2863_v6, %v6926_v24 }
 0x78e   : > { %v2784_v62 = vadd.f32 1e-05, %v2780_v52  ;;  %v2777_v18 = vmul.f32 %v2769_v13, %v2769_v13  ;;  %v2941_v56 = vadd.f32 %v6639_v10, %v2868_v25 }
 0x78f   : > { %v2765_v12 = vpop.xlane.xlu0 %2764 }
 0x790   : > { %v4394_v38 = vpop.eup %4393  ;;  %4397 = vrsqrt.f32 %v2784_v62  ;;  %v2773_v34 = vmul.f32 0.00390625, %v2765_v12 }
 0x791   : > { %v2790_v42 = vmul.f32 %v4394_v38, %v2726_v33 }
 0x792   : > { %v2781_v14 = vsub.f32 %v2773_v34, %v2777_v18 }
 0x793   : > { %2804 = vperm.xlu0 %3884, %v2790_v42   ;;  %v2794_v11 = vmul.f32 %v2790_v42, %v2766_v32 }
 0x794   : > { %v2785_v23 = vadd.f32 1e-05, %v2781_v14 }
 0x795   : > { %v2798_v39 = vsub.f32 %v2730_v46, %v2794_v11 }
 0x796   : > { %v4396_v1 = vpop.eup %4395  ;;  %4399 = vrsqrt.f32 %v2785_v23 }
 0x797   : > { %v2791_v43 = vmul.f32 %v4396_v1, %v2727_v30 }
 0x799   : > { %v2795_v45 = vmul.f32 %v2791_v43, %v2767_v2  ;;  %2809 = vperm.xlu1 %3883, %v2791_v43   ;;  %v2939_v2 = vadd.f32 %v6637_v44, %v2868_v25 }
 0x79a   : > { %v4398_v47 = vpop.eup %4397 }
 0x79b   : > { %v2799_v26 = vsub.f32 %v2731_v0, %v2795_v45  ;;  %v2792_v58 = vmul.f32 %v4398_v47, %v2728_v48  ;;  %4401 = vtanh.f32 %v2939_v2 }
 0x79c   : > { %4403 = vtanh.f32 %v2941_v56 }
 0x79d   : > { %2832 = vperm.xlu1 %3883, %v2798_v39   ;;  %2837 = vperm.xlu0 %3884, %v2799_v26   ;;  %v2796_v16 = vmul.f32 %v2792_v58, %v2768_v57 }
 0x79f   : > { %v2800_v22 = vsub.f32 %v2732_v28, %v2796_v16 }
 0x7a0   : > { %v4400_v3 = vpop.eup %4399 }
 0x7a1   : > { %2814 = vperm.xlu1 %3883, %v2792_v58   ;;  %v2793_v32 = vmul.f32 %v4400_v3, %v2729_v7 }
 0x7a3   : > { %2819 = vperm.xlu0 %3884, %v2793_v32   ;;  %v2797_v8 = vmul.f32 %v2793_v32, %v2769_v13 }
 0x7a5   : > { %2842 = vperm.xlu1 %3883, %v2800_v22   ;;  %v2801_v36 = vsub.f32 %v2733_v35, %v2797_v8  ;;  %v4402_v50 = vpop.eup %4401 }
 0x7a6   : > { %v4404_v63 = vpop.eup %4403  ;;  %v2945_v4 = vmax.f32 %v4402_v50, 0.0 }
 0x7a7   : > { %2847 = vperm.xlu0 %3884, %v2801_v36   ;;  %v2946_v37 = vmax.f32 %v4404_v63, 0.0 }
 0x7a8   : > { %v2950_v52 = vrot.slane %v2945_v4, %v6926_v24 }
 0x7a9   : > { %v2954_v10 = vrot.slane %v2946_v37, %v6926_v24 }
 0x812   : > { %v2805_v57 = vpop.permute.xlu0 %2804 }
 0x813   : > { %v2822_v21 = vmul.f32 %v2805_v57, %v6597_v41  ;;  %v2823_v55 = vmul.f32 %v2805_v57, %v6601_v31 }
 0x818   : > { %v2810_v53 = vpop.permute.xlu1 %2809 }
 0x819   : > { %v2824_v27 = vmul.f32 %v2810_v53, %v6607_v54  ;;  %v2825_v44 = vmul.f32 %v2810_v53, %v6611_v59 }
 0x81c   : > { %v2833_v13 = vpop.permute.xlu1 %2832  ;;  %v2838_v62 = vpop.permute.xlu0 %2837 }
 0x81d   : > { %v2850_v33 = vadd.f32 %v2833_v13, %v2822_v21  ;;  %v2851_v12 = vadd.f32 %v2833_v13, %v2823_v55  ;;  %v2852_v38 = vadd.f32 %v2838_v62, %v2824_v27  ;;  %v2853_v18 = vadd.f32 %v2838_v62, %v2825_v44 }
 0x81f   : > { %v2955_v41 = vmul.f32 %v2950_v52, %v2850_v33  ;;  %v2956_v34 = vmul.f32 %v2954_v10, %v2851_v12  ;;  %v2957_v31 = vmul.f32 %v2950_v52, %v2852_v38  ;;  %v2958_v42 = vmul.f32 %v2954_v10, %v2853_v18 }
 0x820   : > { %v2815_v54 = vpop.permute.xlu1 %2814 }
 0x821   : > { %v2963_v59 = vadd.f32 %v6467_v19, %v2955_v41  ;;  %v2964_v14 = vadd.f32 %v6459_v49, %v2956_v34  ;;  %v2965_v30 = vadd.f32 %v6464_v40, %v2957_v31  ;;  %v2966_v23 = vadd.f32 %v6456_v5, %v2958_v42 }
 0x822   : > { %v2826_v1 = vmul.f32 %v2815_v54, %v6617_v15  ;;  %v2827_v43 = vmul.f32 %v2815_v54, %v6621_v60  ;;  %v2820_v11 = vpop.permute.xlu0 %2819 }
 0x823   : > { %v2971_v0 = vmax.f32 %v2963_v59, 0.0  ;;  %v2972_v48 = vmax.f32 %v2964_v14, 0.0  ;;  %v2973_v46 = vmax.f32 %v2965_v30, 0.0  ;;  %v2974_v45 = vmax.f32 %v2966_v23, 0.0 }
 0x824   : > { %v2843_v47 = vpop.permute.xlu1 %2842  ;;  %v2828_v5 = vmul.f32 %v2820_v11, %v6627_v51  ;;  %v2829_v49 = vmul.f32 %v2820_v11, %v6631_v17 }
 0x825   : > { %2979 = vst [vmem:[%s6683_s27] sm:$0xff] %v2971_v0  ;;  %2980 = vst [vmem:[%s6683_s27 + $0x8] sm:$0xff] %v2972_v48  ;;  %v2854_v40 = vadd.f32 %v2843_v47, %v2826_v1  ;;  %v2855_v19 = vadd.f32 %v2843_v47, %v2827_v43 }
 0x826   : > { %2981 = vst [vmem:[%s6683_s27 + $0x10] sm:$0xff] %v2973_v46  ;;  %2982 = vst [vmem:[%s6683_s27 + $0x18] sm:$0xff] %v2974_v45  ;;  %v2848_v15 = vpop.permute.xlu0 %2847 }
 0x827   : > { %v2959_v60 = vmul.f32 %v2950_v52, %v2854_v40  ;;  %v2960_v26 = vmul.f32 %v2954_v10, %v2855_v19  ;;  %v2856_v58 = vadd.f32 %v2848_v15, %v2828_v5  ;;  %v2857_v39 = vadd.f32 %v2848_v15, %v2829_v49 }
 0x829   : > { %v2967_v7 = vadd.f32 %v6480_v9, %v2959_v60  ;;  %v2968_v16 = vadd.f32 %v6472_v20, %v2960_v26  ;;  %v2961_v3 = vmul.f32 %v2950_v52, %v2856_v58  ;;  %v2962_v51 = vmul.f32 %v2954_v10, %v2857_v39 }
 0x82b   : > { %v2975_v17 = vmax.f32 %v2967_v7, 0.0  ;;  %v2976_v28 = vmax.f32 %v2968_v16, 0.0  ;;  %v2969_v32 = vadd.f32 %v6483_v61, %v2961_v3  ;;  %v2970_v35 = vadd.f32 %v6475_v29, %v2962_v51 }
 0x82d   : > { %2983 = vst [vmem:[%s6683_s27 + $0x20] sm:$0xff] %v2975_v17  ;;  %2984 = vst [vmem:[%s6683_s27 + $0x28] sm:$0xff] %v2976_v28  ;;  %v2977_v20 = vmax.f32 %v2969_v32, 0.0  ;;  %v2978_v9 = vmax.f32 %v2970_v35, 0.0 }
 0x82f   : > { %2985 = vst [vmem:[%s6683_s27 + $0x30] sm:$0xff] %v2977_v20  ;;  %2986 = vst [vmem:[%s6683_s27 + $0x38] sm:$0xff] %v2978_v9 }
 0x830   : > { %4510 = shalt.err (!%p4507_p11)
}
 0x831   : > { %s4511_s12 = scalar_lea.hbm %s6700_s2, 1024  ;;  %s4515_s25 = scalar_lea.hbm %s6762_s10, 2048 }
 0x832   : > { %p4512_p5 = scmp.ne.s32.totalorder %s6700_s2, %s4511_s12  ;;  %p4516_p9 = scmp.lt.u32.totalorder %s6700_s2, %s6762_s10 }
 0x833   : > { %p4517_p10 = scmp.lt.u32.totalorder %s4515_s25, %s4511_s12  ;;  %p4519_p13 = scmp.lt.u32.totalorder %s4511_s12, %s6700_s2 }
 0x834   : > { %p4513_p0 = pnand %p4512_p5, %p6927_p1 }
 0x835   : > { %p4518_p12 = por %p4517_p10, %p4516_p9 }
 0x836   : > { %p4514_p6 = pneg %p4513_p0 }
 0x837   : > { %p4520_p2 = por %p4519_p13, %p4518_p12 }
 0x839   : > { %p4521_p3 = pnand %p4520_p2, %p4514_p6 }
 0x83b   : > { %4524 = shalt.err (!%p4521_p3)
}
 0x83c   : > { %s4592_s14 = smov 256   ;;  %s6928_s27 = smov 16  }
 0x83d   : > { %3305 = dma.vmem_to_hbm [thread:$0]  (%p6927_p1), %s6704_s11, 1024, %s6700_s2, %s6710_s9, %s4592_s14, %s4592_s14, %s6928_s27  }
 0x83e PF: > { %s6929_s28 = sld [smem:[#allocation16_spill]]  ;;  %p3327_p4 = scmp.ge.s32.totalorder %s4567_s18, 2 }
 0x83f   : > { %s3016_s13 = sand.u32 1, %s4555_s15  }
 0x840   : > { %s3017_s17 = scalar_lea.sflag [#allocation5], %s3016_s13 }
 0x844   : > { %p6930_p7 = scmp.ne.s32.totalorder %s6929_s28, 0 }
 0x846   : > { %p3318_p8 = pnand %p3327_p4, %p6930_p7 }
 0x848   : > { %4550 = dma.done.wait (!%p3318_p8), %s3017_s17, 1024  }
 0x849   : > { %4552 = vsyncadd (!%p3318_p8), %s3017_s17, 4294966272  ;;  %s6931_s18 = sld [smem:[#allocation14_spill]]  ;;  %s6932_s19 = sld [smem:[#allocation13_spill]] }
 0x84a   : > { %s6933_s17 = sld [smem:[#allocation15_spill]]  ;;  %s6934_s15 = smov %s4559_s16 }
 0x84f   : > { %p24_p11 = scmp.ge.s32.totalorder %s6931_s18, 4   ;;  %s6935_s16 = smov %s6932_s19 }
 0x851   :  { %26 = sbr.rel (!%p24_p11) target bundleno = 8 (0x8), region = 108 }
 0x858   :  { %3022 = vsyncpa [#allocation4], 1 }
 0x859   :  { %3024 = vsyncpa [#allocation4 + $0x1], 1 }
 0x85a   :  { %3025 = vsyncpa [#allocation7], 1 }
 0x85b   :  { %3026 = vsyncpa [#allocation5], 1 }
 0x85c   :  { %3028 = vsyncpa [#allocation5 + $0x1], 1 }

</bundles_post_ra>
